<compile_context>
chip_gen: v7x
topology: tpu7x:2x2x1
jax: 0.10.0
libtpu: 0.0.40
codegen_flags: <defaults>
</compile_context>

<pallas_src>
import functools

import jax
import jax.numpy as jnp
from jax.experimental import pallas as pl
from jax.experimental.pallas import tpu as pltpu

_LANE = 128


def _round_up(x, m):
    return (x + m - 1) // m * m


def _gelu_exact(x):
    # erf-based GELU matching nn.GELU() (approximate='none').
    # Abramowitz & Stegun 7.1.26 polynomial erf (|err| <= 1.5e-7).  The divide is
    # routed to the EUP with pl.reciprocal(approx=True); exp is EUP too, so the
    # VALU slots stay free for the depthwise-conv / LayerNorm FMAs.
    a1, a2, a3, a4, a5 = 0.254829592, -0.284496736, 1.421413741, -1.453152027, 1.061405429
    p = 0.3275911
    u = x * 0.7071067811865476
    s = jnp.where(u >= 0.0, 1.0, -1.0)
    au = jnp.abs(u)
    t = pl.reciprocal(1.0 + p * au, approx=True)
    poly = ((((a5 * t + a4) * t + a3) * t + a2) * t + a1) * t
    erf = s * (1.0 - poly * jnp.exp(-au * au))
    return 0.5 * x * (1.0 + erf)


def _convnext_kernel(
    x_ref, dww_ref, dwb_ref, lng_ref, lnb_ref,
    w1_ref, b1_ref, w2_ref, b2_ref, gamma_ref, o_ref,
    *, TH, W, K, C_true, eps,
):
    """One (batch, row-band) step.

    x_ref:  (1, TH + K - 1, W + K - 1, Cp)  halo'd input band (f32)
    o_ref:  (1, TH, W, Cop)                 output band
    """
    pad = (K - 1) // 2
    Cp = dww_ref.shape[-1]

    # ---- depthwise KxK conv: 9 statically shifted REF slices (plain vlds).
    # Accumulator is seeded from the center tap + bias (saves a broadcast-add pass).
    cy = cx = pad
    y = (x_ref[0, cy:cy + TH, cx:cx + W, :].astype(jnp.float32) * dww_ref[cy * K + cx]
         + dwb_ref[0])
    for ky in range(K):
        for kx in range(K):
            if ky == cy and kx == cx:
                continue
            y = y + (x_ref[0, ky:ky + TH, kx:kx + W, :].astype(jnp.float32)
                     * dww_ref[ky * K + kx])

    # ---- LayerNorm over the true channel count, single reduction pass
    # (var = E[x^2] - mean^2).  Padded channels are exactly zero after the conv
    # (zero taps + zero bias), so lane-wide sums equal sums over the true C.
    yf = y.reshape(TH * W, Cp)
    inv_c = 1.0 / float(C_true)
    mean = jnp.sum(yf, axis=-1, keepdims=True) * inv_c
    ex2 = jnp.sum(yf * yf, axis=-1, keepdims=True) * inv_c
    var = ex2 - mean * mean
    yn = (yf - mean) * jax.lax.rsqrt(var + eps)
    yn = yn * lng_ref[0] + lnb_ref[0]

    # ---- pwconv1 (bf16 MXU inputs, f32 accumulate) + exact GELU
    h = jnp.dot(yn.astype(jnp.bfloat16), w1_ref[...],
                preferred_element_type=jnp.float32) + b1_ref[0]
    h = _gelu_exact(h)

    # ---- pwconv2 (bf16 MXU) + layer scale + residual (interior of the halo band)
    z = jnp.dot(h.astype(jnp.bfloat16), w2_ref[...],
                preferred_element_type=jnp.float32) + b2_ref[0]
    z = z * gamma_ref[0]
    res = x_ref[0, pad:pad + TH, pad:pad + W, :].astype(jnp.float32)
    o_ref[0] = (res + z.reshape(TH, W, z.shape[-1])).astype(o_ref.dtype)


def _pick_tile_h(N, H, W, Cp, Hdp, Cop, pad, *, vmem_budget=10 * 2**20, min_steps=4):
    """Largest row-band TH (divisor of H) whose working set fits the VMEM budget,
    shrunk further (down to 8 rows) so the grid has enough steps to pipeline and
    to feed both v7x TensorCores even at tiny batch."""
    divisors = [d for d in range(1, H + 1) if H % d == 0]

    def est_bytes(th):
        band = (th + 2 * pad) * (W + 2 * pad) * Cp * 4 * 2   # input band, double-buffered
        outb = th * W * Cop * 4 * 2                          # output band, double-buffered
        inter = th * W * (3 * Cp + 2 * Hdp) * 4              # rough live f32 intermediates
        wts = (Cp * Hdp + Hdp * Cop) * 2 + 16 * Cp * 4       # bf16 weights + small vectors
        return band + outb + inter + wts

    fitting = [d for d in divisors if est_bytes(d) <= vmem_budget]
    th = max(fitting) if fitting else divisors[0]
    while N * (H // th) < min_steps and th > 8:
        smaller = [d for d in divisors if d < th]
        if not smaller:
            break
        th = max(smaller)
    return th


def _build_call(N, H, W, Cp, Hdp, Cop, K, pad, TH, eps, C_true, out_dtype):
    Hp, Wp = H + 2 * pad, W + 2 * pad
    nH = H // TH
    band = TH + 2 * pad

    if TH == H:
        # Single band == full padded H: plain blocked spec.
        x_spec = pl.BlockSpec((1, band, Wp, Cp), lambda b, i: (b, 0, 0, 0))
    else:
        # Overlapping halo bands: element-indexed H dim (offset in rows).
        x_spec = pl.BlockSpec((1, pl.Element(band), Wp, Cp),
                              lambda b, i: (b, i * TH, 0, 0))

    kernel = functools.partial(_convnext_kernel, TH=TH, W=W, K=K,
                               C_true=C_true, eps=eps)

    return pl.pallas_call(
        kernel,
        out_shape=jax.ShapeDtypeStruct((N, H, W, Cop), out_dtype),
        grid_spec=pltpu.PrefetchScalarGridSpec(
            num_scalar_prefetch=0,
            grid=(N, nH),
            in_specs=[
                x_spec,
                pl.BlockSpec((K * K, Cp), lambda b, i: (0, 0)),
                pl.BlockSpec((1, Cp), lambda b, i: (0, 0)),
                pl.BlockSpec((1, Cp), lambda b, i: (0, 0)),
                pl.BlockSpec((1, Cp), lambda b, i: (0, 0)),
                pl.BlockSpec((Cp, Hdp), lambda b, i: (0, 0)),
                pl.BlockSpec((1, Hdp), lambda b, i: (0, 0)),
                pl.BlockSpec((Hdp, Cop), lambda b, i: (0, 0)),
                pl.BlockSpec((1, Cop), lambda b, i: (0, 0)),
                pl.BlockSpec((1, Cop), lambda b, i: (0, 0)),
            ],
            out_specs=pl.BlockSpec((1, TH, W, Cop), lambda b, i: (b, i, 0, 0)),
        ),
        compiler_params=pltpu.CompilerParams(
            dimension_semantics=("parallel", "parallel"),
            vmem_limit_bytes=32 * 1024 * 1024,
        ),
    )


def convnext_block(x_nchw, params, *, kernel_size=3, eps=1e-6):
    N, C, H, W = x_nchw.shape
    K = kernel_size
    pad = (K - 1) // 2
    Hd = params["w1"].shape[1]
    Cout = params["w2"].shape[1]
    assert Cout == C, "residual add requires out_channel == in_channel"

    # Lane-dense channel padding (zeros are exactly neutral through conv/LN/MLP).
    Cp = _round_up(C, _LANE)
    Hdp = _round_up(Hd, _LANE)
    Cop = _round_up(Cout, _LANE)

    x = jnp.transpose(x_nchw, (0, 2, 3, 1))                                   # NHWC
    x_pad = jnp.pad(x, ((0, 0), (pad, pad), (pad, pad), (0, Cp - C)))         # halo + channel pad

    dww = jnp.pad(params["dw_w"], ((0, 0), (0, Cp - C)))                      # (K*K, Cp)
    dwb = jnp.pad(params["dw_b"], (0, Cp - C)).reshape(1, Cp)
    lng = jnp.pad(params["ln_g"], (0, Cp - C)).reshape(1, Cp)
    lnb = jnp.pad(params["ln_b"], (0, Cp - C)).reshape(1, Cp)
    w1 = jnp.pad(params["w1"], ((0, Cp - C), (0, Hdp - Hd))).astype(jnp.bfloat16)
    b1 = jnp.pad(params["b1"], (0, Hdp - Hd)).reshape(1, Hdp)
    w2 = jnp.pad(params["w2"], ((0, Hdp - Hd), (0, Cop - Cout))).astype(jnp.bfloat16)
    b2 = jnp.pad(params["b2"], (0, Cop - Cout)).reshape(1, Cop)
    gamma = jnp.pad(params["gamma"], (0, Cop - Cout)).reshape(1, Cop)

    TH = _pick_tile_h(N, H, W, Cp, Hdp, Cop, pad)
    if not hasattr(pl, "Element"):      # older jax: no element-indexed halo bands
        TH = H

    args = (x_pad, dww, dwb, lng, lnb, w1, b1, w2, b2, gamma)
    try:
        out = _build_call(N, H, W, Cp, Hdp, Cop, K, pad, TH, eps, C, x.dtype)(*args)
    except Exception:
        if TH == H:
            raise
        # Fallback: single full-height band per image (blocked specs only).
        out = _build_call(N, H, W, Cp, Hdp, Cop, K, pad, H, eps, C, x.dtype)(*args)

    out = out[..., :Cout]
    return jnp.transpose(out, (0, 3, 1, 2))                                   # back to NCHW


def convnext_block_reference(x_nchw, params, *, kernel_size=3, eps=1e-6):
    # Pure-JAX reference mirroring the PyTorch module (for correctness check).
    N, C, H, W = x_nchw.shape
    K = kernel_size
    pad = (K - 1) // 2
    w = params["dw_w"].reshape(K, K, C)
    wt = jnp.transpose(w, (2, 0, 1))[:, None, :, :]                 # (C,1,K,K)
    y = jax.lax.conv_general_dilated(
        x_nchw, wt, (1, 1), ((pad, pad), (pad, pad)),
        dimension_numbers=("NCHW", "OIHW", "NCHW"), feature_group_count=C)
    y = y + params["dw_b"].reshape(1, C, 1, 1)
    yn = jnp.transpose(y, (0, 2, 3, 1))
    mean = yn.mean(-1, keepdims=True)
    var = ((yn - mean) ** 2).mean(-1, keepdims=True)
    yn = (yn - mean) / jnp.sqrt(var + eps) * params["ln_g"] + params["ln_b"]
    h = yn @ params["w1"] + params["b1"]
    h = jax.nn.gelu(h, approximate=False)
    z = h @ params["w2"] + params["b2"]
    z = z * params["gamma"]
    return x_nchw + jnp.transpose(z, (0, 3, 1, 2))


def init_params(key, in_channel, hidden_dim, out_channel, kernel_size=3,
                layer_scale_init_value=1e-6):
    ks = jax.random.split(key, 6)
    K = kernel_size
    return {
        # depthwise conv weight (K*K, C): tap (ky*K+kx, c)
        "dw_w": 0.1 * jax.random.normal(ks[0], (K * K, in_channel), jnp.float32),
        "dw_b": 0.1 * jax.random.normal(ks[1], (in_channel,), jnp.float32),
        "ln_g": jnp.ones((in_channel,), jnp.float32),
        "ln_b": jnp.zeros((in_channel,), jnp.float32),
        # Linear weights stored as (in, out) so kernel does x @ W + b
        "w1": 0.1 * jax.random.normal(ks[2], (in_channel, hidden_dim), jnp.float32),
        "b1": 0.1 * jax.random.normal(ks[3], (hidden_dim,), jnp.float32),
        "w2": 0.1 * jax.random.normal(ks[4], (hidden_dim, out_channel), jnp.float32),
        "b2": 0.1 * jax.random.normal(ks[5], (out_channel,), jnp.float32),
        "gamma": layer_scale_init_value * jnp.ones((out_channel,), jnp.float32),
    }


if __name__ == "__main__":
    N, C, H, W = 2, 4, 16, 16
    hidden_dim, out_channel = 16, 4   # residual add requires out_channel == in_channel
    key = jax.random.PRNGKey(0)
    kx_, kp_ = jax.random.split(key)
    x = jax.random.normal(kx_, (N, C, H, W), jnp.float32)
    # layer_scale=1.0 so the MLP path actually contributes to the checked output.
    params = init_params(kp_, C, hidden_dim, out_channel, layer_scale_init_value=1.0)

    out = convnext_block(x, params)
    out = jax.block_until_ready(out)

    ref = convnext_block_reference(x, params)
    assert out.shape == (N, out_channel, H, W)
    # bf16 MXU inputs + approx-reciprocal erf => compare at bf16-level tolerance.
    assert jnp.allclose(out, ref, atol=3e-2, rtol=3e-2), "mismatch vs reference"
    print("KERNEL_OK")
</pallas_src>

<mosaic_0001>
module attributes {stable_mosaic.version = 11 : i64} {
  func.func @_convnext_kernel(%arg0: i32, %arg1: i32, %arg2: memref<1x18x18x128xf32, #tpu.memory_space<vmem>>, %arg3: memref<9x128xf32, #tpu.memory_space<vmem>>, %arg4: memref<1x128xf32, #tpu.memory_space<vmem>>, %arg5: memref<1x128xf32, #tpu.memory_space<vmem>>, %arg6: memref<1x128xf32, #tpu.memory_space<vmem>>, %arg7: memref<128x128xbf16, #tpu.memory_space<vmem>>, %arg8: memref<1x128xf32, #tpu.memory_space<vmem>>, %arg9: memref<128x128xbf16, #tpu.memory_space<vmem>>, %arg10: memref<1x128xf32, #tpu.memory_space<vmem>>, %arg11: memref<1x128xf32, #tpu.memory_space<vmem>>, %arg12: memref<1x16x16x128xf32, #tpu.memory_space<vmem>>) attributes {dimension_semantics = [#tpu.dimension_semantics<parallel>, #tpu.dimension_semantics<parallel>], iteration_bounds = array<i64: 2, 1>, scalar_prefetch = 0 : i64, scratch_operands = 0 : i64, tpu.core_type = #tpu.core_type<tc>, window_params = [{transform_indices = @transform_0, window_bounds = array<i64: 1, 18, 18, 128>}, {pipeline_mode = #tpu.pipeline_mode<synchronous>, transform_indices = @transform_1, window_bounds = array<i64: 9, 128>}, {pipeline_mode = #tpu.pipeline_mode<synchronous>, transform_indices = @transform_2, window_bounds = array<i64: 1, 128>}, {pipeline_mode = #tpu.pipeline_mode<synchronous>, transform_indices = @transform_3, window_bounds = array<i64: 1, 128>}, {pipeline_mode = #tpu.pipeline_mode<synchronous>, transform_indices = @transform_4, window_bounds = array<i64: 1, 128>}, {pipeline_mode = #tpu.pipeline_mode<synchronous>, transform_indices = @transform_5, window_bounds = array<i64: 128, 128>}, {pipeline_mode = #tpu.pipeline_mode<synchronous>, transform_indices = @transform_6, window_bounds = array<i64: 1, 128>}, {pipeline_mode = #tpu.pipeline_mode<synchronous>, transform_indices = @transform_7, window_bounds = array<i64: 128, 128>}, {pipeline_mode = #tpu.pipeline_mode<synchronous>, transform_indices = @transform_8, window_bounds = array<i64: 1, 128>}, {pipeline_mode = #tpu.pipeline_mode<synchronous>, transform_indices = @transform_9, window_bounds = array<i64: 1, 128>}, {transform_indices = @transform_10, window_bounds = array<i64: 1, 16, 16, 128>}]} {
    %c0 = arith.constant 0 : index
    %c1 = arith.constant 1 : index
    %c1_0 = arith.constant 1 : index
    %c0_1 = arith.constant 0 : index
    %0 = vector.load %arg2[%c0, %c1, %c1_0, %c0_1] : memref<1x18x18x128xf32, #tpu.memory_space<vmem>>, vector<1x16x16x128xf32>
    %1 = vector.shape_cast %0 : vector<1x16x16x128xf32> to vector<16x16x128xf32>
    %c4 = arith.constant 4 : index
    %c0_2 = arith.constant 0 : index
    %2 = vector.load %arg3[%c4, %c0_2] : memref<9x128xf32, #tpu.memory_space<vmem>>, vector<1x128xf32>
    %3 = vector.shape_cast %2 : vector<1x128xf32> to vector<128xf32>
    %4 = vector.shape_cast %3 : vector<128xf32> to vector<1x1x128xf32>
    %5 = vector.broadcast %4 : vector<1x1x128xf32> to vector<16x16x128xf32>
    %6 = arith.mulf %1, %5 : vector<16x16x128xf32>
    %c0_3 = arith.constant 0 : index
    %c0_4 = arith.constant 0 : index
    %7 = vector.load %arg4[%c0_3, %c0_4] : memref<1x128xf32, #tpu.memory_space<vmem>>, vector<1x128xf32>
    %8 = vector.shape_cast %7 : vector<1x128xf32> to vector<128xf32>
    %9 = vector.shape_cast %8 : vector<128xf32> to vector<1x1x128xf32>
    %10 = vector.broadcast %9 : vector<1x1x128xf32> to vector<16x16x128xf32>
    %11 = arith.addf %6, %10 : vector<16x16x128xf32>
    %c0_5 = arith.constant 0 : index
    %c0_6 = arith.constant 0 : index
    %c0_7 = arith.constant 0 : index
    %c0_8 = arith.constant 0 : index
    %12 = vector.load %arg2[%c0_5, %c0_6, %c0_7, %c0_8] : memref<1x18x18x128xf32, #tpu.memory_space<vmem>>, vector<1x16x16x128xf32>
    %13 = vector.shape_cast %12 : vector<1x16x16x128xf32> to vector<16x16x128xf32>
    %c0_9 = arith.constant 0 : index
    %c0_10 = arith.constant 0 : index
    %14 = vector.load %arg3[%c0_9, %c0_10] : memref<9x128xf32, #tpu.memory_space<vmem>>, vector<1x128xf32>
    %15 = vector.shape_cast %14 : vector<1x128xf32> to vector<128xf32>
    %16 = vector.shape_cast %15 : vector<128xf32> to vector<1x1x128xf32>
    %17 = vector.broadcast %16 : vector<1x1x128xf32> to vector<16x16x128xf32>
    %18 = arith.mulf %13, %17 : vector<16x16x128xf32>
    %19 = arith.addf %11, %18 : vector<16x16x128xf32>
    %c0_11 = arith.constant 0 : index
    %c0_12 = arith.constant 0 : index
    %c1_13 = arith.constant 1 : index
    %c0_14 = arith.constant 0 : index
    %20 = vector.load %arg2[%c0_11, %c0_12, %c1_13, %c0_14] : memref<1x18x18x128xf32, #tpu.memory_space<vmem>>, vector<1x16x16x128xf32>
    %21 = vector.shape_cast %20 : vector<1x16x16x128xf32> to vector<16x16x128xf32>
    %c1_15 = arith.constant 1 : index
    %c0_16 = arith.constant 0 : index
    %22 = vector.load %arg3[%c1_15, %c0_16] : memref<9x128xf32, #tpu.memory_space<vmem>>, vector<1x128xf32>
    %23 = vector.shape_cast %22 : vector<1x128xf32> to vector<128xf32>
    %24 = vector.shape_cast %23 : vector<128xf32> to vector<1x1x128xf32>
    %25 = vector.broadcast %24 : vector<1x1x128xf32> to vector<16x16x128xf32>
    %26 = arith.mulf %21, %25 : vector<16x16x128xf32>
    %27 = arith.addf %19, %26 : vector<16x16x128xf32>
    %c0_17 = arith.constant 0 : index
    %c0_18 = arith.constant 0 : index
    %c2 = arith.constant 2 : index
    %c0_19 = arith.constant 0 : index
    %28 = vector.load %arg2[%c0_17, %c0_18, %c2, %c0_19] : memref<1x18x18x128xf32, #tpu.memory_space<vmem>>, vector<1x16x16x128xf32>
    %29 = vector.shape_cast %28 : vector<1x16x16x128xf32> to vector<16x16x128xf32>
    %c2_20 = arith.constant 2 : index
    %c0_21 = arith.constant 0 : index
    %30 = vector.load %arg3[%c2_20, %c0_21] : memref<9x128xf32, #tpu.memory_space<vmem>>, vector<1x128xf32>
    %31 = vector.shape_cast %30 : vector<1x128xf32> to vector<128xf32>
    %32 = vector.shape_cast %31 : vector<128xf32> to vector<1x1x128xf32>
    %33 = vector.broadcast %32 : vector<1x1x128xf32> to vector<16x16x128xf32>
    %34 = arith.mulf %29, %33 : vector<16x16x128xf32>
    %35 = arith.addf %27, %34 : vector<16x16x128xf32>
    %c0_22 = arith.constant 0 : index
    %c1_23 = arith.constant 1 : index
    %c0_24 = arith.constant 0 : index
    %c0_25 = arith.constant 0 : index
    %36 = vector.load %arg2[%c0_22, %c1_23, %c0_24, %c0_25] : memref<1x18x18x128xf32, #tpu.memory_space<vmem>>, vector<1x16x16x128xf32>
    %37 = vector.shape_cast %36 : vector<1x16x16x128xf32> to vector<16x16x128xf32>
    %c3 = arith.constant 3 : index
    %c0_26 = arith.constant 0 : index
    %38 = vector.load %arg3[%c3, %c0_26] : memref<9x128xf32, #tpu.memory_space<vmem>>, vector<1x128xf32>
    %39 = vector.shape_cast %38 : vector<1x128xf32> to vector<128xf32>
    %40 = vector.shape_cast %39 : vector<128xf32> to vector<1x1x128xf32>
    %41 = vector.broadcast %40 : vector<1x1x128xf32> to vector<16x16x128xf32>
    %42 = arith.mulf %37, %41 : vector<16x16x128xf32>
    %43 = arith.addf %35, %42 : vector<16x16x128xf32>
    %c0_27 = arith.constant 0 : index
    %c1_28 = arith.constant 1 : index
    %c2_29 = arith.constant 2 : index
    %c0_30 = arith.constant 0 : index
    %44 = vector.load %arg2[%c0_27, %c1_28, %c2_29, %c0_30] : memref<1x18x18x128xf32, #tpu.memory_space<vmem>>, vector<1x16x16x128xf32>
    %45 = vector.shape_cast %44 : vector<1x16x16x128xf32> to vector<16x16x128xf32>
    %c5 = arith.constant 5 : index
    %c0_31 = arith.constant 0 : index
    %46 = vector.load %arg3[%c5, %c0_31] : memref<9x128xf32, #tpu.memory_space<vmem>>, vector<1x128xf32>
    %47 = vector.shape_cast %46 : vector<1x128xf32> to vector<128xf32>
    %48 = vector.shape_cast %47 : vector<128xf32> to vector<1x1x128xf32>
    %49 = vector.broadcast %48 : vector<1x1x128xf32> to vector<16x16x128xf32>
    %50 = arith.mulf %45, %49 : vector<16x16x128xf32>
    %51 = arith.addf %43, %50 : vector<16x16x128xf32>
    %c0_32 = arith.constant 0 : index
    %c2_33 = arith.constant 2 : index
    %c0_34 = arith.constant 0 : index
    %c0_35 = arith.constant 0 : index
    %52 = vector.load %arg2[%c0_32, %c2_33, %c0_34, %c0_35] : memref<1x18x18x128xf32, #tpu.memory_space<vmem>>, vector<1x16x16x128xf32>
    %53 = vector.shape_cast %52 : vector<1x16x16x128xf32> to vector<16x16x128xf32>
    %c6 = arith.constant 6 : index
    %c0_36 = arith.constant 0 : index
    %54 = vector.load %arg3[%c6, %c0_36] : memref<9x128xf32, #tpu.memory_space<vmem>>, vector<1x128xf32>
    %55 = vector.shape_cast %54 : vector<1x128xf32> to vector<128xf32>
    %56 = vector.shape_cast %55 : vector<128xf32> to vector<1x1x128xf32>
    %57 = vector.broadcast %56 : vector<1x1x128xf32> to vector<16x16x128xf32>
    %58 = arith.mulf %53, %57 : vector<16x16x128xf32>
    %59 = arith.addf %51, %58 : vector<16x16x128xf32>
    %c0_37 = arith.constant 0 : index
    %c2_38 = arith.constant 2 : index
    %c1_39 = arith.constant 1 : index
    %c0_40 = arith.constant 0 : index
    %60 = vector.load %arg2[%c0_37, %c2_38, %c1_39, %c0_40] : memref<1x18x18x128xf32, #tpu.memory_space<vmem>>, vector<1x16x16x128xf32>
    %61 = vector.shape_cast %60 : vector<1x16x16x128xf32> to vector<16x16x128xf32>
    %c7 = arith.constant 7 : index
    %c0_41 = arith.constant 0 : index
    %62 = vector.load %arg3[%c7, %c0_41] : memref<9x128xf32, #tpu.memory_space<vmem>>, vector<1x128xf32>
    %63 = vector.shape_cast %62 : vector<1x128xf32> to vector<128xf32>
    %64 = vector.shape_cast %63 : vector<128xf32> to vector<1x1x128xf32>
    %65 = vector.broadcast %64 : vector<1x1x128xf32> to vector<16x16x128xf32>
    %66 = arith.mulf %61, %65 : vector<16x16x128xf32>
    %67 = arith.addf %59, %66 : vector<16x16x128xf32>
    %c0_42 = arith.constant 0 : index
    %c2_43 = arith.constant 2 : index
    %c2_44 = arith.constant 2 : index
    %c0_45 = arith.constant 0 : index
    %68 = vector.load %arg2[%c0_42, %c2_43, %c2_44, %c0_45] : memref<1x18x18x128xf32, #tpu.memory_space<vmem>>, vector<1x16x16x128xf32>
    %69 = vector.shape_cast %68 : vector<1x16x16x128xf32> to vector<16x16x128xf32>
    %c8 = arith.constant 8 : index
    %c0_46 = arith.constant 0 : index
    %70 = vector.load %arg3[%c8, %c0_46] : memref<9x128xf32, #tpu.memory_space<vmem>>, vector<1x128xf32>
    %71 = vector.shape_cast %70 : vector<1x128xf32> to vector<128xf32>
    %72 = vector.shape_cast %71 : vector<128xf32> to vector<1x1x128xf32>
    %73 = vector.broadcast %72 : vector<1x1x128xf32> to vector<16x16x128xf32>
    %74 = arith.mulf %69, %73 : vector<16x16x128xf32>
    %75 = arith.addf %67, %74 : vector<16x16x128xf32>
    %76 = vector.shape_cast %75 : vector<16x16x128xf32> to vector<256x128xf32>
    %cst = arith.constant dense<0.000000e+00> : vector<256xf32>
    %77 = vector.multi_reduction <add>, %76, %cst [1] : vector<256x128xf32> to vector<256xf32>
    %78 = vector.shape_cast %77 : vector<256xf32> to vector<256x1xf32>
    %cst_47 = arith.constant 2.500000e-01 : f32
    %79 = vector.broadcast %cst_47 : f32 to vector<256x1xf32>
    %80 = arith.mulf %78, %79 : vector<256x1xf32>
    %81 = arith.mulf %76, %76 : vector<256x128xf32>
    %cst_48 = arith.constant dense<0.000000e+00> : vector<256xf32>
    %82 = vector.multi_reduction <add>, %81, %cst_48 [1] : vector<256x128xf32> to vector<256xf32>
    %83 = vector.shape_cast %82 : vector<256xf32> to vector<256x1xf32>
    %cst_49 = arith.constant 2.500000e-01 : f32
    %84 = vector.broadcast %cst_49 : f32 to vector<256x1xf32>
    %85 = arith.mulf %83, %84 : vector<256x1xf32>
    %86 = arith.mulf %80, %80 : vector<256x1xf32>
    %87 = arith.subf %85, %86 : vector<256x1xf32>
    %88 = vector.broadcast %80 : vector<256x1xf32> to vector<256x128xf32>
    %89 = arith.subf %76, %88 : vector<256x128xf32>
    %cst_50 = arith.constant 9.99999997E-7 : f32
    %90 = vector.broadcast %cst_50 : f32 to vector<256x1xf32>
    %91 = arith.addf %87, %90 : vector<256x1xf32>
    %92 = math.rsqrt %91 : vector<256x1xf32>
    %93 = vector.broadcast %92 : vector<256x1xf32> to vector<256x128xf32>
    %94 = arith.mulf %89, %93 : vector<256x128xf32>
    %c0_51 = arith.constant 0 : index
    %c0_52 = arith.constant 0 : index
    %95 = vector.load %arg5[%c0_51, %c0_52] : memref<1x128xf32, #tpu.memory_space<vmem>>, vector<1x128xf32>
    %96 = vector.shape_cast %95 : vector<1x128xf32> to vector<128xf32>
    %97 = vector.shape_cast %96 : vector<128xf32> to vector<1x128xf32>
    %98 = vector.broadcast %97 : vector<1x128xf32> to vector<256x128xf32>
    %99 = arith.mulf %94, %98 : vector<256x128xf32>
    %c0_53 = arith.constant 0 : index
    %c0_54 = arith.constant 0 : index
    %100 = vector.load %arg6[%c0_53, %c0_54] : memref<1x128xf32, #tpu.memory_space<vmem>>, vector<1x128xf32>
    %101 = vector.shape_cast %100 : vector<1x128xf32> to vector<128xf32>
    %102 = vector.shape_cast %101 : vector<128xf32> to vector<1x128xf32>
    %103 = vector.broadcast %102 : vector<1x128xf32> to vector<256x128xf32>
    %104 = arith.addf %99, %103 : vector<256x128xf32>
    %105 = arith.truncf %104 : vector<256x128xf32> to vector<256x128xbf16>
    %c0_55 = arith.constant 0 : index
    %c0_56 = arith.constant 0 : index
    %106 = vector.load %arg7[%c0_55, %c0_56] : memref<128x128xbf16, #tpu.memory_space<vmem>>, vector<128x128xbf16>
    %cst_57 = arith.constant dense<0.000000e+00> : vector<256x128xf32>
    %107 = tpu.matmul %105, %106, %cst_57 {dimension_numbers = #tpu.dot_dimension_numbers<[1], [0], [0], [1], [0, 0, 1, 1], [], []>} : vector<256x128xbf16>, vector<128x128xbf16>, vector<256x128xf32> -> vector<256x128xf32>
    %c0_58 = arith.constant 0 : index
    %c0_59 = arith.constant 0 : index
    %108 = vector.load %arg8[%c0_58, %c0_59] : memref<1x128xf32, #tpu.memory_space<vmem>>, vector<1x128xf32>
    %109 = vector.shape_cast %108 : vector<1x128xf32> to vector<128xf32>
    %110 = vector.shape_cast %109 : vector<128xf32> to vector<1x128xf32>
    %111 = vector.broadcast %110 : vector<1x128xf32> to vector<256x128xf32>
    %112 = arith.addf %107, %111 : vector<256x128xf32>
    %cst_60 = arith.constant 0.707106769 : f32
    %113 = vector.broadcast %cst_60 : f32 to vector<256x128xf32>
    %114 = arith.mulf %112, %113 : vector<256x128xf32>
    %cst_61 = arith.constant 0.000000e+00 : f32
    %115 = vector.broadcast %cst_61 : f32 to vector<256x128xf32>
    %116 = arith.cmpf oge, %114, %115 : vector<256x128xf32>
    %cst_62 = arith.constant 1.000000e+00 : f32
    %cst_63 = arith.constant -1.000000e+00 : f32
    %117 = vector.broadcast %cst_62 : f32 to vector<256x128xf32>
    %118 = vector.broadcast %cst_63 : f32 to vector<256x128xf32>
    %119 = arith.select %116, %117, %118 : vector<256x128xi1>, vector<256x128xf32>
    %120 = math.absf %114 : vector<256x128xf32>
    %cst_64 = arith.constant 0.327591091 : f32
    %121 = vector.broadcast %cst_64 : f32 to vector<256x128xf32>
    %122 = arith.mulf %121, %120 : vector<256x128xf32>
    %cst_65 = arith.constant 1.000000e+00 : f32
    %123 = vector.broadcast %cst_65 : f32 to vector<256x128xf32>
    %124 = arith.addf %123, %122 : vector<256x128xf32>
    %125 = tpu.reciprocal %124 {approx = true} : vector<256x128xf32> -> vector<256x128xf32>
    %cst_66 = arith.constant 1.06140542 : f32
    %126 = vector.broadcast %cst_66 : f32 to vector<256x128xf32>
    %127 = arith.mulf %126, %125 : vector<256x128xf32>
    %cst_67 = arith.constant -1.45315206 : f32
    %128 = vector.broadcast %cst_67 : f32 to vector<256x128xf32>
    %129 = arith.addf %127, %128 : vector<256x128xf32>
    %130 = arith.mulf %129, %125 : vector<256x128xf32>
    %cst_68 = arith.constant 1.42141378 : f32
    %131 = vector.broadcast %cst_68 : f32 to vector<256x128xf32>
    %132 = arith.addf %130, %131 : vector<256x128xf32>
    %133 = arith.mulf %132, %125 : vector<256x128xf32>
    %cst_69 = arith.constant -0.284496725 : f32
    %134 = vector.broadcast %cst_69 : f32 to vector<256x128xf32>
    %135 = arith.addf %133, %134 : vector<256x128xf32>
    %136 = arith.mulf %135, %125 : vector<256x128xf32>
    %cst_70 = arith.constant 0.254829586 : f32
    %137 = vector.broadcast %cst_70 : f32 to vector<256x128xf32>
    %138 = arith.addf %136, %137 : vector<256x128xf32>
    %139 = arith.mulf %138, %125 : vector<256x128xf32>
    %cst_71 = arith.constant 0.000000e+00 : f32
    %140 = vector.broadcast %cst_71 : f32 to vector<256x128xf32>
    %141 = arith.subf %140, %120 : vector<256x128xf32>
    %142 = arith.mulf %141, %120 : vector<256x128xf32>
    %143 = math.exp %142 : vector<256x128xf32>
    %144 = arith.mulf %139, %143 : vector<256x128xf32>
    %cst_72 = arith.constant 1.000000e+00 : f32
    %145 = vector.broadcast %cst_72 : f32 to vector<256x128xf32>
    %146 = arith.subf %145, %144 : vector<256x128xf32>
    %147 = arith.mulf %119, %146 : vector<256x128xf32>
    %cst_73 = arith.constant 5.000000e-01 : f32
    %148 = vector.broadcast %cst_73 : f32 to vector<256x128xf32>
    %149 = arith.mulf %148, %112 : vector<256x128xf32>
    %cst_74 = arith.constant 1.000000e+00 : f32
    %150 = vector.broadcast %cst_74 : f32 to vector<256x128xf32>
    %151 = arith.addf %150, %147 : vector<256x128xf32>
    %152 = arith.mulf %149, %151 : vector<256x128xf32>
    %153 = arith.truncf %152 : vector<256x128xf32> to vector<256x128xbf16>
    %c0_75 = arith.constant 0 : index
    %c0_76 = arith.constant 0 : index
    %154 = vector.load %arg9[%c0_75, %c0_76] : memref<128x128xbf16, #tpu.memory_space<vmem>>, vector<128x128xbf16>
    %cst_77 = arith.constant dense<0.000000e+00> : vector<256x128xf32>
    %155 = tpu.matmul %153, %154, %cst_77 {dimension_numbers = #tpu.dot_dimension_numbers<[1], [0], [0], [1], [0, 0, 1, 1], [], []>} : vector<256x128xbf16>, vector<128x128xbf16>, vector<256x128xf32> -> vector<256x128xf32>
    %c0_78 = arith.constant 0 : index
    %c0_79 = arith.constant 0 : index
    %156 = vector.load %arg10[%c0_78, %c0_79] : memref<1x128xf32, #tpu.memory_space<vmem>>, vector<1x128xf32>
    %157 = vector.shape_cast %156 : vector<1x128xf32> to vector<128xf32>
    %158 = vector.shape_cast %157 : vector<128xf32> to vector<1x128xf32>
    %159 = vector.broadcast %158 : vector<1x128xf32> to vector<256x128xf32>
    %160 = arith.addf %155, %159 : vector<256x128xf32>
    %c0_80 = arith.constant 0 : index
    %c0_81 = arith.constant 0 : index
    %161 = vector.load %arg11[%c0_80, %c0_81] : memref<1x128xf32, #tpu.memory_space<vmem>>, vector<1x128xf32>
    %162 = vector.shape_cast %161 : vector<1x128xf32> to vector<128xf32>
    %163 = vector.shape_cast %162 : vector<128xf32> to vector<1x128xf32>
    %164 = vector.broadcast %163 : vector<1x128xf32> to vector<256x128xf32>
    %165 = arith.mulf %160, %164 : vector<256x128xf32>
    %c0_82 = arith.constant 0 : index
    %c1_83 = arith.constant 1 : index
    %c1_84 = arith.constant 1 : index
    %c0_85 = arith.constant 0 : index
    %166 = vector.load %arg2[%c0_82, %c1_83, %c1_84, %c0_85] : memref<1x18x18x128xf32, #tpu.memory_space<vmem>>, vector<1x16x16x128xf32>
    %167 = vector.shape_cast %166 : vector<1x16x16x128xf32> to vector<16x16x128xf32>
    %168 = vector.shape_cast %165 : vector<256x128xf32> to vector<16x16x128xf32>
    %169 = arith.addf %167, %168 : vector<16x16x128xf32>
    %c0_86 = arith.constant 0 : index
    %c0_87 = arith.constant 0 : index
    %c0_88 = arith.constant 0 : index
    %c0_89 = arith.constant 0 : index
    %170 = vector.load %arg12[%c0_86, %c0_87, %c0_88, %c0_89] : memref<1x16x16x128xf32, #tpu.memory_space<vmem>>, vector<1x16x16x128xf32>
    %171 = vector.shape_cast %170 : vector<1x16x16x128xf32> to vector<16x16x128xf32>
    %172 = vector.shape_cast %169 : vector<16x16x128xf32> to vector<1x16x16x128xf32>
    tpu.vector_store %arg12[%c0_86, %c0_87, %c0_88, %c0_89], %172 {strides = array<i32>} : memref<1x16x16x128xf32, #tpu.memory_space<vmem>>, vector<1x16x16x128xf32>,
    return
  }
  func.func @transform_0(%arg0: i32, %arg1: i32) -> (i32, i32, i32, i32) {
    %c0_i32 = arith.constant 0 : i32
    %c0_i32_0 = arith.constant 0 : i32
    %c0_i32_1 = arith.constant 0 : i32
    %c0_i32_2 = arith.constant 0 : i32
    return %arg0, %c0_i32, %c0_i32_0, %c0_i32_1 : i32, i32, i32, i32
  }
  func.func @transform_1(%arg0: i32, %arg1: i32) -> (i32, i32) {
    %c0_i32 = arith.constant 0 : i32
    %c0_i32_0 = arith.constant 0 : i32
    %c0_i32_1 = arith.constant 0 : i32
    return %c0_i32, %c0_i32_0 : i32, i32
  }
  func.func @transform_2(%arg0: i32, %arg1: i32) -> (i32, i32) {
    %c0_i32 = arith.constant 0 : i32
    %c0_i32_0 = arith.constant 0 : i32
    %c0_i32_1 = arith.constant 0 : i32
    return %c0_i32, %c0_i32_0 : i32, i32
  }
  func.func @transform_3(%arg0: i32, %arg1: i32) -> (i32, i32) {
    %c0_i32 = arith.constant 0 : i32
    %c0_i32_0 = arith.constant 0 : i32
    %c0_i32_1 = arith.constant 0 : i32
    return %c0_i32, %c0_i32_0 : i32, i32
  }
  func.func @transform_4(%arg0: i32, %arg1: i32) -> (i32, i32) {
    %c0_i32 = arith.constant 0 : i32
    %c0_i32_0 = arith.constant 0 : i32
    %c0_i32_1 = arith.constant 0 : i32
    return %c0_i32, %c0_i32_0 : i32, i32
  }
  func.func @transform_5(%arg0: i32, %arg1: i32) -> (i32, i32) {
    %c0_i32 = arith.constant 0 : i32
    %c0_i32_0 = arith.constant 0 : i32
    %c0_i32_1 = arith.constant 0 : i32
    return %c0_i32, %c0_i32_0 : i32, i32
  }
  func.func @transform_6(%arg0: i32, %arg1: i32) -> (i32, i32) {
    %c0_i32 = arith.constant 0 : i32
    %c0_i32_0 = arith.constant 0 : i32
    %c0_i32_1 = arith.constant 0 : i32
    return %c0_i32, %c0_i32_0 : i32, i32
  }
  func.func @transform_7(%arg0: i32, %arg1: i32) -> (i32, i32) {
    %c0_i32 = arith.constant 0 : i32
    %c0_i32_0 = arith.constant 0 : i32
    %c0_i32_1 = arith.constant 0 : i32
    return %c0_i32, %c0_i32_0 : i32, i32
  }
  func.func @transform_8(%arg0: i32, %arg1: i32) -> (i32, i32) {
    %c0_i32 = arith.constant 0 : i32
    %c0_i32_0 = arith.constant 0 : i32
    %c0_i32_1 = arith.constant 0 : i32
    return %c0_i32, %c0_i32_0 : i32, i32
  }
  func.func @transform_9(%arg0: i32, %arg1: i32) -> (i32, i32) {
    %c0_i32 = arith.constant 0 : i32
    %c0_i32_0 = arith.constant 0 : i32
    %c0_i32_1 = arith.constant 0 : i32
    return %c0_i32, %c0_i32_0 : i32, i32
  }
  func.func @transform_10(%arg0: i32, %arg1: i32) -> (i32, i32, i32, i32) {
    %c0_i32 = arith.constant 0 : i32
    %c0_i32_0 = arith.constant 0 : i32
    %c0_i32_1 = arith.constant 0 : i32
    return %arg0, %arg1, %c0_i32, %c0_i32_0 : i32, i32, i32, i32
  }
}

</mosaic_0001>

<bundles_post_ra>
// kernel: tpu_custom_call.1
= control target key start
LH: loop header
LB: loop body
LE: loop exit
PB: predicated region body
PF: predicated region fallthrough
CT: control target
= control target key end

     0   :  { %15 = vsyncpa [#allocation3], 0  ;;  %s6789_s0 = inlined_call_operand.vmem [shape: f32[2,18,18,128], index: 0, kind: input, shape index: {}]   ;;  %s6790_s1 = inlined_call_operand.vmem [shape: f32[9,128], index: 1, kind: input, shape index: {}]   ;;  %s6791_s2 = inlined_call_operand.vmem [shape: f32[1,128], index: 2, kind: input, shape index: {}]   ;;  %s6792_s3 = inlined_call_operand.vmem [shape: f32[1,128], index: 3, kind: input, shape index: {}]   ;;  %s6793_s4 = inlined_call_operand.vmem [shape: f32[1,128], index: 4, kind: input, shape index: {}]   ;;  %s6794_s5 = inlined_call_operand.vmem [shape: bf16[128,128], index: 5, kind: input, shape index: {}]   ;;  %s6795_s6 = inlined_call_operand.vmem [shape: f32[1,128], index: 6, kind: input, shape index: {}]   ;;  %s6796_s7 = inlined_call_operand.vmem [shape: bf16[128,128], index: 7, kind: input, shape index: {}]   ;;  %s6797_s8 = inlined_call_operand.vmem [shape: f32[1,128], index: 8, kind: input, shape index: {}]   ;;  %s6798_s9 = inlined_call_operand.vmem [shape: f32[1,128], index: 9, kind: input, shape index: {}]   ;;  %s6799_s10 = inlined_call_operand.hbm [shape: f32[2,16,16,128], index: 10, kind: output, shape index: {}]  }
   0x1   :  { %17 = vsyncpa [#allocation3 + $0x1], 0  ;;  %s4136_s13 = smov 0   ;;  %s4138_s14 = smov 0  }
   0x2   :  { %s4140_s15 = smov 0   ;;  %s4142_s16 = smov 0  }
   0x3   :  { %s4144_s17 = smov 0   ;;  %s4146_s18 = smov 0  }
   0x4 LB: > { %6810 = sst [smem:[#allocation5_spill]] %s4071_s17  ;;  %s3307_s19 = sadd.s32 4294967295, %s4075_s18   ;;  %s4075_s18 = sphi %s4146_s18, %s23_s18   ;;  %s4071_s17 = sphi %s4144_s17, %s6851_s17   ;;  %s4067_s16 = sphi %s4142_s16, %s6850_s16   ;;  %s4063_s15 = sphi %s4140_s15, %s6854_s15   ;;  %s4059_s14 = sphi %s4138_s14, %s6853_s14   ;;  %s4055_s13 = sphi %s4136_s13, %s6852_s13  }
   0x5   : > { %s3308_s20 = sadd.s32 4294967294, %s4075_s18   ;;  %s35_s21 = sadd.s32 1, %s4071_s17 }
   0x6   : > { %s259_s22 = sadd.s32 1, %s4063_s15  ;;  %p37_p0 = scmp.ge.s32.totalorder %s35_s21, 2 }
   0x7   : > { %p269_p1 = scmp.ne.s32.totalorder %s4063_s15, %s4059_s14  ;;  %p270_p2 = scmp.eq.s32.totalorder %s3307_s19, 1 }
   0x8   : > { %p275_p3 = scmp.ne.s32.totalorder %s4059_s14, %s4055_s13  ;;  %s6856_s21 = smov (%p37_p0, %s35_s21), 0 }
   0x9   : > { %6811 = sst [smem:[#allocation6_spill]] %s6856_s21  ;;  %p4176_p4 = por %p270_p2, %p269_p1 }
   0xa   : > { %p276_p5 = scmp.eq.s32.totalorder %s3308_s20, 1  ;;  %s254_s24 = ssub.s32 %s4071_s17, %s6856_s21 }
   0xb   : > { %p3311_p6 = scmp.ge.s32.totalorder %s4075_s18, 1  ;;  %p257_p7 = scmp.eq.s32.totalorder %s254_s24, 0 }
   0xc   : > { %p4183_p8 = por %p276_p5, %p275_p3  ;;  %p329_p9 = scmp.lt.s32.totalorder %s4075_s18, 3 }
   0xd   : > { %s4189_s26 = scalar_select %p257_p7, %s4063_s15, %s259_s22  }
   0xe   : > { %p330_p10 = pnand %p3311_p6, %p329_p9 }
  0x10   : > { %333 = sbr.rel (%p330_p10) target bundleno = 944 (0x3b0), region = 60 }
  0x17   : > { %p367_p11 = scmp.lt.s32.totalorder %s4067_s16, 1  ;;  %v4196_v0 = vld [vmem:[%s6790_s1 + $0x4] ss:$0 sm:$0xff]  ;;  %v4201_v1 = vld [vmem:[%s6790_s1] ss:$0 sm:$0xff]  ;;  %s364_s17 = sand.u32 1, %s4059_s14  }
  0x18   : > { %v4206_v2 = vld [vmem:[%s6791_s2] ss:$0 sm:$0xff]  ;;  %v4211_v3 = vld [vmem:[%s6790_s1 + $0x1] ss:$0 sm:$0xff]  ;;  %v4216_v4 = vld [vmem:[%s6790_s1 + $0x2] ss:$0 sm:$0xff] }
  0x19   : > { %s368_s27 = scalar_select %p367_p11, %s4067_s16, 1  ;;  %v4226_v5 = vld [vmem:[%s6790_s1 + $0x3] ss:$0 sm:$0xff]  ;;  %v4236_v9 = vld [vmem:[%s6790_s1 + $0x5] ss:$0 sm:$0xff] }
  0x1a   : > { %v4248_v14 = vld [vmem:[%s6790_s1 + $0x6] ss:$0 sm:$0xff]  ;;  %v4260_v18 = vld [vmem:[%s6790_s1 + $0x7] ss:$0 sm:$0xff]  ;;  %v4265_v19 = vld [vmem:[%s6790_s1 + $0x8] ss:$0 sm:$0xff] }
  0x1b   : > { %s3687_s12 = smul.u32 432, %s368_s27  ;;  %s3312_s28 = sshll.u32 %s364_s17, 8 }
  0x1c   : > { %s6612_s29 = scalar_lea.vmem [#allocation2], %s3312_s28  ;;  %s3542_s30 = sshll.u32 %s4067_s16, 12 }
  0x1d   : > { %s4221_s11 = scalar_lea.vmem %s6789_s0, %s3687_s12  ;;  %s3234_s27 = sshll.u32 %s6612_s29, 4  ;;  %s6735_s27 = int_to_ptr.vmem [resolvable:$true] %s3234_s27 }
  0x1e   : > { %v4229_v6 = vld [vmem:[%s4221_s11 + $0x31] sm:$0xff]  ;;  %v586_v8 = vld [vmem:[%s4221_s11 + $0x19] sm:$0xff]  ;;  %v4255_v17 = vld [vmem:[%s4221_s11 + $0x48] sm:$0xff]  ;;  %s6733_s16 = scalar_lea.hbm %s6799_s10, %s3542_s30  ;;  %s6743_s19 = scalar_lea.sflag [#allocation3], %s364_s17 }
  0x1f   : > { %v485_v7 = vld [vmem:[%s4221_s11 + $0x18] sm:$0xff]  ;;  %v414_v10 = vmul.f32 %v4196_v0, %v4229_v6  ;;  %v4243_v13 = vld [vmem:[%s4221_s11 + $0x30] sm:$0xff]  ;;  %v412_v15 = vmul.f32 %v4196_v0, %v586_v8  ;;  %v623_v21 = vmul.f32 %v4211_v3, %v586_v8  ;;  %v483_v23 = vld [vmem:[%s4221_s11] sm:$0xff]  ;;  %v1028_v35 = vmul.f32 %v4248_v14, %v4255_v17  ;;  %s3997_s20 = scalar_lea.vmem %s6735_s27, 4096  ;;  %s4078_s22 = smov [#allocation2]  }
  0x20   : > { %v522_v11 = vmul.f32 %v4201_v1, %v485_v7  ;;  %v687_v12 = vld [vmem:[%s4221_s11 + $0x1a] sm:$0xff]  ;;  %v4252_v16 = vld [vmem:[%s4221_s11 + $0x32] sm:$0xff]  ;;  %v685_v25 = vld [vmem:[%s4221_s11 + $0x2] sm:$0xff]  ;;  %v825_v26 = vmul.f32 %v4226_v5, %v4243_v13  ;;  %v520_v29 = vmul.f32 %v4201_v1, %v483_v23  ;;  %v823_v36 = vmul.f32 %v4226_v5, %v485_v7  ;;  %p3998_p12 = scmp.ne.s32.totalorder %s6735_s27, %s3997_s20  ;;  %s4001_s24 = sshll.u32 %s4078_s22, 4  ;;  %s4002_s24 = int_to_ptr.vmem [resolvable:$false] %s4001_s24 }
  0x21   : > { %v453_v20 = vadd.f32 %v4206_v2, %v414_v10  ;;  %v724_v22 = vmul.f32 %v4216_v4, %v687_v12  ;;  %v584_v24 = vld [vmem:[%s4221_s11 + $0x1] sm:$0xff]  ;;  %v4276_v27 = vld [vmem:[%s4221_s11 + $0x4a] sm:$0xff]  ;;  %v451_v28 = vadd.f32 %v4206_v2, %v412_v15  ;;  %v4282_v31 = vld [vmem:[%s4221_s11 + $0x39] sm:$0xff]  ;;  %v926_v34 = vmul.f32 %v4236_v9, %v4252_v16  ;;  %s4003_s28 = scalar_lea.vmem %s4002_s24, 8192  ;;  %p4004_p1 = scmp.lt.s32.totalorder %s6735_s27, %s4002_s24 }
  0x22   : > { %v621_v30 = vmul.f32 %v4211_v3, %v584_v24  ;;  %v486_v32 = vld [vmem:[%s4221_s11 + $0x20] sm:$0xff]  ;;  %v4291_v37 = vld [vmem:[%s4221_s11 + $0x49] sm:$0xff]  ;;  %v722_v39 = vmul.f32 %v4216_v4, %v685_v25  ;;  %v415_v40 = vmul.f32 %v4196_v0, %v4282_v31  ;;  %v1230_v45 = vmul.f32 %v4265_v19, %v4276_v27  ;;  %v3354_v62 = vld [vmem:[%s4221_s11 + $0x38] sm:$0xff]  ;;  %p3999_p13 = pnand %p3998_p12, %p4176_p4  ;;  %p4005_p2 = scmp.lt.s32.totalorder %s4003_s28, %s3997_s20 }
  0x23   : > { %v554_v33 = vadd.f32 %v522_v11, %v453_v20  ;;  %v552_v38 = vadd.f32 %v520_v29, %v451_v28  ;;  %v523_v41 = vmul.f32 %v4201_v1, %v486_v32  ;;  %v587_v42 = vld [vmem:[%s4221_s11 + $0x21] sm:$0xff]  ;;  %v1129_v44 = vmul.f32 %v4260_v18, %v4291_v37  ;;  %v585_v53 = vld [vmem:[%s4221_s11 + $0x9] sm:$0xff] }
  0x24   : > { %v924_v46 = vmul.f32 %v4236_v9, %v687_v12  ;;  %v688_v47 = vld [vmem:[%s4221_s11 + $0x22] sm:$0xff]  ;;  %v1026_v50 = vmul.f32 %v4248_v14, %v4243_v13  ;;  %v454_v51 = vadd.f32 %v4206_v2, %v415_v40  ;;  %v624_v52 = vmul.f32 %v4211_v3, %v587_v42  ;;  %v4315_v57 = vld [vmem:[%s4221_s11 + $0x3a] sm:$0xff]  ;;  %v686_v7 = vld [vmem:[%s4221_s11 + $0xa] sm:$0xff]  ;;  %p4000_p0 = pneg %p3999_p13  ;;  %p4006_p3 = por %p4005_p2, %p4004_p1 }
  0x25   : > { %v655_v43 = vadd.f32 %v623_v21, %v554_v33  ;;  %v484_v48 = vld [vmem:[%s4221_s11 + $0x8] sm:$0xff]  ;;  %v653_v49 = vadd.f32 %v621_v30, %v552_v38  ;;  %v1127_v55 = vmul.f32 %v4260_v18, %v4229_v6  ;;  %v1228_v56 = vmul.f32 %v4265_v19, %v4252_v16  ;;  %v4324_v11 = vld [vmem:[%s4221_s11 + $0x50] sm:$0xff] }
  0x26   : > { %v413_v58 = vmul.f32 %v4196_v0, %v587_v42  ;;  %v555_v60 = vadd.f32 %v523_v41, %v454_v51  ;;  %v725_v61 = vmul.f32 %v4216_v4, %v688_v47  ;;  %v521_v63 = vmul.f32 %v4201_v1, %v484_v48  ;;  %v4327_v12 = vld [vmem:[%s4221_s11 + $0x51] sm:$0xff]  ;;  %p4007_p5 = pnand %p4006_p3, %p4000_p0 }
  0x27   : > { %v756_v54 = vadd.f32 %v724_v22, %v655_v43  ;;  %v754_v59 = vadd.f32 %v722_v39, %v653_v49  ;;  %v826_v10 = vmul.f32 %v4226_v5, %v3354_v62  ;;  %v622_v20 = vmul.f32 %v4211_v3, %v585_v53  ;;  %v4339_v38 = vld [vmem:[%s4221_s11 + $0x52] sm:$0xff] }
  0x28   : > { %v452_v15 = vadd.f32 %v4206_v2, %v413_v58  ;;  %v656_v22 = vadd.f32 %v624_v52, %v555_v60  ;;  %v927_v23 = vmul.f32 %v4236_v9, %v4315_v57  ;;  %v1029_v24 = vmul.f32 %v4248_v14, %v4324_v11 }
  0x29   : > { %v857_v8 = vadd.f32 %v825_v26, %v756_v54  ;;  %v855_v21 = vadd.f32 %v823_v36, %v754_v59  ;;  %v1130_v26 = vmul.f32 %v4260_v18, %v4327_v12  ;;  %v723_v29 = vmul.f32 %v4216_v4, %v686_v7 }
  0x2a   : > { %v553_v28 = vadd.f32 %v521_v63, %v452_v15  ;;  %v757_v33 = vadd.f32 %v725_v61, %v656_v22  ;;  %v417_v36 = vmul.f32 %v4327_v12, %v4196_v0  ;;  %v525_v39 = vmul.f32 %v3354_v62, %v4201_v1 }
  0x2b   : > { %v958_v25 = vadd.f32 %v926_v34, %v857_v8  ;;  %v956_v30 = vadd.f32 %v924_v46, %v855_v21  ;;  %v1231_v41 = vmul.f32 %v4265_v19, %v4339_v38  ;;  %v824_v42 = vmul.f32 %v4226_v5, %v486_v32  ;;  %v4368_v8 = vld [vmem:[%s4221_s11 + $0x68] sm:$0xff] }
  0x2c   : > { %v654_v34 = vadd.f32 %v622_v20, %v553_v28  ;;  %v858_v48 = vadd.f32 %v826_v10, %v757_v33  ;;  %v456_v49 = vadd.f32 %v4206_v2, %v417_v36  ;;  %v626_v46 = vmul.f32 %v4211_v3, %v4282_v31  ;;  %v4371_v10 = vld [vmem:[%s4221_s11 + $0x69] sm:$0xff] }
  0x2d   : > { %v1060_v40 = vadd.f32 %v1028_v35, %v958_v25  ;;  %v1058_v43 = vadd.f32 %v1026_v50, %v956_v30  ;;  %v925_v53 = vmul.f32 %v4236_v9, %v688_v47  ;;  %v1027_v54 = vmul.f32 %v4248_v14, %v3354_v62 }
  0x2e   : > { %v755_v52 = vadd.f32 %v723_v29, %v654_v34  ;;  %v959_v58 = vadd.f32 %v927_v23, %v858_v48  ;;  %v557_v59 = vadd.f32 %v525_v39, %v456_v49  ;;  %v727_v32 = vmul.f32 %v4315_v57, %v4216_v4 }
  0x2f   : > { %v1161_v51 = vadd.f32 %v1129_v44, %v1060_v40  ;;  %v1159_v35 = vadd.f32 %v1127_v55, %v1058_v43  ;;  %v828_v61 = vmul.f32 %v4324_v11, %v4226_v5  ;;  %v416_v44 = vmul.f32 %v4291_v37, %v4196_v0  ;;  %v4400_v40 = vld [vmem:[%s4221_s11 + $0x6a] sm:$0xff] }
  0x30   : > { %v856_v60 = vadd.f32 %v824_v42, %v755_v52  ;;  %v1061_v62 = vadd.f32 %v1029_v24, %v959_v58  ;;  %v658_v63 = vadd.f32 %v626_v46, %v557_v59  ;;  %v524_v55 = vmul.f32 %v4243_v13, %v4201_v1  ;;  %v4425_v58 = vld [vmem:[%s4221_s11 + $0x80] sm:$0xff] }
  0x31   : > { %v4354_v50 = vadd.f32 %v1230_v45, %v1161_v51  ;;  %v4360_v47 = vadd.f32 %v1228_v56, %v1159_v35  ;;  %v1128_v45 = vmul.f32 %v4260_v18, %v4282_v31  ;;  %v455_v15 = vadd.f32 %v4206_v2, %v416_v44  ;;  %v4422_v35 = vld [vmem:[%s4221_s11 + $0x62] sm:$0xff] }
  0x32   : > { %v957_v7 = vadd.f32 %v925_v53, %v856_v60  ;;  %v625_v56 = vmul.f32 %v4211_v3, %v4229_v6  ;;  %v1162_v20 = vadd.f32 %v1130_v26, %v1061_v62  ;;  %v759_v13 = vadd.f32 %v727_v32, %v658_v63  ;;  %v4428_v59 = vld [vmem:[%s4221_s11 + $0x81] sm:$0xff] }
  0x33   : > { %1296 = vadd.xlane.f32.xlu1 %v4354_v50  ;;  %1292 = vadd.xlane.f32.xlu0 %v4360_v47  ;;  %v929_v21 = vmul.f32 %v4339_v38, %v4236_v9  ;;  %v1229_v31 = vmul.f32 %v4265_v19, %v4315_v57  ;;  %v556_v23 = vadd.f32 %v524_v55, %v455_v15  ;;  %v4392_v57 = vld [vmem:[%s4221_s11 + $0x60] sm:$0xff]  ;;  %v4447_v15 = vld [vmem:[%s4221_s11 + $0x78] sm:$0xff] }
  0x34   : > { %v1059_v22 = vadd.f32 %v1027_v54, %v957_v7  ;;  %v726_v24 = vmul.f32 %v4252_v16, %v4216_v4  ;;  %v4383_v25 = vadd.f32 %v1231_v41, %v1162_v20  ;;  %v860_v6 = vadd.f32 %v828_v61, %v759_v13  ;;  %v4403_v41 = vld [vmem:[%s4221_s11 + $0x61] sm:$0xff] }
  0x35   : > { %v1031_v26 = vmul.f32 %v4248_v14, %v4368_v8  ;;  %v419_v28 = vmul.f32 %v4371_v10, %v4196_v0  ;;  %v657_v30 = vadd.f32 %v625_v56, %v556_v23  ;;  %v827_v33 = vmul.f32 %v4255_v17, %v4226_v5  ;;  %v4439_v63 = vld [vmem:[%s4221_s11 + $0x82] sm:$0xff] }
  0x36   : > { %v1160_v29 = vadd.f32 %v1128_v45, %v1059_v22  ;;  %v527_v36 = vmul.f32 %v4324_v11, %v4201_v1  ;;  %v961_v16 = vadd.f32 %v929_v21, %v860_v6  ;;  %v1132_v39 = vmul.f32 %v4260_v18, %v4371_v10  ;;  %v4463_v6 = vld [vmem:[%s4221_s11 + $0x7a] sm:$0xff] }
  0x37   : > { %1298 = vadd.xlane.f32.xlu1 %v4383_v25  ;;  %v458_v34 = vadd.f32 %v4206_v2, %v419_v28  ;;  %v628_v42 = vmul.f32 %v4327_v12, %v4211_v3  ;;  %v1233_v11 = vmul.f32 %v4265_v19, %v4400_v40  ;;  %v758_v48 = vadd.f32 %v726_v24, %v657_v30 }
  0x38   : > { %v4408_v43 = vadd.f32 %v1229_v31, %v1160_v29  ;;  %v928_v49 = vmul.f32 %v4276_v27, %v4236_v9  ;;  %v1063_v46 = vadd.f32 %v1031_v26, %v961_v16  ;;  %v1030_v51 = vmul.f32 %v4248_v14, %v4392_v57 }
  0x39   : > { %v559_v52 = vadd.f32 %v527_v36, %v458_v34  ;;  %v729_v53 = vmul.f32 %v4339_v38, %v4216_v4  ;;  %v859_v12 = vadd.f32 %v827_v33, %v758_v48  ;;  %v1131_v54 = vmul.f32 %v4260_v18, %v4403_v41 }
  0x3a   : > { %1294 = vadd.xlane.f32.xlu0 %v4408_v43  ;;  %v418_v32 = vmul.f32 %v4403_v41, %v4196_v0  ;;  %v526_v60 = vmul.f32 %v4255_v17, %v4201_v1  ;;  %v1164_v38 = vadd.f32 %v1132_v39, %v1063_v46  ;;  %v1232_v61 = vmul.f32 %v4265_v19, %v4422_v35 }
  0x3b   : > { %v660_v44 = vadd.f32 %v628_v42, %v559_v52  ;;  %v830_v62 = vmul.f32 %v4368_v8, %v4226_v5  ;;  %v960_v55 = vadd.f32 %v928_v49, %v859_v12  ;;  %v931_v7 = vmul.f32 %v4400_v40, %v4236_v9 }
  0x3c   : > { %v457_v45 = vadd.f32 %v4206_v2, %v418_v32  ;;  %v627_v17 = vmul.f32 %v4291_v37, %v4211_v3  ;;  %v4449_v56 = vadd.f32 %v1233_v11, %v1164_v38  ;;  %v1033_v13 = vmul.f32 %v4248_v14, %v4425_v58  ;;  %v4460_v37 = vld [vmem:[%s4221_s11 + $0x79] sm:$0xff] }
  0x3d   : > { %v761_v20 = vadd.f32 %v729_v53, %v660_v44  ;;  %v1134_v21 = vmul.f32 %v4260_v18, %v4428_v59  ;;  %v1062_v22 = vadd.f32 %v1030_v51, %v960_v55  ;;  %v1235_v31 = vmul.f32 %v4265_v19, %v4439_v63  ;;  %v4506_v38 = vld [vmem:[%s4221_s11 + $0x99] sm:$0xff] }
  0x3e   : > { %v558_v23 = vadd.f32 %v526_v60, %v457_v45  ;;  %v728_v24 = vmul.f32 %v4276_v27, %v4216_v4  ;;  %1302 = vadd.xlane.f32.xlu1 %v4449_v56  ;;  %v829_v28 = vmul.f32 %v4392_v57, %v4226_v5  ;;  %v930_v29 = vmul.f32 %v4422_v35, %v4236_v9 }
  0x3f   : > { %v862_v26 = vadd.f32 %v830_v62, %v761_v20  ;;  %v1032_v30 = vmul.f32 %v4248_v14, %v4447_v15  ;;  %v1163_v33 = vadd.f32 %v1131_v54, %v1062_v22  ;;  %v421_v27 = vmul.f32 %v4428_v59, %v4196_v0  ;;  %v4519_v20 = vld [vmem:[%s4221_s11 + $0x9a] sm:$0xff] }
  0x40   : > { %v659_v36 = vadd.f32 %v627_v17, %v558_v23  ;;  %v529_v16 = vmul.f32 %v4368_v8, %v4201_v1  ;;  %v1133_v34 = vmul.f32 %v4260_v18, %v4460_v37  ;;  %v1234_v42 = vmul.f32 %v4265_v19, %v4463_v6  ;;  %v4488_v8 = vld [vmem:[%s4221_s11 + $0x98] sm:$0xff] }
  0x41   : > { %v963_v39 = vadd.f32 %v931_v7, %v862_v26  ;;  %v1389_v11 = vmul.f32 %v4408_v43, %v4408_v43  ;;  %v4482_v48 = vadd.f32 %v1232_v61, %v1163_v33  ;;  %v460_v46 = vadd.f32 %v4206_v2, %v421_v27 }
  0x42   : > { %v760_v49 = vadd.f32 %v728_v24, %v659_v36  ;;  %v630_v51 = vmul.f32 %v4371_v10, %v4211_v3  ;;  %v4492_v53 = vmul.f32 %v4360_v47, %v4360_v47  ;;  %v4496_v12 = vmul.f32 %v4383_v25, %v4383_v25 }
  0x43   : > { %v1065_v52 = vadd.f32 %v1033_v13, %v963_v39  ;;  %v4500_v54 = vmul.f32 %v4354_v50, %v4354_v50  ;;  %1300 = vadd.xlane.f32.xlu0 %v4482_v48  ;;  %v561_v32 = vadd.f32 %v529_v16, %v460_v46  ;;  %v731_v60 = vmul.f32 %v4400_v40, %v4216_v4 }
  0x44   : > { %v861_v10 = vadd.f32 %v829_v28, %v760_v49  ;;  %v420_v61 = vmul.f32 %v4460_v37, %v4196_v0  ;;  %v4512_v62 = vmul.f32 %v4449_v56, %v4449_v56  ;;  %v832_v55 = vmul.f32 %v4425_v58, %v4226_v5  ;;  %v4553_v49 = vld [vmem:[%s4221_s11 + $0x91] sm:$0xff] }
  0x45   : > { %v1166_v44 = vadd.f32 %v1134_v21, %v1065_v52  ;;  %v528_v7 = vmul.f32 %v4392_v57, %v4201_v1  ;;  %v662_v17 = vadd.f32 %v630_v51, %v561_v32  ;;  %v629_v13 = vmul.f32 %v4403_v41, %v4211_v3  ;;  %v4525_v21 = vld [vmem:[%s4221_s11 + $0x90] sm:$0xff] }
  0x46   : > { %v962_v45 = vadd.f32 %v930_v29, %v861_v10  ;;  %v459_v40 = vadd.f32 %v4206_v2, %v420_v61  ;;  %v933_v23 = vmul.f32 %v4439_v63, %v4236_v9  ;;  %v1035_v57 = vmul.f32 %v4248_v14, %v4488_v8  ;;  %v4567_v61 = vld [vmem:[%s4221_s11 + $0x92] sm:$0xff] }
  0x47   : > { %v4527_v22 = vadd.f32 %v1235_v31, %v1166_v44  ;;  %v1136_v24 = vmul.f32 %v4260_v18, %v4506_v38  ;;  %v763_v28 = vadd.f32 %v731_v60, %v662_v17  ;;  %v730_v41 = vmul.f32 %v4422_v35, %v4216_v4 }
  0x48   : > { %v1064_v26 = vadd.f32 %v1032_v30, %v962_v45  ;;  %v560_v29 = vadd.f32 %v528_v7, %v459_v40  ;;  %v4540_v31 = vmul.f32 %v4482_v48, %v4482_v48  ;;  %v4544_v33 = vmul.f32 %v4265_v19, %v4519_v20  ;;  %v4572_v7 = vld [vmem:[%s4221_s11 + $0xb0] sm:$0xff] }
  0x49   : > { %1306 = vadd.xlane.f32.xlu1 %v4527_v22  ;;  %v423_v36 = vmul.f32 %v4506_v38, %v4196_v0  ;;  %v531_v30 = vmul.f32 %v4425_v58, %v4201_v1  ;;  %v864_v16 = vadd.f32 %v832_v55, %v763_v28  ;;  %v831_v39 = vmul.f32 %v4447_v15, %v4226_v5 }
  0x4a   : > { %v1165_v27 = vadd.f32 %v1133_v34, %v1064_v26  ;;  %v661_v35 = vadd.f32 %v629_v13, %v560_v29  ;;  %v932_v46 = vmul.f32 %v4463_v6, %v4236_v9  ;;  %v1034_v51 = vmul.f32 %v4248_v14, %v4525_v21  ;;  %v4589_v26 = vld [vmem:[%s4221_s11 + $0xb1] sm:$0xff] }
  0x4b   : > { %v462_v52 = vadd.f32 %v4206_v2, %v423_v36  ;;  %v632_v58 = vmul.f32 %v4428_v59, %v4211_v3  ;;  %v965_v10 = vadd.f32 %v933_v23, %v864_v16  ;;  %v1135_v60 = vmul.f32 %v4260_v18, %v4553_v49 }
  0x4c   : > { %v4562_v34 = vadd.f32 %v1234_v42, %v1165_v27  ;;  %v762_v32 = vadd.f32 %v730_v41, %v661_v35  ;;  %v733_v55 = vmul.f32 %v4439_v63, %v4216_v4  ;;  %v422_v59 = vmul.f32 %v4553_v49, %v4196_v0  ;;  %v4584_v63 = vld [vmem:[%s4221_s11 + $0xb2] sm:$0xff]  ;;  %v4606_v35 = vld [vmem:[%s4221_s11 + $0xa8] sm:$0xff] }
  0x4d   : > { %1422 = vadd.xlane.f32.xlu1 %v1389_v11  ;;  %v563_v44 = vadd.f32 %v531_v30, %v462_v52  ;;  %v530_v42 = vmul.f32 %v4447_v15, %v4201_v1  ;;  %v1395_v45 = vmul.f32 %v4527_v22, %v4527_v22  ;;  %v1067_v11 = vadd.f32 %v1035_v57, %v965_v10  ;;  %v4610_v52 = vld [vmem:[%s4221_s11 + $0xaa] sm:$0xff] }
  0x4e   : > { %1304 = vadd.xlane.f32.xlu0 %v4562_v34  ;;  %v863_v17 = vadd.f32 %v831_v39, %v762_v32  ;;  %v1236_v40 = vmul.f32 %v4265_v19, %v4567_v61  ;;  %v834_v23 = vmul.f32 %v4488_v8, %v4226_v5  ;;  %v461_v15 = vadd.f32 %v4206_v2, %v422_v59 }
  0x4f   : > { %v664_v13 = vadd.f32 %v632_v58, %v563_v44  ;;  %v631_v28 = vmul.f32 %v4460_v37, %v4211_v3  ;;  %v935_v29 = vmul.f32 %v4519_v20, %v4236_v9  ;;  %v1037_v41 = vmul.f32 %v4248_v14, %v4572_v7 }
  0x50   : > { %v964_v57 = vadd.f32 %v932_v46, %v863_v17  ;;  %v1138_v36 = vmul.f32 %v4260_v18, %v4589_v26  ;;  %v1239_v27 = vmul.f32 %v4265_v19, %v4584_v63  ;;  %v562_v16 = vadd.f32 %v530_v42, %v461_v15 }
  0x51   : > { %1426 = vadd.xlane.f32.xlu1 %v4496_v12  ;;  %v765_v30 = vadd.f32 %v733_v55, %v664_v13  ;;  %v732_v37 = vmul.f32 %v4463_v6, %v4216_v4  ;;  %v1168_v39 = vadd.f32 %v1136_v24, %v1067_v11  ;;  %v425_v12 = vmul.f32 %v4589_v26, %v4196_v0 }
  0x52   : > { %1420 = vadd.xlane.f32.xlu0 %v4492_v53  ;;  %v1066_v46 = vadd.f32 %v1034_v51, %v964_v57  ;;  %v533_v58 = vmul.f32 %v4488_v8, %v4201_v1  ;;  %v1394_v10 = vmul.f32 %v4562_v34, %v4562_v34  ;;  %v663_v44 = vadd.f32 %v631_v28, %v562_v16  ;;  %v4625_v51 = vld [vmem:[%s4221_s11 + $0xa9] sm:$0xff] }
  0x53   : > { %v866_v32 = vadd.f32 %v834_v23, %v765_v30  ;;  %v833_v6 = vmul.f32 %v4525_v21, %v4226_v5  ;;  %v934_v53 = vmul.f32 %v4567_v61, %v4236_v9  ;;  %v1036_v24 = vmul.f32 %v4248_v14, %v4606_v35  ;;  %v4644_v57 = vld [vmem:[%s4221_s11 + $0xc8] sm:$0xff] }
  0x54   : > { %v464_v55 = vadd.f32 %v4206_v2, %v425_v12  ;;  %v634_v8 = vmul.f32 %v4506_v38, %v4211_v3  ;;  %v764_v42 = vadd.f32 %v732_v37, %v663_v44  ;;  %v1137_v11 = vmul.f32 %v4260_v18, %v4625_v51  ;;  %v4659_v37 = vld [vmem:[%s4221_s11 + $0xc9] sm:$0xff] }
  0x55   : > { %1430 = vadd.xlane.f32.xlu1 %v4512_v62  ;;  %v967_v59 = vadd.f32 %v935_v29, %v866_v32  ;;  %v4635_v17 = vmul.f32 %v4265_v19, %v4610_v52  ;;  %v4639_v13 = vadd.f32 %v4544_v33, %v1168_v39  ;;  %v1167_v23 = vadd.f32 %v1135_v60, %v1066_v46 }
  0x56   : > { %1424 = vadd.xlane.f32.xlu0 %v4500_v54  ;;  %v565_v15 = vadd.f32 %v533_v58, %v464_v55  ;;  %v735_v38 = vmul.f32 %v4519_v20, %v4216_v4  ;;  %v865_v28 = vadd.f32 %v833_v6, %v764_v42  ;;  %v424_v29 = vmul.f32 %v4625_v51, %v4196_v0 }
  0x57   : > { %v1069_v62 = vadd.f32 %v1037_v41, %v967_v59  ;;  %v532_v30 = vmul.f32 %v4525_v21, %v4201_v1  ;;  %v4652_v54 = vmul.f32 %v4639_v13, %v4639_v13  ;;  %v836_v60 = vmul.f32 %v4572_v7, %v4226_v5 }
  0x58   : > { %v666_v33 = vadd.f32 %v634_v8, %v565_v15  ;;  %v937_v20 = vmul.f32 %v4584_v63, %v4236_v9  ;;  %v966_v16 = vadd.f32 %v934_v53, %v865_v28  ;;  %v463_v21 = vadd.f32 %v4206_v2, %v424_v29  ;;  %v4685_v53 = vld [vmem:[%s4221_s11 + $0xc0] sm:$0xff] }
  0x59   : > { %1434 = vadd.xlane.f32.xlu1 %v1395_v45  ;;  %v1170_v41 = vadd.f32 %v1138_v36, %v1069_v62  ;;  %v633_v39 = vmul.f32 %v4553_v49, %v4211_v3  ;;  %v4665_v46 = vadd.f32 %v1236_v40, %v1167_v23  ;;  %v1039_v58 = vmul.f32 %v4248_v14, %v4644_v57  ;;  %v4672_v36 = vld [vmem:[%s4221_s11 + $0xca] sm:$0xff]  ;;  %v4699_v23 = vld [vmem:[%s4221_s11 + $0xc1] sm:$0xff] }
  0x5a   : > { %1428 = vadd.xlane.f32.xlu0 %v4540_v31  ;;  %v767_v12 = vadd.f32 %v735_v38, %v666_v33  ;;  %v1140_v45 = vmul.f32 %v4260_v18, %v4659_v37  ;;  %v1068_v32 = vadd.f32 %v1036_v24, %v966_v16  ;;  %v4676_v44 = vmul.f32 %v4265_v19, %v4672_v36  ;;  %v4702_v62 = vld [vmem:[%s4221_s11 + $0xc2] sm:$0xff] }
  0x5b   : > { %v564_v49 = vadd.f32 %v532_v30, %v463_v21  ;;  %v734_v31 = vmul.f32 %v4567_v61, %v4216_v4  ;;  %v4682_v40 = vmul.f32 %v4665_v46, %v4665_v46  ;;  %v427_v55 = vmul.f32 %v4659_v37, %v4196_v0  ;;  %v3746_v28 = vld [vmem:[%s6794_s5] sm:$0xff]  }
  0x5c   : > { %v868_v6 = vadd.f32 %v836_v60, %v767_v12  ;;  %v535_v24 = vmul.f32 %v4572_v7, %v4201_v1  ;;  %v4692_v8 = vadd.f32 %v1239_v27, %v1170_v41  ;;  %v835_v61 = vmul.f32 %v4606_v35, %v4226_v5  ;;  %3591 = vmatprep.subr.bf16.mxu0 %v3746_v28 }
  0x5d   : > { %1310 = vadd.xlane.f32.xlu1 %v4639_v13  ;;  %v665_v59 = vadd.f32 %v633_v39, %v564_v49  ;;  %v936_v42 = vmul.f32 %v4610_v52, %v4236_v9  ;;  %v1169_v15 = vadd.f32 %v1137_v11, %v1068_v32  ;;  %v466_v7 = vadd.f32 %v4206_v2, %v427_v55  ;;  %v4737_v32 = vld [vmem:[%s4221_s11 + $0xe1] sm:$0xff] }
  0x5e   : > { %1432 = vadd.xlane.f32.xlu0 %v1394_v10  ;;  %v969_v38 = vadd.f32 %v937_v20, %v868_v6  ;;  %v636_v27 = vmul.f32 %v4589_v26, %v4211_v3  ;;  %v1038_v30 = vmul.f32 %v4248_v14, %v4685_v53  ;;  %v1139_v10 = vmul.f32 %v4260_v18, %v4699_v23  ;;  %v4721_v20 = vld [vmem:[%s4221_s11 + $0xe0] sm:$0xff] }
  0x5f   : > { %v766_v29 = vadd.f32 %v734_v31, %v665_v59  ;;  %v4716_v11 = vmul.f32 %v4265_v19, %v4702_v62  ;;  %v567_v60 = vadd.f32 %v535_v24, %v466_v7  ;;  %v737_v26 = vmul.f32 %v4584_v63, %v4216_v4  ;;  %v4740_v49 = vld [vmem:[%s4221_s11 + $0xe2] sm:$0xff]  ;;  %3592 = vmatpush3.bf16.msra.mxu0 %v3746_v28 }
  0x60   : > { %v1071_v33 = vadd.f32 %v1039_v58, %v969_v38  ;;  %v426_v41 = vmul.f32 %v4699_v23, %v4196_v0  ;;  %v1399_v16 = vmul.f32 %v4692_v8, %v4692_v8  ;;  %v838_v39 = vmul.f32 %v4644_v57, %v4226_v5 }
  0x61   : > { %1314 = vadd.xlane.f32.xlu1 %v4692_v8  ;;  %v867_v21 = vadd.f32 %v835_v61, %v766_v29  ;;  %v534_v12 = vmul.f32 %v4606_v35, %v4201_v1  ;;  %v4734_v63 = vadd.f32 %v4635_v17, %v1169_v15  ;;  %v668_v58 = vadd.f32 %v636_v27, %v567_v60 }
  0x62   : > { %1308 = vadd.xlane.f32.xlu0 %v4665_v46  ;;  %v465_v31 = vadd.f32 %v4206_v2, %v426_v41  ;;  %v635_v6 = vmul.f32 %v4625_v51, %v4211_v3  ;;  %v939_v35 = vmul.f32 %v4672_v36, %v4236_v9  ;;  %v1041_v24 = vmul.f32 %v4248_v14, %v4721_v20  ;;  %v4754_v51 = vld [vmem:[%s4221_s11 + $0xd8] sm:$0xff] }
  0x63   : > { %v968_v55 = vadd.f32 %v936_v42, %v867_v21  ;;  %v1142_v17 = vmul.f32 %v4260_v18, %v4737_v32  ;;  %v1172_v59 = vadd.f32 %v1140_v45, %v1071_v33  ;;  %v769_v61 = vadd.f32 %v737_v26, %v668_v58  ;;  %v3747_v33 = vld [vmem:[%s6794_s5 + $0x8] sm:$0xff]   ;;  %v4779_v26 = vld [vmem:[%s4221_s11 + $0xd9] sm:$0xff] }
  0x64   : > { %v566_v15 = vadd.f32 %v534_v12, %v465_v31  ;;  %v736_v38 = vmul.f32 %v4610_v52, %v4216_v4  ;;  %v1243_v7 = vmul.f32 %v4265_v19, %v4740_v49  ;;  %v429_v27 = vmul.f32 %v4737_v32, %v4196_v0  ;;  %3593 = vmatprep.subr.bf16.mxu0 %v3747_v33 }
  0x65   : > { %1438 = vadd.xlane.f32.xlu1 %v4652_v54  ;;  %v1070_v42 = vadd.f32 %v1038_v30, %v968_v55  ;;  %v537_v45 = vmul.f32 %v4644_v57, %v4201_v1  ;;  %v1398_v52 = vmul.f32 %v4734_v63, %v4734_v63  ;;  %v870_v28 = vadd.f32 %v838_v39, %v769_v61  ;;  %v4769_v30 = vld [vmem:[%s4221_s11 + $0xda] sm:$0xff] }
  0x66   : > { %1312 = vadd.xlane.f32.xlu0 %v4734_v63  ;;  %v667_v29 = vadd.f32 %v635_v6, %v566_v15  ;;  %v837_v54 = vmul.f32 %v4685_v53, %v4226_v5  ;;  %v938_v60 = vmul.f32 %v4702_v62, %v4236_v9  ;;  %v1040_v57 = vmul.f32 %v4248_v14, %v4754_v51 }
  0x67   : > { %v468_v41 = vadd.f32 %v4206_v2, %v429_v27  ;;  %v638_v21 = vmul.f32 %v4659_v37, %v4211_v3  ;;  %v4785_v39 = vadd.f32 %v4676_v44, %v1172_v59  ;;  %v971_v12 = vadd.f32 %v939_v35, %v870_v28  ;;  %v4795_v35 = vld [vmem:[%s4221_s11 + $0xf8] sm:$0xff]  ;;  %3594 = vmatpush3.bf16.msra.mxu0 %v3747_v33 }
  0x68   : > { %v768_v58 = vadd.f32 %v736_v38, %v667_v29  ;;  %v1141_v31 = vmul.f32 %v4260_v18, %v4779_v26  ;;  %v1171_v6 = vadd.f32 %v1139_v10, %v1070_v42  ;;  %v1242_v55 = vmul.f32 %v4265_v19, %v4769_v30 }
  0x69   : > { %1442 = vadd.xlane.f32.xlu1 %v1399_v16  ;;  %v569_v61 = vadd.f32 %v537_v45, %v468_v41  ;;  %v739_v15 = vmul.f32 %v4672_v36, %v4216_v4  ;;  %v1073_v37 = vadd.f32 %v1041_v24, %v971_v12  ;;  %v428_v59 = vmul.f32 %v4779_v26, %v4196_v0  ;;  %v3748_v16 = vld [vmem:[%s6794_s5 + $0x10] sm:$0xff]   ;;  %v4811_v45 = vld [vmem:[%s4221_s11 + $0xf9] sm:$0xff] }
  0x6a   : > { %1436 = vadd.xlane.f32.xlu0 %v4682_v40  ;;  %v869_v44 = vadd.f32 %v837_v54, %v768_v58  ;;  %v536_v10 = vmul.f32 %v4685_v53, %v4201_v1  ;;  %v1401_v38 = vmul.f32 %v4785_v39, %v4785_v39  ;;  %v840_v40 = vmul.f32 %v4721_v20, %v4226_v5 }
  0x6b   : > { %v670_v36 = vadd.f32 %v638_v21, %v569_v61  ;;  %v941_v24 = vmul.f32 %v4740_v49, %v4236_v9  ;;  %v1174_v42 = vadd.f32 %v1142_v17, %v1073_v37  ;;  %v467_v53 = vadd.f32 %v4206_v2, %v428_v59  ;;  %3595 = vmatprep.subr.bf16.mxu0 %v3748_v16  ;;  %v4837_v61 = vld [vmem:[%s4221_s11 + $0xf0] sm:$0xff] }
  0x6c   : > { %v970_v27 = vadd.f32 %v938_v60, %v869_v44  ;;  %v637_v28 = vmul.f32 %v4699_v23, %v4211_v3  ;;  %v4818_v29 = vadd.f32 %v4716_v11, %v1171_v6  ;;  %v1043_v33 = vmul.f32 %v4248_v14, %v4795_v35  ;;  %v4827_v23 = vld [vmem:[%s4221_s11 + $0xfa] sm:$0xff]  ;;  %3596 = vmatpush3.bf16.msra.mxu0 %v3748_v16  ;;  %v4848_v44 = vld [vmem:[%s4221_s11 + $0xf1] sm:$0xff] }
  0x6d   : > { %1318 = vadd.xlane.f32.xlu1 %v4785_v39  ;;  %v771_v54 = vadd.f32 %v739_v15, %v670_v36  ;;  %v1144_v17 = vmul.f32 %v4260_v18, %v4811_v45  ;;  %v4824_v60 = vadd.f32 %v1243_v7, %v1174_v42  ;;  %v568_v21 = vadd.f32 %v536_v10, %v467_v53  ;;  %v3749_v11 = vld [vmem:[%s6794_s5 + $0x18] sm:$0xff]  }
  0x6e   : > { %1440 = vadd.xlane.f32.xlu0 %v1398_v52  ;;  %v1072_v41 = vadd.f32 %v1040_v57, %v970_v27  ;;  %v738_v12 = vmul.f32 %v4702_v62, %v4216_v4  ;;  %v1245_v6 = vmul.f32 %v4265_v19, %v4827_v23  ;;  %v431_v7 = vmul.f32 %v4811_v45, %v4196_v0 }
  0x6f   : > { %v872_v58 = vadd.f32 %v840_v40, %v771_v54  ;;  %v539_v52 = vmul.f32 %v4721_v20, %v4201_v1  ;;  %v1400_v62 = vmul.f32 %v4818_v29, %v4818_v29  ;;  %v669_v15 = vadd.f32 %v637_v28, %v568_v21  ;;  %3597 = vmatprep.subr.bf16.mxu0 %v3749_v11 }
  0x70   : > { %v1173_v57 = vadd.f32 %v1141_v31, %v1072_v41  ;;  %v839_v37 = vmul.f32 %v4754_v51, %v4226_v5  ;;  %v940_v10 = vmul.f32 %v4769_v30, %v4236_v9  ;;  %v470_v20 = vadd.f32 %v4206_v2, %v431_v7  ;;  %3598 = vmatpush3.bf16.msra.mxu0 %v3749_v11  ;;  %v4886_v11 = vld [vmem:[%s4221_s11 + $0x111] sm:$0xff] }
  0x71   : > { %1322 = vadd.xlane.f32.xlu1 %v4824_v60  ;;  %v973_v59 = vadd.f32 %v941_v24, %v872_v58  ;;  %v640_v31 = vmul.f32 %v4737_v32, %v4211_v3  ;;  %v770_v36 = vadd.f32 %v738_v12, %v669_v15  ;;  %v1042_v40 = vmul.f32 %v4248_v14, %v4837_v61  ;;  %v3750_v24 = vld [vmem:[%s6794_s5 + $0x20] sm:$0xff]   ;;  %v4883_v58 = vld [vmem:[%s4221_s11 + $0xf2] sm:$0xff] }
  0x72   : > { %1316 = vadd.xlane.f32.xlu0 %v4818_v29  ;;  %v4857_v16 = vadd.f32 %v1242_v55, %v1173_v57  ;;  %v1143_v42 = vmul.f32 %v4260_v18, %v4848_v44  ;;  %v571_v53 = vadd.f32 %v539_v52, %v470_v20  ;;  %v741_v32 = vmul.f32 %v4740_v49, %v4216_v4  ;;  %v4869_v55 = vld [vmem:[%s4221_s11 + $0x110] sm:$0xff]  ;;  %v3751_v49 = vld [vmem:[%s6794_s5 + $0x28] sm:$0xff]  }
  0x73   : > { %v1075_v27 = vadd.f32 %v1043_v33, %v973_v59  ;;  %v430_v28 = vmul.f32 %v4848_v44, %v4196_v0  ;;  %v1403_v54 = vmul.f32 %v4824_v60, %v4824_v60  ;;  %v871_v41 = vadd.f32 %v839_v37, %v770_v36  ;;  %3599 = vmatprep.subr.bf16.mxu0 %v3750_v24  ;;  %v4889_v7 = vld [vmem:[%s4221_s11 + $0x112] sm:$0xff] }
  0x74   : > { %v842_v21 = vmul.f32 %v4795_v35, %v4226_v5  ;;  %v538_v33 = vmul.f32 %v4754_v51, %v4201_v1  ;;  %v672_v0 = vadd.f32 %v640_v31, %v571_v53  ;;  %v639_v1 = vmul.f32 %v4779_v26, %v4211_v3  ;;  %3600 = vmatpush3.bf16.msra.mxu0 %v3750_v24  ;;  %v3752_v31 = vld [vmem:[%s6794_s5 + $0x30] sm:$0xff]  }
  0x75   : > { %1446 = vadd.xlane.f32.xlu1 %v1401_v38  ;;  %v1176_v12 = vadd.f32 %v1144_v17, %v1075_v27  ;;  %v469_v52 = vadd.f32 %v4206_v2, %v430_v28  ;;  %v972_v51 = vadd.f32 %v940_v10, %v871_v41  ;;  %v1244_v38 = vmul.f32 %v4265_v19, %v4883_v58  ;;  %v4908_v10 = vld [vmem:[%s4221_s11 + $0x108] sm:$0xff] }
  0x76   : > { %1320 = vadd.xlane.f32.xlu0 %v4857_v16  ;;  %v943_v17 = vmul.f32 %v4827_v23, %v4236_v9  ;;  %v1045_v57 = vmul.f32 %v4248_v14, %v4869_v55  ;;  %v773_v15 = vadd.f32 %v741_v32, %v672_v0  ;;  %v1146_v37 = vmul.f32 %v4260_v18, %v4886_v11  ;;  %v4913_v9 = vld [vmem:[%s6790_s1 + $0x4] ss:$0 sm:$0xff]  ;;  %v4932_v53 = vld [vmem:[%s4221_s11 + $0x10a] sm:$0xff] }
  0x77   : > { %v570_v2 = vadd.f32 %v538_v33, %v469_v52  ;;  %v740_v3 = vmul.f32 %v4769_v30, %v4216_v4  ;;  %v1074_v26 = vadd.f32 %v1042_v40, %v972_v51  ;;  %v1247_v59 = vmul.f32 %v4265_v19, %v4889_v7  ;;  %v4920_v4 = vld [vmem:[%s6790_s1] ss:$0 sm:$0xff]  ;;  %3601 = vmatprep.subr.bf16.mxu0 %v3751_v49  ;;  %v4937_v28 = vld [vmem:[%s4221_s11 + $0x109] sm:$0xff] }
  0x78   : > { %v433_v20 = vmul.f32 %v4913_v9, %v4886_v11  ;;  %v541_v30 = vmul.f32 %v4920_v4, %v4795_v35  ;;  %v4927_v36 = vadd.f32 %v1245_v6, %v1176_v12  ;;  %v874_v40 = vadd.f32 %v842_v21, %v773_v15  ;;  %v4955_v21 = vld [vmem:[%s6790_s1 + $0x5] ss:$0 sm:$0xff]  ;;  %3602 = vmatpush3.bf16.msra.mxu0 %v3751_v49 }
  0x79   : > { %1450 = vadd.xlane.f32.xlu1 %v1403_v54  ;;  %v671_v24 = vadd.f32 %v639_v1, %v570_v2  ;;  %v841_v27 = vmul.f32 %v4837_v61, %v4226_v5  ;;  %v1402_v32 = vmul.f32 %v4857_v16, %v4857_v16  ;;  %v1175_v35 = vadd.f32 %v1143_v42, %v1074_v26  ;;  %v4942_v54 = vld [vmem:[%s6791_s2] ss:$0 sm:$0xff]  ;;  %v4948_v5 = vld [vmem:[%s6790_s1 + $0x1] ss:$0 sm:$0xff]  ;;  %v4968_v1 = vld [vmem:[%s6790_s1 + $0x2] ss:$0 sm:$0xff] }
  0x7a   : > { %1444 = vadd.xlane.f32.xlu0 %v1400_v62  ;;  %v472_v6 = vadd.f32 %v4942_v54, %v433_v20  ;;  %v642_v62 = vmul.f32 %v4948_v5, %v4811_v45  ;;  %v975_v41 = vadd.f32 %v943_v17, %v874_v40  ;;  %v942_v33 = vmul.f32 %v4955_v21, %v4883_v58  ;;  %v4974_v17 = vld [vmem:[%s4221_s11 + $0x128] sm:$0xff]  ;;  %v3753_v26 = vld [vmem:[%s6794_s5 + $0x38] sm:$0xff]  }
  0x7b   : > { %v772_v42 = vadd.f32 %v740_v3, %v671_v24  ;;  %v1044_v12 = vmul.f32 %v4248_v14, %v4908_v10  ;;  %v1145_v0 = vmul.f32 %v4260_v18, %v4937_v28  ;;  %v1246_v45 = vmul.f32 %v4265_v19, %v4932_v53  ;;  %3603 = vmatprep.subr.bf16.mxu0 %v3752_v31  ;;  %v4995_v20 = vld [vmem:[%s4221_s11 + $0x129] sm:$0xff] }
  0x7c   : > { %v573_v52 = vadd.f32 %v541_v30, %v472_v6  ;;  %v743_v51 = vmul.f32 %v4968_v1, %v4827_v23  ;;  %v1077_v14 = vadd.f32 %v1045_v57, %v975_v41  ;;  %v432_v18 = vmul.f32 %v4913_v9, %v4937_v28  ;;  %v4987_v57 = vld [vmem:[%s6790_s1 + $0x3] ss:$0 sm:$0xff]  ;;  %3604 = vmatpush3.bf16.msra.mxu0 %v3752_v31 }
  0x7d   : > { %1326 = vadd.xlane.f32.xlu1 %v4927_v36  ;;  %v873_v49 = vadd.f32 %v841_v27, %v772_v42  ;;  %v540_v19 = vmul.f32 %v4920_v4, %v4837_v61  ;;  %v4980_v15 = vadd.f32 %v1244_v38, %v1175_v35  ;;  %v1405_v23 = vmul.f32 %v4927_v36, %v4927_v36  ;;  %v5012_v35 = vld [vmem:[%s6790_s1 + $0x7] ss:$0 sm:$0xff] }
  0x7e   : > { %1448 = vadd.xlane.f32.xlu0 %v1402_v32  ;;  %v674_v2 = vadd.f32 %v642_v62, %v573_v52  ;;  %v844_v3 = vmul.f32 %v4987_v57, %v4869_v55  ;;  %v1178_v61 = vadd.f32 %v1146_v37, %v1077_v14  ;;  %v471_v30 = vadd.f32 %v4942_v54, %v432_v18  ;;  %v5005_v32 = vld [vmem:[%s6790_s1 + $0x6] ss:$0 sm:$0xff]  ;;  %v5019_v62 = vld [vmem:[%s4221_s11 + $0x12a] sm:$0xff]  ;;  %v5027_v52 = vld [vmem:[%s6790_s1 + $0x8] ss:$0 sm:$0xff] }
  0x7f   : > { %v974_v38 = vadd.f32 %v942_v33, %v873_v49  ;;  %v641_v40 = vmul.f32 %v4948_v5, %v4848_v44  ;;  %v945_v27 = vmul.f32 %v4955_v21, %v4889_v7  ;;  %v1047_v37 = vmul.f32 %v5005_v32, %v4974_v17  ;;  %3605 = vmatprep.subr.bf16.mxu0 %v3753_v26 }
  0x80   : > { %v775_v24 = vadd.f32 %v743_v51, %v674_v2  ;;  %v1148_v44 = vmul.f32 %v5012_v35, %v4995_v20  ;;  %v5016_v31 = vadd.f32 %v1247_v59, %v1178_v61  ;;  %v572_v41 = vadd.f32 %v540_v19, %v471_v30  ;;  %v5032_v51 = vld [vmem:[%s4221_s11 + $0x120] sm:$0xff]  ;;  %3606 = vmatpush3.bf16.msra.mxu0 %v3753_v26 }
  0x81   : > { %v1076_v6 = vadd.f32 %v1044_v12, %v974_v38  ;;  %v742_v42 = vmul.f32 %v4968_v1, %v4883_v58  ;;  %v1249_v59 = vmul.f32 %v5027_v52, %v5019_v62  ;;  %v435_v12 = vmul.f32 %v4913_v9, %v4995_v20  ;;  %v5044_v2 = vld [vmem:[%s4221_s11 + $0x121] sm:$0xff] }
  0x82   : > { %1324 = vadd.xlane.f32.xlu0 %v4980_v15  ;;  %v876_v33 = vadd.f32 %v844_v3, %v775_v24  ;;  %v543_v14 = vmul.f32 %v4920_v4, %v4869_v55  ;;  %1330 = vadd.xlane.f32.xlu1 %v5016_v31  ;;  %v1404_v49 = vmul.f32 %v4980_v15, %v4980_v15  ;;  %v5065_v26 = vld [vmem:[%s4221_s11 + $0x140] sm:$0xff] }
  0x83   : > { %v1177_v58 = vadd.f32 %v1145_v0, %v1076_v6  ;;  %v673_v18 = vadd.f32 %v641_v40, %v572_v41  ;;  %v843_v19 = vmul.f32 %v4987_v57, %v4908_v10  ;;  %v944_v61 = vmul.f32 %v4955_v21, %v4932_v53 }
  0x84   : > { %v977_v3 = vadd.f32 %v945_v27, %v876_v33  ;;  %v474_v38 = vadd.f32 %v4942_v54, %v435_v12  ;;  %v644_v55 = vmul.f32 %v4948_v5, %v4886_v11  ;;  %v1407_v30 = vmul.f32 %v5016_v31, %v5016_v31  ;;  %v5070_v12 = vld [vmem:[%s4221_s11 + $0x122] sm:$0xff] }
  0x85   : > { %v5051_v0 = vadd.f32 %v1246_v45, %v1177_v58  ;;  %v774_v40 = vadd.f32 %v742_v42, %v673_v18  ;;  %v1046_v24 = vmul.f32 %v5005_v32, %v5032_v51  ;;  %v745_v41 = vmul.f32 %v4968_v1, %v4889_v7 }
  0x86   : > { %v1079_v27 = vadd.f32 %v1047_v37, %v977_v3  ;;  %v575_v6 = vadd.f32 %v543_v14, %v474_v38  ;;  %v434_v33 = vmul.f32 %v4913_v9, %v5044_v2  ;;  %1454 = vadd.xlane.f32.xlu1 %v1405_v23  ;;  %v846_v45 = vmul.f32 %v4987_v57, %v4974_v17 }
  0x87   : > { %6814 = vst [vmem:[#allocation7_spill] sm:$0xff] %v5051_v0  ;;  %1328 = vadd.xlane.f32.xlu0 %v5051_v0  ;;  %v875_v11 = vadd.f32 %v843_v19, %v774_v40  ;;  %v542_v37 = vmul.f32 %v4920_v4, %v4908_v10  ;;  %v643_v58 = vmul.f32 %v4948_v5, %v4937_v28 }
  0x88   : > { %v1180_v42 = vadd.f32 %v1148_v44, %v1079_v27  ;;  %v676_v7 = vadd.f32 %v644_v55, %v575_v6  ;;  %v473_v14 = vadd.f32 %v4942_v54, %v434_v33  ;;  %v1147_v18 = vmul.f32 %v5012_v35, %v5044_v2  ;;  %v5082_v44 = vld [vmem:[%s4221_s11 + $0x141] sm:$0xff] }
  0x89   : > { %v976_v23 = vadd.f32 %v944_v61, %v875_v11  ;;  %v1248_v19 = vmul.f32 %v5027_v52, %v5070_v12  ;;  %v947_v10 = vmul.f32 %v4955_v21, %v5019_v62  ;;  %v1049_v38 = vmul.f32 %v5005_v32, %v5065_v26  ;;  %v5093_v33 = vld [vmem:[%s4221_s11 + $0x142] sm:$0xff] }
  0x8a   : > { %v777_v3 = vadd.f32 %v745_v41, %v676_v7  ;;  %v574_v55 = vadd.f32 %v542_v37, %v473_v14  ;;  %v744_v28 = vmul.f32 %v4968_v1, %v4932_v53  ;;  %1458 = vadd.xlane.f32.xlu1 %v1407_v30  ;;  %v1406_v61 = vmul.f32 %v5051_v0, %v5051_v0  ;;  %v5098_v37 = vld [vmem:[%s4221_s11 + $0x138] sm:$0xff] }
  0x8b   : > { %1452 = vadd.xlane.f32.xlu0 %v1404_v49  ;;  %v5090_v40 = vadd.f32 %v1249_v59, %v1180_v42  ;;  %v1078_v27 = vadd.f32 %v1046_v24, %v976_v23  ;;  %v845_v11 = vmul.f32 %v4987_v57, %v5032_v51  ;;  %v437_v53 = vmul.f32 %v4913_v9, %v5082_v44  ;;  %v5109_v7 = vld [vmem:[%s4221_s11 + $0x139] sm:$0xff] }
  0x8c   : > { %v878_v6 = vadd.f32 %v846_v45, %v777_v3  ;;  %v675_v41 = vadd.f32 %v643_v58, %v574_v55  ;;  %v1150_v30 = vmul.f32 %v5012_v35, %v5082_v44  ;;  %v946_v59 = vmul.f32 %v4955_v21, %v5070_v12  ;;  %v5112_v14 = vld [vmem:[%s4221_s11 + $0x13a] sm:$0xff] }
  0x8d   : > { %6815 = vst [vmem:[#allocation8_spill] sm:$0xff] %v5090_v40  ;;  %v1179_v49 = vadd.f32 %v1147_v18, %v1078_v27  ;;  %v545_v24 = vmul.f32 %v4920_v4, %v4974_v17  ;;  %v476_v58 = vadd.f32 %v4942_v54, %v437_v53  ;;  %v646_v23 = vmul.f32 %v4948_v5, %v4995_v20 }
  0x8e   : > { %v979_v45 = vadd.f32 %v947_v10, %v878_v6  ;;  %v776_v42 = vadd.f32 %v744_v28, %v675_v41  ;;  %1334 = vadd.xlane.f32.xlu1 %v5090_v40  ;;  %v1251_v17 = vmul.f32 %v5027_v52, %v5093_v33  ;;  %v1048_v10 = vmul.f32 %v5005_v32, %v5098_v37 }
  0x8f   : > { %1456 = vadd.xlane.f32.xlu0 %v1406_v61  ;;  %v5118_v18 = vadd.f32 %v1248_v19, %v1179_v49  ;;  %v577_v28 = vadd.f32 %v545_v24, %v476_v58  ;;  %v747_v27 = vmul.f32 %v4968_v1, %v5019_v62  ;;  %v1149_v20 = vmul.f32 %v5012_v35, %v5109_v7  ;;  %v5131_v61 = vld [vmem:[%s4221_s11 + $0x158] sm:$0xff] }
  0x90   : > { %v1081_v3 = vadd.f32 %v1049_v38, %v979_v45  ;;  %v877_v55 = vadd.f32 %v845_v11, %v776_v42  ;;  %v1250_v19 = vmul.f32 %v5027_v52, %v5112_v14  ;;  %v436_v6 = vmul.f32 %v4913_v9, %v5109_v7  ;;  %v5140_v49 = vld [vmem:[%s4221_s11 + $0x159] sm:$0xff] }
  0x91   : > { %6816 = vst [vmem:[#allocation9_spill] sm:$0xff] %v5118_v18  ;;  %v544_v41 = vmul.f32 %v4920_v4, %v5032_v51  ;;  %v678_v53 = vadd.f32 %v646_v23, %v577_v28  ;;  %v848_v62 = vmul.f32 %v4987_v57, %v5065_v26  ;;  %v1409_v24 = vmul.f32 %v5090_v40, %v5090_v40 }
  0x92   : > { %v1182_v38 = vadd.f32 %v1150_v30, %v1081_v3  ;;  %v978_v11 = vadd.f32 %v946_v59, %v877_v55  ;;  %v949_v45 = vmul.f32 %v4955_v21, %v5093_v33  ;;  %v475_v42 = vadd.f32 %v4942_v54, %v436_v6 }
  0x93   : > { %1332 = vadd.xlane.f32.xlu0 %v5118_v18  ;;  %v645_v51 = vmul.f32 %v4948_v5, %v5044_v2  ;;  %v779_v58 = vadd.f32 %v747_v27, %v678_v53  ;;  %v1051_v23 = vmul.f32 %v5005_v32, %v5131_v61  ;;  %v1152_v3 = vmul.f32 %v5012_v35, %v5140_v49  ;;  %v5164_v27 = vld [vmem:[%s4221_s11 + $0x150] sm:$0xff] }
  0x94   : > { %v5150_v30 = vadd.f32 %v1251_v17, %v1182_v38  ;;  %v1080_v59 = vadd.f32 %v1048_v10, %v978_v11  ;;  %v576_v55 = vadd.f32 %v544_v41, %v475_v42  ;;  %v746_v28 = vmul.f32 %v4968_v1, %v5070_v12  ;;  %v5169_v41 = vld [vmem:[%s4221_s11 + $0x15a] sm:$0xff] }
  0x95   : > { %v439_v6 = vmul.f32 %v4913_v9, %v5140_v49  ;;  %v1408_v17 = vmul.f32 %v5118_v18, %v5118_v18  ;;  %v880_v10 = vadd.f32 %v848_v62, %v779_v58  ;;  %v547_v38 = vmul.f32 %v4920_v4, %v5065_v26  ;;  %v5198_v18 = vld [vmem:[%s4221_s11 + $0x170] sm:$0xff] }
  0x96   : > { %6817 = vst [vmem:[#allocation10_spill] sm:$0xff] %v5150_v30  ;;  %1338 = vadd.xlane.f32.xlu1 %v5150_v30  ;;  %v1181_v2 = vadd.f32 %v1149_v20, %v1080_v59  ;;  %v677_v11 = vadd.f32 %v645_v51, %v576_v55  ;;  %v847_v12 = vmul.f32 %v4987_v57, %v5098_v37  ;;  %v5183_v51 = vld [vmem:[%s4221_s11 + $0x151] sm:$0xff] }
  0x97   : > { %v478_v53 = vadd.f32 %v4942_v54, %v439_v6  ;;  %v648_v20 = vmul.f32 %v4948_v5, %v5082_v44  ;;  %v981_v62 = vadd.f32 %v949_v45, %v880_v10  ;;  %v1253_v59 = vmul.f32 %v5027_v52, %v5169_v41 }
  0x98   : > { %v5176_v42 = vadd.f32 %v1250_v19, %v1181_v2  ;;  %v948_v26 = vmul.f32 %v4955_v21, %v5112_v14  ;;  %v778_v58 = vadd.f32 %v746_v28, %v677_v11  ;;  %v1050_v55 = vmul.f32 %v5005_v32, %v5164_v27  ;;  %v5195_v28 = vld [vmem:[%s4221_s11 + $0x152] sm:$0xff] }
  0x99   : > { %v579_v6 = vadd.f32 %v547_v38, %v478_v53  ;;  %v749_v44 = vmul.f32 %v4968_v1, %v5093_v33  ;;  %v1411_v19 = vmul.f32 %v5150_v30, %v5150_v30  ;;  %v1083_v45 = vadd.f32 %v1051_v23, %v981_v62 }
  0x9a   : > { %6818 = vst [vmem:[#allocation11_spill] sm:$0xff] %v5176_v42  ;;  %1336 = vadd.xlane.f32.xlu0 %v5176_v42  ;;  %1462 = vadd.xlane.f32.xlu1 %v1409_v24  ;;  %v850_v2 = vmul.f32 %v4987_v57, %v5131_v61  ;;  %v879_v10 = vadd.f32 %v847_v12, %v778_v58  ;;  %v5211_v58 = vld [vmem:[%s4221_s11 + $0x171] sm:$0xff] }
  0x9b   : > { %v680_v11 = vadd.f32 %v648_v20, %v579_v6  ;;  %v438_v33 = vmul.f32 %v4913_v9, %v5183_v51  ;;  %v546_v24 = vmul.f32 %v4920_v4, %v5098_v37  ;;  %v1184_v38 = vadd.f32 %v1152_v3, %v1083_v45 }
  0x9c   : > { %v1151_v23 = vmul.f32 %v5012_v35, %v5183_v51  ;;  %v1252_v53 = vmul.f32 %v5027_v52, %v5195_v28  ;;  %v951_v12 = vmul.f32 %v4955_v21, %v5169_v41  ;;  %v980_v20 = vadd.f32 %v948_v26, %v879_v10 }
  0x9d   : > { %v781_v62 = vadd.f32 %v749_v44, %v680_v11  ;;  %v477_v6 = vadd.f32 %v4942_v54, %v438_v33  ;;  %v647_v37 = vmul.f32 %v4948_v5, %v5109_v7  ;;  %v1410_v3 = vmul.f32 %v5176_v42, %v5176_v42  ;;  %v5223_v11 = vld [vmem:[%s4221_s11 + $0x172] sm:$0xff] }
  0x9e   : > { %1460 = vadd.xlane.f32.xlu0 %v1408_v17  ;;  %1466 = vadd.xlane.f32.xlu1 %v1411_v19  ;;  %v5218_v45 = vadd.f32 %v1253_v59, %v1184_v38  ;;  %v1053_v26 = vmul.f32 %v5005_v32, %v5198_v18  ;;  %v1082_v44 = vadd.f32 %v1050_v55, %v980_v20  ;;  %v5239_v20 = vld [vmem:[%s4221_s11 + $0x169] sm:$0xff] }
  0x9f   : > { %v882_v10 = vadd.f32 %v850_v2, %v781_v62  ;;  %v578_v33 = vadd.f32 %v546_v24, %v477_v6  ;;  %v748_v7 = vmul.f32 %v4968_v1, %v5112_v14  ;;  %v1154_v17 = vmul.f32 %v5012_v35, %v5211_v58  ;;  %v5236_v24 = vld [vmem:[%s4221_s11 + $0x168] sm:$0xff] }
  0xa0   : > { %6819 = vst [vmem:[#allocation12_spill] sm:$0xff] %v5218_v45  ;;  %v441_v19 = vmul.f32 %v4913_v9, %v5211_v58  ;;  %v549_v59 = vmul.f32 %v4920_v4, %v5131_v61  ;;  %v1183_v38 = vadd.f32 %v1151_v23, %v1082_v44  ;;  %v849_v2 = vmul.f32 %v4987_v57, %v5164_v27  ;;  %v5254_v44 = vld [vmem:[%s4221_s11 + $0x16a] sm:$0xff] }
  0xa1   : > { %v983_v42 = vadd.f32 %v951_v12, %v882_v10  ;;  %v679_v55 = vadd.f32 %v647_v37, %v578_v33  ;;  %v1255_v14 = vmul.f32 %v5027_v52, %v5223_v11  ;;  %v650_v61 = vmul.f32 %v4948_v5, %v5140_v49 }
  0xa2   : > { %1464 = vadd.xlane.f32.xlu0 %v1410_v3  ;;  %1342 = vadd.xlane.f32.xlu1 %v5218_v45  ;;  %v480_v62 = vadd.f32 %v4942_v54, %v441_v19  ;;  %v5247_v23 = vadd.f32 %v1252_v53, %v1183_v38  ;;  %v950_v37 = vmul.f32 %v4955_v21, %v5195_v28  ;;  %v3446_v38 = vld [vmem:[%s4221_s11 + $0x188] sm:$0xff] }
  0xa3   : > { %v1085_v12 = vadd.f32 %v1053_v26, %v983_v42  ;;  %v780_v6 = vadd.f32 %v748_v7, %v679_v55  ;;  %v1052_v3 = vmul.f32 %v5005_v32, %v5236_v24  ;;  %v751_v33 = vmul.f32 %v4968_v1, %v5169_v41  ;;  %v3479_v41 = vld [vmem:[%s4221_s11 + $0x189] sm:$0xff] }
  0xa4   : > { %v581_v10 = vadd.f32 %v549_v59, %v480_v62  ;;  %v440_v49 = vmul.f32 %v4913_v9, %v5239_v20  ;;  %v1153_v42 = vmul.f32 %v5012_v35, %v5239_v20  ;;  %v548_v26 = vmul.f32 %v4920_v4, %v5164_v27 }
  0xa5   : > { %v1186_v53 = vadd.f32 %v1154_v17, %v1085_v12  ;;  %v881_v19 = vadd.f32 %v849_v2, %v780_v6  ;;  %v852_v59 = vmul.f32 %v4987_v57, %v5198_v18  ;;  %v649_v17 = vmul.f32 %v4948_v5, %v5183_v51 }
  0xa6   : > { %1340 = vadd.xlane.f32.xlu0 %v5247_v23  ;;  %v682_v7 = vadd.f32 %v650_v61, %v581_v10  ;;  %v479_v55 = vadd.f32 %v4942_v54, %v440_v49  ;;  %v1254_v27 = vmul.f32 %v5027_v52, %v5254_v44  ;;  %v1413_v61 = vmul.f32 %v5218_v45, %v5218_v45 }
  0xa7   : > { %v5272_v2 = vadd.f32 %v1255_v14, %v1186_v53  ;;  %v982_v62 = vadd.f32 %v950_v37, %v881_v19  ;;  %v953_v6 = vmul.f32 %v4955_v21, %v5223_v11  ;;  %v750_v49 = vmul.f32 %v4968_v1, %v5195_v28  ;;  %v3445_v53 = vld [vmem:[%s4221_s11 + $0x180] sm:$0xff] }
  0xa8   : > { %v783_v12 = vadd.f32 %v751_v33, %v682_v7  ;;  %v580_v10 = vadd.f32 %v548_v26, %v479_v55  ;;  %v1055_v14 = vmul.f32 %v5005_v32, %v3446_v38  ;;  %v1156_v37 = vmul.f32 %v5012_v35, %v3479_v41  ;;  %v3512_v33 = vld [vmem:[%s4221_s11 + $0x18a] sm:$0xff] }
  0xa9   : > { %1346 = vadd.xlane.f32.xlu1 %v5272_v2  ;;  %v1084_v51 = vadd.f32 %v1052_v3, %v982_v62  ;;  %v443_v19 = vmul.f32 %v4913_v9, %v3479_v41  ;;  %v851_v30 = vmul.f32 %v4987_v57, %v5236_v24  ;;  %v551_v26 = vmul.f32 %v4920_v4, %v5198_v18  ;;  %v3478_v3 = vld [vmem:[%s4221_s11 + $0x181] sm:$0xff] }
  0xaa   : > { %v884_v45 = vadd.f32 %v852_v59, %v783_v12  ;;  %v681_v7 = vadd.f32 %v649_v17, %v580_v10  ;;  %v1257_v55 = vmul.f32 %v5027_v52, %v3512_v33  ;;  %v652_v40 = vmul.f32 %v4948_v5, %v5211_v58 }
  0xab   : > { %v1185_v28 = vadd.f32 %v1153_v42, %v1084_v51  ;;  %v482_v62 = vadd.f32 %v4942_v54, %v443_v19  ;;  %v952_v59 = vmul.f32 %v4955_v21, %v5254_v44  ;;  %v1054_v17 = vmul.f32 %v5005_v32, %v3445_v53 }
  0xac   : > { %v985_v0 = vadd.f32 %v953_v6, %v884_v45  ;;  %v782_v41 = vadd.f32 %v750_v49, %v681_v7  ;;  %v1415_v18 = vmul.f32 %v5272_v2, %v5272_v2  ;;  %v753_v10 = vmul.f32 %v4968_v1, %v5223_v11 }
  0xad   : > { %v5300_v12 = vadd.f32 %v1254_v27, %v1185_v28  ;;  %1470 = vadd.xlane.f32.xlu1 %v1413_v61  ;;  %v583_v42 = vadd.f32 %v551_v26, %v482_v62  ;;  %v442_v45 = vmul.f32 %v4913_v9, %v3478_v3  ;;  %v550_v6 = vmul.f32 %v4920_v4, %v5236_v24  ;;  %v3511_v28 = vld [vmem:[%s4221_s11 + $0x182] sm:$0xff] }
  0xae   : > { %v1087_v51 = vadd.f32 %v1055_v14, %v985_v0  ;;  %v883_v58 = vadd.f32 %v851_v30, %v782_v41  ;;  %v1412_v27 = vmul.f32 %v5247_v23, %v5247_v23  ;;  %v1155_v61 = vmul.f32 %v5012_v35, %v3478_v3  ;;  %v3448_v30 = vld [vmem:[%s4221_s11 + $0x1a0] sm:$0xff] }
  0xaf   : > { %1344 = vadd.xlane.f32.xlu0 %v5300_v12  ;;  %v684_v49 = vadd.f32 %v652_v40, %v583_v42  ;;  %v854_v19 = vmul.f32 %v4987_v57, %v3446_v38  ;;  %v481_v9 = vadd.f32 %v4942_v54, %v442_v45  ;;  %v651_v4 = vmul.f32 %v4948_v5, %v5239_v20  ;;  %v3481_v40 = vld [vmem:[%s4221_s11 + $0x1a1] sm:$0xff] }
  0xb0   : > { %v1188_v11 = vadd.f32 %v1156_v37, %v1087_v51  ;;  %v984_v0 = vadd.f32 %v952_v59, %v883_v58  ;;  %v955_v14 = vmul.f32 %v4955_v21, %v3512_v33  ;;  %v752_v37 = vmul.f32 %v4968_v1, %v5254_v44  ;;  %v3514_v3 = vld [vmem:[%s4221_s11 + $0x1a2] sm:$0xff]  ;;  %v3447_v44 = vld [vmem:[%s4221_s11 + $0x198] sm:$0xff] }
  0xb1   : > { %1474 = vadd.xlane.f32.xlu1 %v1415_v18  ;;  %v785_v24 = vadd.f32 %v753_v10, %v684_v49  ;;  %v582_v38 = vadd.f32 %v550_v6, %v481_v9  ;;  %v1414_v54 = vmul.f32 %v5300_v12, %v5300_v12  ;;  %v1256_v5 = vmul.f32 %v5027_v52, %v3511_v28  ;;  %v3480_v58 = vld [vmem:[%s4221_s11 + $0x199] sm:$0xff] }
  0xb2   : > { %v5319_v7 = vadd.f32 %v1257_v55, %v1188_v11  ;;  %v1086_v26 = vadd.f32 %v1054_v17, %v984_v0  ;;  %v1057_v33 = vmul.f32 %v5005_v32, %v3448_v30  ;;  %v853_v41 = vmul.f32 %v4987_v57, %v3445_v53  ;;  %v3513_v53 = vld [vmem:[%s4221_s11 + $0x19a] sm:$0xff] }
  0xb3   : > { %1468 = vadd.xlane.f32.xlu0 %v1412_v27  ;;  %v886_v20 = vadd.f32 %v854_v19, %v785_v24  ;;  %v683_v62 = vadd.f32 %v651_v4, %v582_v38  ;;  %v1158_v1 = vmul.f32 %v5012_v35, %v3481_v40  ;;  %v954_v18 = vmul.f32 %v4955_v21, %v3511_v28 }
  0xb4   : > { %v1187_v55 = vadd.f32 %v1155_v61, %v1086_v26  ;;  %v1259_v51 = vmul.f32 %v5027_v52, %v3514_v3  ;;  %v1056_v6 = vmul.f32 %v5005_v32, %v3447_v44  ;;  %v1157_v61 = vmul.f32 %v5012_v35, %v3480_v58 }
  0xb5   : > { %1350 = vadd.xlane.f32.xlu1 %v5319_v7  ;;  %v987_v59 = vadd.f32 %v955_v14, %v886_v20  ;;  %v784_v17 = vadd.f32 %v752_v37, %v683_v62  ;;  %v1258_v19 = vmul.f32 %v5027_v52, %v3513_v53  ;;  %v1417_v11 = vmul.f32 %v5319_v7, %v5319_v7 }
  0xb6   : > { %v5335_v42 = vadd.f32 %v1256_v5, %v1187_v55 }
  0xb7   : > { %1472 = vadd.xlane.f32.xlu0 %v1414_v54  ;;  %v1089_v10 = vadd.f32 %v1057_v33, %v987_v59  ;;  %v885_v45 = vadd.f32 %v853_v41, %v784_v17 }
  0xb8   : > { %v1416_v35 = vmul.f32 %v5335_v42, %v5335_v42 }
  0xb9   : > { %v1190_v57 = vadd.f32 %v1158_v1, %v1089_v10  ;;  %v986_v27 = vadd.f32 %v954_v18, %v885_v45 }
  0xbb   : > { %1348 = vadd.xlane.f32.xlu0 %v5335_v42  ;;  %v5343_v49 = vadd.f32 %v1259_v51, %v1190_v57  ;;  %v1088_v21 = vadd.f32 %v1056_v6, %v986_v27 }
  0xbd   : > { %1354 = vadd.xlane.f32.xlu1 %v5343_v49  ;;  %v1189_v0 = vadd.f32 %v1157_v61, %v1088_v21  ;;  %v1419_v32 = vmul.f32 %v5343_v49, %v5343_v49 }
  0xbf   : > { %v5349_v30 = vadd.f32 %v1258_v19, %v1189_v0 }
  0xc0   : > { %v1297_v9 = vpop.xlane.xlu1 %1296  ;;  %v1293_v4 = vpop.xlane.xlu0 %1292 }
  0xc1   : > { %1478 = vadd.xlane.f32.xlu1 %v1417_v11  ;;  %1352 = vadd.xlane.f32.xlu0 %v5349_v30  ;;  %v1418_v52 = vmul.f32 %v5349_v30, %v5349_v30  ;;  %v5360_v55 = vmul.f32 0.25, %v1293_v4  ;;  %v5366_v18 = vmul.f32 0.25, %v1297_v9 }
  0xc3   : > { %v1516_v10 = vmul.f32 %v5360_v55, %v5360_v55  ;;  %v1518_v19 = vmul.f32 %v5366_v18, %v5366_v18 }
  0xc4   : > { %v1299_v24 = vpop.xlane.xlu1 %1298 }
  0xc5   : > { %1482 = vadd.xlane.f32.xlu1 %v1419_v32  ;;  %1476 = vadd.xlane.f32.xlu0 %v1416_v35  ;;  %v5358_v54 = vmul.f32 0.25, %v1299_v24 }
  0xc7   : > { %v1295_v14 = vpop.xlane.xlu0 %1294  ;;  %v1519_v41 = vmul.f32 %v5358_v54, %v5358_v54 }
  0xc8   : > { %v1357_v38 = vmul.f32 0.25, %v1295_v14 }
  0xc9   : > { %1480 = vadd.xlane.f32.xlu0 %v1418_v52 }
  0xca   : > { %v1517_v5 = vmul.f32 %v1357_v38, %v1357_v38 }
  0xcb   : > { %v1303_v26 = vpop.xlane.xlu1 %1302 }
  0xcc   : > { %v5364_v59 = vmul.f32 0.25, %v1303_v26 }
  0xce   : > { %v1521_v57 = vmul.f32 %v5364_v59, %v5364_v59 }
  0xd0   : > { %v1301_v28 = vpop.xlane.xlu0 %1300 }
  0xd1   : > { %v5376_v11 = vmul.f32 0.25, %v1301_v28 }
  0xd6   : > { %v1307_v40 = vpop.xlane.xlu1 %1306 }
  0xd7   : > { %v5372_v53 = vmul.f32 0.25, %v1307_v40  ;;  %v1520_v40 = vmul.f32 %v5376_v11, %v5376_v11 }
  0xd9   : > { %v1523_v4 = vmul.f32 %v5372_v53, %v5372_v53 }
  0xda   : > { %v1423_v37 = vpop.xlane.xlu1 %1422 }
  0xdb   : > { %v1305_v20 = vpop.xlane.xlu0 %1304  ;;  %v1485_v33 = vmul.f32 0.25, %v1423_v37 }
  0xdc   : > { %v5382_v37 = vmul.f32 0.25, %v1305_v20  ;;  %v5390_v20 = vld [vmem:[%s6792_s3] ss:$0 sm:$0xff] }
  0xdd   : > { %v1549_v3 = vsub.f32 %v1485_v33, %v1517_v5 }
  0xde   : > { %v1427_v62 = vpop.xlane.xlu1 %1426 }
  0xdf   : > { %v1613_v1 = vadd.f32 1e-06, %v1549_v3  ;;  %v1421_v44 = vpop.xlane.xlu0 %1420  ;;  %v1487_v17 = vmul.f32 0.25, %v1427_v62  ;;  %v1581_v3 = vsub.f32 %v4408_v43, %v1357_v38  ;;  %v1583_v43 = vsub.f32 %v4383_v25, %v5358_v54 }
  0xe0   : > { %v1484_v51 = vmul.f32 0.25, %v1421_v44  ;;  %v1582_v54 = vsub.f32 %v4354_v50, %v5366_v18 }
  0xe1   : > { %3762 = vrsqrt.f32 %v1613_v1  ;;  %v1551_v58 = vsub.f32 %v1487_v17, %v1519_v41 }
  0xe2   : > { %v1548_v45 = vsub.f32 %v1484_v51, %v1516_v10  ;;  %v1431_v6 = vpop.xlane.xlu1 %1430  ;;  %v1522_v10 = vmul.f32 %v5382_v37, %v5382_v37 }
  0xe3   : > { %v1615_v27 = vadd.f32 1e-06, %v1551_v58  ;;  %v1425_v61 = vpop.xlane.xlu0 %1424  ;;  %v1489_v21 = vmul.f32 0.25, %v1431_v6 }
  0xe4   : > { %v1612_v0 = vadd.f32 1e-06, %v1548_v45  ;;  %v1486_v32 = vmul.f32 0.25, %v1425_v61 }
  0xe5   : > { %3764 = vrsqrt.f32 %v1615_v27  ;;  %v1553_v35 = vsub.f32 %v1489_v21, %v1521_v57  ;;  %v1580_v27 = vsub.f32 %v4360_v47, %v5360_v55  ;;  %v1585_v47 = vsub.f32 %v4449_v56, %v5364_v59 }
  0xe6   : > { %3766 = vrsqrt.f32 %v1612_v0  ;;  %v1550_v9 = vsub.f32 %v1486_v32, %v1518_v19  ;;  %v1435_v52 = vpop.xlane.xlu1 %1434  ;;  %v1584_v59 = vsub.f32 %v4482_v48, %v5376_v11 }
  0xe7   : > { %v1617_v24 = vadd.f32 1e-06, %v1553_v35  ;;  %v1429_v14 = vpop.xlane.xlu0 %1428  ;;  %v1491_v26 = vmul.f32 0.25, %v1435_v52  ;;  %v5402_v35 = vld [vmem:[%s6793_s4] ss:$0 sm:$0xff] }
  0xe8   : > { %v1614_v28 = vadd.f32 1e-06, %v1550_v9  ;;  %v1488_v5 = vmul.f32 0.25, %v1429_v14 }
  0xe9   : > { %3768 = vrsqrt.f32 %v1617_v24  ;;  %v1555_v33 = vsub.f32 %v1491_v26, %v1523_v4 }
  0xea   : > { %3770 = vrsqrt.f32 %v1614_v28  ;;  %v1552_v62 = vsub.f32 %v1488_v5, %v1520_v40  ;;  %v1311_v41 = vpop.xlane.xlu1 %1310 }
  0xeb   : > { %v3763_v1 = vpop.eup %3762  ;;  %v1619_v44 = vadd.f32 1e-06, %v1555_v33  ;;  %v1433_v17 = vpop.xlane.xlu0 %1432  ;;  %v5396_v61 = vmul.f32 0.25, %v1311_v41  ;;  %v1587_v41 = vsub.f32 %v4527_v22, %v5372_v53 }
  0xec   : > { %v1616_v51 = vadd.f32 1e-06, %v1552_v62  ;;  %v1490_v58 = vmul.f32 0.25, %v1433_v17  ;;  %v1677_v45 = vmul.f32 %v3763_v1, %v1581_v3 }
  0xed   : > { %3772 = vrsqrt.f32 %v1619_v44  ;;  %v1525_v14 = vmul.f32 %v5396_v61, %v5396_v61 }
  0xee   : > { %3774 = vrsqrt.f32 %v1616_v51  ;;  %v1554_v38 = vsub.f32 %v1490_v58, %v1522_v10  ;;  %v1315_v6 = vpop.xlane.xlu1 %1314  ;;  %v1716_v19 = vmul.f32 %v5390_v20, %v1677_v45 }
  0xef   : > { %v3765_v57 = vpop.eup %3764  ;;  %v1309_v21 = vpop.xlane.xlu0 %1308  ;;  %v5408_v55 = vmul.f32 0.25, %v1315_v6 }
  0xf0   : > { %v3767_v0 = vpop.eup %3766  ;;  %v1618_v32 = vadd.f32 1e-06, %v1554_v38  ;;  %v1679_v25 = vmul.f32 %v3765_v57, %v1583_v43  ;;  %v1755_v50 = vadd.f32 %v5402_v35, %v1716_v19  ;;  %v5415_v5 = vmul.f32 0.25, %v1309_v21 }
  0xf1   : > { %v1676_v9 = vmul.f32 %v3767_v0, %v1580_v27  ;;  %v1527_v1 = vmul.f32 %v5408_v55, %v5408_v55  ;;  %v1586_v0 = vsub.f32 %v4562_v34, %v5382_v37 }
  0xf2   : > { %3776 = vrsqrt.f32 %v1618_v32  ;;  %v1439_v52 = vpop.xlane.xlu1 %1438  ;;  %v1718_v4 = vmul.f32 %v5390_v20, %v1679_v25  ;;  %v1524_v6 = vmul.f32 %v5415_v5, %v5415_v5 }
  0xf3   : > { %v3769_v24 = vpop.eup %3768  ;;  %v1313_v26 = vpop.xlane.xlu0 %1312  ;;  %v1493_v40 = vmul.f32 0.25, %v1439_v52  ;;  %v1715_v28 = vmul.f32 %v5390_v20, %v1676_v9 }
  0xf4   : > { %v3771_v18 = vpop.eup %3770  ;;  %v1681_v56 = vmul.f32 %v3769_v24, %v1585_v47  ;;  %v1757_v17 = vadd.f32 %v5402_v35, %v1718_v4  ;;  %v5429_v22 = vmul.f32 0.25, %v1313_v26 }
  0xf5   : > { %v1557_v33 = vsub.f32 %v1493_v40, %v1525_v14  ;;  %v1754_v3 = vadd.f32 %v5402_v35, %v1715_v28  ;;  %v1678_v62 = vmul.f32 %v3771_v18, %v1582_v54 }
  0xf6   : > { %v1443_v44 = vpop.xlane.xlu1 %1442  ;;  %v1720_v10 = vmul.f32 %v5390_v20, %v1681_v56  ;;  %v1526_v14 = vmul.f32 %v5429_v22, %v5429_v22 }
  0xf7   : > { %v3773_v51 = vpop.eup %3772  ;;  %v1621_v58 = vadd.f32 1e-06, %v1557_v33  ;;  %v1437_v45 = vpop.xlane.xlu0 %1436  ;;  %v1786_v43 = vpack.c.bf16 %v1755_v50, %v1754_v3  ;;  %v1495_v48 = vmul.f32 0.25, %v1443_v44  ;;  %v1717_v11 = vmul.f32 %v5390_v20, %v1678_v62 }
  0xf8   : > { %v3775_v38 = vpop.eup %3774  ;;  %v1492_v53 = vmul.f32 0.25, %v1437_v45  ;;  %v1683_v57 = vmul.f32 %v3773_v51, %v1587_v41  ;;  %v1759_v4 = vadd.f32 %v5402_v35, %v1720_v10 }
  0xf9   : > { %3778 = vrsqrt.f32 %v1621_v58  ;;  %3607 = vmatprep.mubr.bf16.mxu0 %v1786_v43  ;;  %v1559_v27 = vsub.f32 %v1495_v48, %v1527_v1  ;;  %v1756_v21 = vadd.f32 %v5402_v35, %v1717_v11  ;;  %v1680_v19 = vmul.f32 %v3775_v38, %v1584_v59 }
  0xfa   : > { %v1556_v32 = vsub.f32 %v1492_v53, %v1524_v6  ;;  %v1319_v25 = vpop.xlane.xlu1 %1318  ;;  %v1722_v28 = vmul.f32 %v5390_v20, %v1683_v57  ;;  %v1589_v1 = vsub.f32 %v4639_v13, %v5396_v61  ;;  %v1588_v13 = vsub.f32 %v4665_v46, %v5415_v5 }
  0xfb   : > { %v1623_v54 = vadd.f32 1e-06, %v1559_v27  ;;  %v1441_v9 = vpop.xlane.xlu0 %1440  ;;  %v1787_v47 = vpack.c.bf16 %v1757_v17, %v1756_v21  ;;  %v1719_v52 = vmul.f32 %v5390_v20, %v1680_v19  ;;  %v5440_v56 = vmul.f32 0.25, %v1319_v25 }
  0xfc   : > { %v3777_v24 = vpop.eup %3776  ;;  %v1620_v26 = vadd.f32 1e-06, %v1556_v32  ;;  %v1494_v40 = vmul.f32 0.25, %v1441_v9  ;;  %v1761_v41 = vadd.f32 %v5402_v35, %v1722_v28  ;;  %v1591_v61 = vsub.f32 %v4692_v8, %v5408_v55 }
  0xfd   : > { %3780 = vrsqrt.f32 %v1623_v54  ;;  %3608 = vmatmul.mubr.bf16.vlgmr.msra.gmra.mrb[0].mxu0 %v1787_v47  ;;  %v1758_v34 = vadd.f32 %v5402_v35, %v1719_v52  ;;  %v1682_v18 = vmul.f32 %v3777_v24, %v1586_v0  ;;  %v1529_v51 = vmul.f32 %v5440_v56, %v5440_v56 }
  0xfe   : > { %3782 = vrsqrt.f32 %v1620_v26  ;;  %v1558_v37 = vsub.f32 %v1494_v40, %v1526_v14  ;;  %v1323_v50 = vpop.xlane.xlu1 %1322 }
  0xff   : > { %v1317_v59 = vpop.xlane.xlu0 %1316  ;;  %v1788_v33 = vpack.c.bf16 %v1759_v4, %v1758_v34  ;;  %v1721_v62 = vmul.f32 %v5390_v20, %v1682_v18  ;;  %v5449_v58 = vmul.f32 0.25, %v1323_v50  ;;  %v1590_v4 = vsub.f32 %v4734_v63, %v5429_v22 }
 0x100   : > { %v1622_v3 = vadd.f32 1e-06, %v1558_v37  ;;  %v5451_v48 = vmul.f32 0.25, %v1317_v59 }
 0x101   : > { %3611 = vmatprep.mubr.bf16.mxu0 %v1788_v33  ;;  %v1760_v44 = vadd.f32 %v5402_v35, %v1721_v62  ;;  %v1531_v27 = vmul.f32 %v5449_v58, %v5449_v58 }
 0x102   : > { %3784 = vrsqrt.f32 %v1622_v3  ;;  %v1447_v17 = vpop.xlane.xlu1 %1446  ;;  %v1528_v54 = vmul.f32 %v5451_v48, %v5451_v48 }
 0x103   : > { %v3779_v10 = vpop.eup %3778  ;;  %v1321_v45 = vpop.xlane.xlu0 %1320  ;;  %v1497_v43 = vmul.f32 0.25, %v1447_v17  ;;  %v1789_v11 = vpack.c.bf16 %v1761_v41, %v1760_v44 }
 0x104   : > { %v1685_v38 = vmul.f32 %v3779_v10, %v1589_v1  ;;  %v5462_v9 = vmul.f32 0.25, %v1321_v45  ;;  %v1593_v10 = vsub.f32 %v4785_v39, %v5440_v56  ;;  %v1592_v56 = vsub.f32 %v4818_v29, %v5451_v48 }
 0x105   : > { %v1561_v6 = vsub.f32 %v1497_v43, %v1529_v51  ;;  %3612 = vmatmul.mubr.bf16.gmra.mrb[4].mxu0 %v1789_v11 }
 0x106   : > { %v1451_v53 = vpop.xlane.xlu1 %1450  ;;  %v1724_v32 = vmul.f32 %v5390_v20, %v1685_v38  ;;  %v1530_v34 = vmul.f32 %v5462_v9, %v5462_v9 }
 0x107   : > { %v3781_v57 = vpop.eup %3780  ;;  %v1625_v21 = vadd.f32 1e-06, %v1561_v6  ;;  %v1445_v19 = vpop.xlane.xlu0 %1444  ;;  %v1499_v0 = vmul.f32 0.25, %v1451_v53 }
 0x108   : > { %v3783_v25 = vpop.eup %3782  ;;  %v1496_v46 = vmul.f32 0.25, %v1445_v19  ;;  %v1687_v5 = vmul.f32 %v3781_v57, %v1591_v61  ;;  %v1763_v40 = vadd.f32 %v5402_v35, %v1724_v32 }
 0x109   : > { %3786 = vrsqrt.f32 %v1625_v21  ;;  %v1563_v8 = vsub.f32 %v1499_v0, %v1531_v27  ;;  %v1684_v55 = vmul.f32 %v3783_v25, %v1588_v13  ;;  %v1595_v27 = vsub.f32 %v4824_v60, %v5449_v58 }
 0x10a   : > { %v1560_v47 = vsub.f32 %v1496_v46, %v1528_v54  ;;  %v1327_v52 = vpop.xlane.xlu1 %1326  ;;  %v1726_v18 = vmul.f32 %v5390_v20, %v1687_v5 }
 0x10b   : > { %v1627_v24 = vadd.f32 1e-06, %v1563_v8  ;;  %v1449_v14 = vpop.xlane.xlu0 %1448  ;;  %v1723_v26 = vmul.f32 %v5390_v20, %v1684_v55  ;;  %v5474_v17 = vmul.f32 0.25, %v1327_v52 }
 0x10c   : > { %v3785_v28 = vpop.eup %3784  ;;  %v1624_v37 = vadd.f32 1e-06, %v1560_v47  ;;  %v1498_v50 = vmul.f32 0.25, %v1449_v14  ;;  %v1765_v44 = vadd.f32 %v5402_v35, %v1726_v18 }
 0x10d   : > { %3788 = vrsqrt.f32 %v1627_v24  ;;  %v1762_v59 = vadd.f32 %v5402_v35, %v1723_v26  ;;  %v1686_v63 = vmul.f32 %v3785_v28, %v1590_v4  ;;  %v1533_v53 = vmul.f32 %v5474_v17, %v5474_v17 }
 0x10e   : > { %3790 = vrsqrt.f32 %v1624_v37  ;;  %v1562_v33 = vsub.f32 %v1498_v50, %v1530_v34  ;;  %v1594_v24 = vsub.f32 %v4857_v16, %v5462_v9 }
 0x10f   : > { %v1325_v22 = vpop.xlane.xlu0 %1324  ;;  %v1790_v3 = vpack.c.bf16 %v1763_v40, %v1762_v59  ;;  %v1331_v41 = vpop.xlane.xlu1 %1330  ;;  %v1725_v1 = vmul.f32 %v5390_v20, %v1686_v63 }
 0x110   : > { %v1626_v62 = vadd.f32 1e-06, %v1562_v33  ;;  %v5479_v43 = vmul.f32 0.25, %v1325_v22  ;;  %v5481_v11 = vmul.f32 0.25, %v1331_v41 }
 0x111   : > { %3615 = vmatprep.mubr.bf16.mxu0 %v1790_v3  ;;  %v1764_v51 = vadd.f32 %v5402_v35, %v1725_v1 }
 0x112   : > { %3792 = vrsqrt.f32 %v1626_v62  ;;  %v1532_v21 = vmul.f32 %v5479_v43, %v5479_v43  ;;  %v1535_v32 = vmul.f32 %v5481_v11, %v5481_v11 }
 0x113   : > { %v3787_v45 = vpop.eup %3786  ;;  %v1791_v6 = vpack.c.bf16 %v1765_v44, %v1764_v51  ;;  %v1455_v13 = vpop.xlane.xlu1 %1454  ;;  %v1597_v44 = vsub.f32 %v4927_v36, %v5474_v17  ;;  %v1599_v36 = vsub.f32 %v5016_v31, %v5481_v11 }
 0x114   : > { %v1329_v38 = vpop.xlane.xlu0 %1328  ;;  %v1689_v61 = vmul.f32 %v3787_v45, %v1593_v10  ;;  %v1501_v57 = vmul.f32 0.25, %v1455_v13 }
 0x115   : > { %3616 = vmatmul.mubr.bf16.gmra.mrb[8].mxu0 %v1791_v6  ;;  %v5493_v25 = vmul.f32 0.25, %v1329_v38 }
 0x116   : > { %v1565_v19 = vsub.f32 %v1501_v57, %v1533_v53  ;;  %v1728_v5 = vmul.f32 %v5390_v20, %v1689_v61  ;;  %v1596_v57 = vsub.f32 %v4980_v15, %v5479_v43 }
 0x117   : > { %v3789_v39 = vpop.eup %3788  ;;  %v1459_v46 = vpop.xlane.xlu1 %1458  ;;  %v1534_v28 = vmul.f32 %v5493_v25, %v5493_v25 }
 0x118   : > { %v3791_v0 = vpop.eup %3790  ;;  %v1453_v54 = vpop.xlane.xlu0 %1452  ;;  %v1691_v60 = vmul.f32 %v3789_v39, %v1595_v27  ;;  %v1629_v58 = vadd.f32 1e-06, %v1565_v19  ;;  %v1503_v55 = vmul.f32 0.25, %v1459_v46  ;;  %v1767_v26 = vadd.f32 %v5402_v35, %v1728_v5 }
 0x119   : > { %v1500_v8 = vmul.f32 0.25, %v1453_v54  ;;  %v1688_v47 = vmul.f32 %v3791_v0, %v1592_v56 }
 0x11a   : > { %3794 = vrsqrt.f32 %v1629_v58  ;;  %v1567_v48 = vsub.f32 %v1503_v55, %v1535_v32  ;;  %v1730_v40 = vmul.f32 %v5390_v20, %v1691_v60  ;;  %v6820_v55 = vld [vmem:[#allocation7_spill] sm:$0xff] }
 0x11b   : > { %v1564_v29 = vsub.f32 %v1500_v8, %v1532_v21  ;;  %v1727_v52 = vmul.f32 %v5390_v20, %v1688_v47  ;;  %v1335_v18 = vpop.xlane.xlu1 %1334  ;;  %v1598_v47 = vsub.f32 %v6820_v55, %v5493_v25 }
 0x11c   : > { %v3793_v4 = vpop.eup %3792  ;;  %v1457_v14 = vpop.xlane.xlu0 %1456  ;;  %v1631_v37 = vadd.f32 1e-06, %v1567_v48  ;;  %v1769_v9 = vadd.f32 %v5402_v35, %v1730_v40  ;;  %v1377_v10 = vmul.f32 0.25, %v1335_v18 }
 0x11d   : > { %v1628_v34 = vadd.f32 1e-06, %v1564_v29  ;;  %v1502_v50 = vmul.f32 0.25, %v1457_v14  ;;  %v1766_v59 = vadd.f32 %v5402_v35, %v1727_v52  ;;  %v1690_v33 = vmul.f32 %v3793_v4, %v1594_v24 }
 0x11e   : > { %v1537_v27 = vmul.f32 %v1377_v10, %v1377_v10 }
 0x11f   : > { %3796 = vrsqrt.f32 %v1628_v34  ;;  %v1566_v63 = vsub.f32 %v1502_v50, %v1534_v28  ;;  %v1792_v22 = vpack.c.bf16 %v1767_v26, %v1766_v59  ;;  %v1729_v16 = vmul.f32 %v5390_v20, %v1690_v33 }
 0x120   : > { %3798 = vrsqrt.f32 %v1631_v37  ;;  %v1333_v62 = vpop.xlane.xlu0 %1332 }
 0x121   : > { %v1630_v3 = vadd.f32 1e-06, %v1566_v63  ;;  %3619 = vmatprep.mubr.bf16.mxu0 %v1792_v22  ;;  %v1768_v41 = vadd.f32 %v5402_v35, %v1729_v16  ;;  %v5509_v6 = vmul.f32 0.25, %v1333_v62  ;;  %v6821_v62 = vld [vmem:[#allocation8_spill] sm:$0xff] }
 0x123   : > { %3800 = vrsqrt.f32 %v1630_v3  ;;  %v1339_v1 = vpop.xlane.xlu1 %1338  ;;  %v1793_v51 = vpack.c.bf16 %v1769_v9, %v1768_v41  ;;  %v1536_v32 = vmul.f32 %v5509_v6, %v5509_v6  ;;  %v1601_v41 = vsub.f32 %v6821_v62, %v1377_v10 }
 0x124   : > { %v3795_v45 = vpop.eup %3794  ;;  %v5511_v13 = vmul.f32 0.25, %v1339_v1 }
 0x125   : > { %3620 = vmatmul.mubr.bf16.gmra.mrb[12].mxu0 %v1793_v51  ;;  %v1693_v38 = vmul.f32 %v3795_v45, %v1597_v44  ;;  %v6822_v45 = vld [vmem:[#allocation9_spill] sm:$0xff] }
 0x126   : > { %v1539_v54 = vmul.f32 %v5511_v13, %v5511_v13 }
 0x127   : > { %v1337_v61 = vpop.xlane.xlu0 %1336  ;;  %v1463_v53 = vpop.xlane.xlu1 %1462  ;;  %v1732_v17 = vmul.f32 %v5390_v20, %v1693_v38  ;;  %v1600_v38 = vsub.f32 %v6822_v45, %v5509_v6 }
 0x128   : > { %v1505_v39 = vmul.f32 0.25, %v1463_v53  ;;  %v5522_v46 = vmul.f32 0.25, %v1337_v61 }
 0x129   : > { %v3797_v56 = vpop.eup %3796  ;;  %v1771_v29 = vadd.f32 %v5402_v35, %v1732_v17 }
 0x12a   : > { %v3799_v21 = vpop.eup %3798  ;;  %v1569_v19 = vsub.f32 %v1505_v39, %v1537_v27  ;;  %v1692_v0 = vmul.f32 %v3797_v56, %v1596_v57  ;;  %v1538_v40 = vmul.f32 %v5522_v46, %v5522_v46 }
 0x12b   : > { %v1461_v15 = vpop.xlane.xlu0 %1460  ;;  %v1467_v43 = vpop.xlane.xlu1 %1466  ;;  %v1695_v5 = vmul.f32 %v3799_v21, %v1599_v36  ;;  %v6823_v36 = vld [vmem:[#allocation10_spill] sm:$0xff] }
 0x12c   : > { %v1633_v60 = vadd.f32 1e-06, %v1569_v19  ;;  %v1504_v58 = vmul.f32 0.25, %v1461_v15  ;;  %v1507_v8 = vmul.f32 0.25, %v1467_v43  ;;  %v1731_v31 = vmul.f32 %v5390_v20, %v1692_v0 }
 0x12d   : > { %v3801_v11 = vpop.eup %3800  ;;  %v1734_v48 = vmul.f32 %v5390_v20, %v1695_v5  ;;  %v1603_v17 = vsub.f32 %v6823_v36, %v5511_v13 }
 0x12e   : > { %3802 = vrsqrt.f32 %v1633_v60  ;;  %v1568_v52 = vsub.f32 %v1504_v58, %v1536_v32  ;;  %v1571_v4 = vsub.f32 %v1507_v8, %v1539_v54  ;;  %v1770_v24 = vadd.f32 %v5402_v35, %v1731_v31  ;;  %v6824_v54 = vld [vmem:[#allocation11_spill] sm:$0xff] }
 0x12f   : > { %v1465_v14 = vpop.xlane.xlu0 %1464  ;;  %v1694_v26 = vmul.f32 %v3801_v11, %v1598_v47  ;;  %v1343_v50 = vpop.xlane.xlu1 %1342  ;;  %v1773_v59 = vadd.f32 %v5402_v35, %v1734_v48  ;;  %v1602_v6 = vsub.f32 %v6824_v54, %v5522_v46 }
 0x130   : > { %v1632_v28 = vadd.f32 1e-06, %v1568_v52  ;;  %v1635_v34 = vadd.f32 1e-06, %v1571_v4  ;;  %v1506_v37 = vmul.f32 0.25, %v1465_v14  ;;  %v1794_v18 = vpack.c.bf16 %v1771_v29, %v1770_v24 }
 0x131   : > { %v1733_v25 = vmul.f32 %v5390_v20, %v1694_v26  ;;  %v1381_v1 = vmul.f32 0.25, %v1343_v50 }
 0x132   : > { %3804 = vrsqrt.f32 %v1632_v28  ;;  %v1570_v33 = vsub.f32 %v1506_v37, %v1538_v40  ;;  %3623 = vmatprep.mubr.bf16.mxu0 %v1794_v18 }
 0x133   : > { %3806 = vrsqrt.f32 %v1635_v34  ;;  %v1772_v63 = vadd.f32 %v5402_v35, %v1733_v25  ;;  %v1341_v9 = vpop.xlane.xlu0 %1340  ;;  %v1541_v53 = vmul.f32 %v1381_v1, %v1381_v1 }
 0x134   : > { %v1634_v22 = vadd.f32 1e-06, %v1570_v33  ;;  %v5538_v57 = vmul.f32 0.25, %v1341_v9  ;;  %v6825_v9 = vld [vmem:[#allocation12_spill] sm:$0xff] }
 0x135   : > { %v1795_v16 = vpack.c.bf16 %v1773_v59, %v1772_v63 }
 0x136   : > { %3808 = vrsqrt.f32 %v1634_v22  ;;  %v1347_v3 = vpop.xlane.xlu1 %1346  ;;  %v1540_v5 = vmul.f32 %v5538_v57, %v5538_v57 }
 0x137   : > { %3624 = vmatmul.mubr.bf16.gmra.mrb[16].mxu0 %v1795_v16  ;;  %v5540_v27 = vmul.f32 0.25, %v1347_v3  ;;  %v1605_v3 = vsub.f32 %v6825_v9, %v1381_v1 }
 0x138   : > { %v3803_v44 = vpop.eup %3802 }
 0x139   : > { %v1697_v51 = vmul.f32 %v3803_v44, %v1601_v41  ;;  %v1543_v60 = vmul.f32 %v5540_v27, %v5540_v27  ;;  %v1607_v45 = vsub.f32 %v5272_v2, %v5540_v27 }
 0x13a   : > { %v1471_v61 = vpop.xlane.xlu1 %1470 }
 0x13b   : > { %v1509_v39 = vmul.f32 0.25, %v1471_v61  ;;  %v1736_v10 = vmul.f32 %v5390_v20, %v1697_v51 }
 0x13c   : > { %v3805_v56 = vpop.eup %3804  ;;  %v1345_v21 = vpop.xlane.xlu0 %1344 }
 0x13d   : > { %v3807_v19 = vpop.eup %3806  ;;  %v1573_v0 = vsub.f32 %v1509_v39, %v1541_v53  ;;  %v1696_v32 = vmul.f32 %v3805_v56, %v1600_v38  ;;  %v5551_v31 = vmul.f32 0.25, %v1345_v21  ;;  %v1775_v47 = vadd.f32 %v5402_v35, %v1736_v10 }
 0x13e   : > { %v1475_v15 = vpop.xlane.xlu1 %1474  ;;  %v1699_v43 = vmul.f32 %v3807_v19, %v1603_v17  ;;  %v1604_v17 = vsub.f32 %v5247_v23, %v5538_v57 }
 0x13f   : > { %v1637_v58 = vadd.f32 1e-06, %v1573_v0  ;;  %v1511_v8 = vmul.f32 0.25, %v1475_v15  ;;  %v1735_v55 = vmul.f32 %v5390_v20, %v1696_v32  ;;  %v1542_v50 = vmul.f32 %v5551_v31, %v5551_v31 }
 0x140   : > { %v3809_v13 = vpop.eup %3808  ;;  %v1469_v11 = vpop.xlane.xlu0 %1468  ;;  %v1738_v46 = vmul.f32 %v5390_v20, %v1699_v43  ;;  %v1606_v32 = vsub.f32 %v5300_v12, %v5551_v31 }
 0x141   : > { %3810 = vrsqrt.f32 %v1637_v58  ;;  %v1508_v29 = vmul.f32 0.25, %v1469_v11  ;;  %v1575_v48 = vsub.f32 %v1511_v8, %v1543_v60  ;;  %v1698_v52 = vmul.f32 %v3809_v13, %v1602_v6 }
 0x142   : > { %v1774_v4 = vadd.f32 %v5402_v35, %v1735_v55  ;;  %v1351_v28 = vpop.xlane.xlu1 %1350  ;;  %v1777_v37 = vadd.f32 %v5402_v35, %v1738_v46 }
 0x143   : > { %v1572_v24 = vsub.f32 %v1508_v29, %v1540_v5  ;;  %v1639_v14 = vadd.f32 1e-06, %v1575_v48  ;;  %v1737_v26 = vmul.f32 %v5390_v20, %v1698_v52  ;;  %v1385_v44 = vmul.f32 0.25, %v1351_v28 }
 0x144   : > { %v1473_v40 = vpop.xlane.xlu0 %1472  ;;  %v1796_v34 = vpack.c.bf16 %v1775_v47, %v1774_v4 }
 0x145   : > { %v1636_v18 = vadd.f32 1e-06, %v1572_v24  ;;  %3812 = vrsqrt.f32 %v1639_v14  ;;  %v1510_v25 = vmul.f32 0.25, %v1473_v40  ;;  %v1776_v59 = vadd.f32 %v5402_v35, %v1737_v26 }
 0x146   : > { %3627 = vmatprep.mubr.bf16.mxu0 %v1796_v34  ;;  %v1545_v39 = vmul.f32 %v1385_v44, %v1385_v44 }
 0x147   : > { %3814 = vrsqrt.f32 %v1636_v18  ;;  %v1574_v33 = vsub.f32 %v1510_v25, %v1542_v50  ;;  %v1797_v63 = vpack.c.bf16 %v1777_v37, %v1776_v59  ;;  %v1609_v37 = vsub.f32 %v5319_v7, %v1385_v44 }
 0x148   : > { %v1349_v16 = vpop.xlane.xlu0 %1348 }
 0x149   : > { %v1638_v22 = vadd.f32 1e-06, %v1574_v33  ;;  %3628 = vmatmul.mubr.bf16.gmra.mrb[20].mxu0 %v1797_v63  ;;  %v1384_v21 = vmul.f32 0.25, %v1349_v16 }
 0x14a   : > { %v1355_v62 = vpop.xlane.xlu1 %1354 }
 0x14b   : > { %v3811_v41 = vpop.eup %3810  ;;  %3816 = vrsqrt.f32 %v1638_v22  ;;  %v1387_v38 = vmul.f32 0.25, %v1355_v62  ;;  %v1544_v58 = vmul.f32 %v1384_v21, %v1384_v21  ;;  %v1608_v33 = vsub.f32 %v5335_v42, %v1384_v21  ;;  %v3761_v21 = vld [vmem:[%s6796_s7 + $0x38] sm:$0xff]  }
 0x14c   : > { %v1701_v51 = vmul.f32 %v3811_v41, %v1605_v3 }
 0x14d   : > { %v1547_v54 = vmul.f32 %v1387_v38, %v1387_v38  ;;  %v1611_v25 = vsub.f32 %v5343_v49, %v1387_v38 }
 0x14e   : > { %v1479_v61 = vpop.xlane.xlu1 %1478  ;;  %v1353_v56 = vpop.xlane.xlu0 %1352  ;;  %v1740_v1 = vmul.f32 %v5390_v20, %v1701_v51 }
 0x14f   : > { %v3813_v53 = vpop.eup %3812  ;;  %v1513_v36 = vmul.f32 0.25, %v1479_v61  ;;  %v1386_v6 = vmul.f32 0.25, %v1353_v56  ;;  %v3758_v56 = vld [vmem:[%s6796_s7 + $0x20] sm:$0xff]  }
 0x150   : > { %v1703_v10 = vmul.f32 %v3813_v53, %v1607_v45  ;;  %v1779_v8 = vadd.f32 %v5402_v35, %v1740_v1  ;;  %v5616_v1 = vld [vmem:[%s6795_s6] ss:$0 sm:$0xff] }
 0x151   : > { %v3815_v19 = vpop.eup %3814  ;;  %v1577_v0 = vsub.f32 %v1513_v36, %v1545_v39  ;;  %v1546_v47 = vmul.f32 %v1386_v6, %v1386_v6  ;;  %v1610_v3 = vsub.f32 %v5349_v30, %v1386_v6  ;;  %v3754_v30 = vld [vmem:[%s6796_s7] sm:$0xff]   ;;  %v3755_v39 = vld [vmem:[%s6796_s7 + $0x8] sm:$0xff]  }
 0x152   : > { %v1483_v2 = vpop.xlane.xlu1 %1482  ;;  %v1700_v27 = vmul.f32 %v3815_v19, %v1604_v17  ;;  %v1477_v43 = vpop.xlane.xlu0 %1476  ;;  %v1742_v60 = vmul.f32 %v5390_v20, %v1703_v10  ;;  %3639 = vmatprep.subr.bf16.mxu1 %v3754_v30  ;;  %v3759_v36 = vld [vmem:[%s6796_s7 + $0x28] sm:$0xff]   ;;  %v3760_v17 = vld [vmem:[%s6796_s7 + $0x30] sm:$0xff]  }
 0x153   : > { %v1641_v15 = vadd.f32 1e-06, %v1577_v0  ;;  %v1515_v5 = vmul.f32 0.25, %v1483_v2  ;;  %v1512_v23 = vmul.f32 0.25, %v1477_v43  ;;  %3640 = vmatpush3.bf16.msra.mxu1 %v3754_v30 }
 0x154   : > { %v1739_v57 = vmul.f32 %v5390_v20, %v1700_v27  ;;  %v1781_v48 = vadd.f32 %v5402_v35, %v1742_v60  ;;  %3641 = vmatprep.subr.bf16.mxu1 %v3755_v39 }
 0x155   : > { %v3817_v13 = vpop.eup %3816  ;;  %3818 = vrsqrt.f32 %v1641_v15  ;;  %v1579_v11 = vsub.f32 %v1515_v5, %v1547_v54  ;;  %v1576_v55 = vsub.f32 %v1512_v23, %v1544_v58 }
 0x156   : > { %v1778_v12 = vadd.f32 %v5402_v35, %v1739_v57  ;;  %v1702_v31 = vmul.f32 %v3817_v13, %v1606_v32  ;;  %v1481_v29 = vpop.xlane.xlu0 %1480 }
 0x157   : > { %v1643_v46 = vadd.f32 1e-06, %v1579_v11  ;;  %v1640_v52 = vadd.f32 1e-06, %v1576_v55  ;;  %v1514_v4 = vmul.f32 0.25, %v1481_v29  ;;  %3642 = vmatpush3.bf16.msra.mxu1 %v3755_v39 }
 0x158   : > { %v1798_v24 = vpack.c.bf16 %v1779_v8, %v1778_v12  ;;  %v1741_v14 = vmul.f32 %v5390_v20, %v1702_v31 }
 0x159   : > { %3820 = vrsqrt.f32 %v1643_v46  ;;  %v1578_v26 = vsub.f32 %v1514_v4, %v1546_v47 }
 0x15a   : > { %3822 = vrsqrt.f32 %v1640_v52  ;;  %3631 = vmatprep.mubr.bf16.mxu0 %v1798_v24  ;;  %v1780_v40 = vadd.f32 %v5402_v35, %v1741_v14 }
 0x15b   : > { %v1642_v28 = vadd.f32 1e-06, %v1578_v26 }
 0x15c   : > { %v1799_v34 = vpack.c.bf16 %v1781_v48, %v1780_v40 }
 0x15d   : > { %3824 = vrsqrt.f32 %v1642_v28 }
 0x15e   : > { %3632 = vmatmul.mubr.bf16.gmra.mrb[24].mxu0 %v1799_v34 }
 0x15f   : > { %v3819_v50 = vpop.eup %3818 }
 0x160   : > { %v1705_v18 = vmul.f32 %v3819_v50, %v1609_v37 }
 0x162   : > { %v1744_v63 = vmul.f32 %v5390_v20, %v1705_v18 }
 0x163   : > { %v3821_v59 = vpop.eup %3820 }
 0x164   : > { %v3823_v22 = vpop.eup %3822  ;;  %v1707_v16 = vmul.f32 %v3821_v59, %v1611_v25  ;;  %v1783_v7 = vadd.f32 %v5402_v35, %v1744_v63 }
 0x165   : > { %v1704_v9 = vmul.f32 %v3823_v22, %v1608_v33 }
 0x166   : > { %v1746_v41 = vmul.f32 %v5390_v20, %v1707_v16 }
 0x167   : > { %v1743_v62 = vmul.f32 %v5390_v20, %v1704_v9  ;;  %v3825_v44 = vpop.eup %3824 }
 0x168   : > { %v1706_v49 = vmul.f32 %v3825_v44, %v1610_v3  ;;  %v1785_v38 = vadd.f32 %v5402_v35, %v1746_v41 }
 0x169   : > { %v1782_v51 = vadd.f32 %v5402_v35, %v1743_v62 }
 0x16a   : > { %v1745_v42 = vmul.f32 %v5390_v20, %v1706_v49  ;;  %v3756_v20 = vld [vmem:[%s6796_s7 + $0x10] sm:$0xff]  }
 0x16b   : > { %v1800_v45 = vpack.c.bf16 %v1783_v7, %v1782_v51  ;;  %3643 = vmatprep.subr.bf16.mxu1 %v3756_v20 }
 0x16c   : > { %v1784_v61 = vadd.f32 %v5402_v35, %v1745_v42  ;;  %3644 = vmatpush3.bf16.msra.mxu1 %v3756_v20  ;;  %v3757_v35 = vld [vmem:[%s6796_s7 + $0x18] sm:$0xff]  }
 0x16d   : > { %3635 = vmatprep.mubr.bf16.mxu0 %v1800_v45  ;;  %3645 = vmatprep.subr.bf16.mxu1 %v3757_v35 }
 0x16e   : > { %v1801_v53 = vpack.c.bf16 %v1785_v38, %v1784_v61 }
 0x170   : > { %3636 = vmatmul.mubr.bf16.gmra.mrb[28].mxu0 %v1801_v53  ;;  %3646 = vmatpush3.bf16.msra.mxu1 %v3757_v35 }
 0x171   : > { %3647 = vmatprep.subr.bf16.mxu1 %v3758_v56 }
 0x174   : > { %3648 = vmatpush3.bf16.msra.mxu1 %v3758_v56  ;;  %v6808_v56 = vmov -1.0  }
 0x175   : > { %3649 = vmatprep.subr.bf16.mxu1 %v3759_v36 }
 0x178   : > { %3650 = vmatpush3.bf16.msra.mxu1 %v3759_v36 }
 0x179   : > { %3651 = vmatprep.subr.bf16.mxu1 %v3760_v17 }
 0x17c   : > { %3652 = vmatpush3.bf16.msra.mxu1 %v3760_v17 }
 0x17d   : > { %3653 = vmatprep.subr.bf16.mxu1 %v3761_v21 }
 0x180   : > { %3654 = vmatpush3.bf16.msra.mxu1 %v3761_v21 }
 0x1d0   : > { %v3609_v10 = vpop.f32.mrb[0].mxu0 }
 0x1d1   : > { %v1916_v19 = vadd.f32 %v3609_v10, %v5616_v1  ;;  %v1907_v0 = vpop.f32.mrb[1].mxu0 }
 0x1d2   : > { %v1908_v32 = vadd.f32 %v5616_v1, %v1907_v0  ;;  %v3610_v54 = vpop.f32.mrb[2].mxu0 }
 0x1d3   : > { %v5620_v2 = vmul.f32 0.70710677, %v1916_v19  ;;  %v5623_v27 = vadd.f32 %v3610_v54, %v5616_v1  ;;  %v1910_v6 = vpop.f32.mrb[3].mxu0  ;;  %v5655_v33 = vmul.f32 0.5, %v1916_v19 }
 0x1d4   : > { %v5626_v43 = vmul.f32 0.70710677, %v1908_v32  ;;  %v1911_v11 = vadd.f32 %v5616_v1, %v1910_v6  ;;  %v5670_v61 = vmul.f32 0.5, %v1908_v32 }
 0x1d5   : > { %v2132_v15 = vand.u32 2147483647, %v5620_v2  ;;  %v2037_v5 = vmul.f32 0.70710677, %v5623_v27  ;;  %vm2068_vm0 = vcmp.ge.f32.partialorder %v5620_v2, 0.0  ;;  %v5687_v21 = vmul.f32 0.5, %v5623_v27 }
 0x1d6   : > { %v2130_v57 = vand.u32 2147483647, %v5626_v43  ;;  %v5635_v4 = vmul.f32 0.70710677, %v1911_v11  ;;  %v5680_v36 = vsel %vm2068_vm0, 1.0, %v6808_v56  ;;  %vm2066_vm5 = vcmp.ge.f32.partialorder %v5626_v43, 0.0 }
 0x1d7   : > { %v2164_v60 = vmul.f32 0.3275911, %v2132_v15  ;;  %v2133_v58 = vand.u32 2147483647, %v2037_v5  ;;  %v2548_v47 = vsub.f32 0.0, %v2132_v15  ;;  %vm2069_vm1 = vcmp.ge.f32.partialorder %v2037_v5, 0.0 }
 0x1d8   : > { %v3613_v13 = vpop.f32.mrb[4].mxu0  ;;  %v2162_v29 = vmul.f32 0.3275911, %v2130_v57  ;;  %v2546_v14 = vsub.f32 0.0, %v2130_v57  ;;  %v2131_v25 = vand.u32 2147483647, %v5635_v4 }
 0x1d9   : > { %v2196_v23 = vadd.f32 1.0, %v2164_v60  ;;  %v2165_v8 = vmul.f32 0.3275911, %v2133_v58  ;;  %v1923_v55 = vpop.f32.mrb[5].mxu0  ;;  %v1932_v48 = vadd.f32 %v3613_v13, %v5616_v1  ;;  %v2580_v28 = vmul.f32 %v2548_v47, %v2132_v15 }
 0x1da   : > { %v3614_v31 = vpop.f32.mrb[6].mxu0  ;;  %v5633_v52 = vadd.f32 %v5616_v1, %v1923_v55  ;;  %v2194_v37 = vadd.f32 1.0, %v2162_v29  ;;  %v2549_v50 = vsub.f32 0.0, %v2133_v58  ;;  %v2578_v63 = vmul.f32 %v2546_v14, %v2130_v57 }
 0x1db   : > { %3826 = vrcp.f32 %v2196_v23  ;;  %v2197_v12 = vadd.f32 1.0, %v2165_v8  ;;  %v1926_v46 = vpop.f32.mrb[7].mxu0  ;;  %v5638_v24 = vadd.f32 %v3614_v31, %v5616_v1  ;;  %v5640_v26 = vmul.f32 0.70710677, %v1932_v48 }
 0x1dc   : > { %v5643_v40 = vmul.f32 0.70710677, %v5633_v52  ;;  %v2614_v9 = vmul.f32 1.442695, %v2580_v28  ;;  %v2581_v7 = vmul.f32 %v2549_v50, %v2133_v58  ;;  %v2547_v49 = vsub.f32 0.0, %v2131_v25 }
 0x1dd   : > { %3828 = vrcp.f32 %v2197_v12  ;;  %v5646_v34 = vmul.f32 0.70710677, %v5638_v24  ;;  %v5649_v18 = vand.u32 2147483647, %v5640_v26  ;;  %v5668_v42 = vadd.f32 %v5616_v1, %v1926_v46 }
 0x1de   : > { %v5653_v59 = vand.u32 2147483647, %v5643_v40  ;;  %3830 = vrcp.f32 %v2194_v37  ;;  %v2610_v38 = vmul.f32 1.442695, %v2578_v63  ;;  %v2163_v39 = vmul.f32 0.3275911, %v2131_v25 }
 0x1df   : > { %v2168_v22 = vmul.f32 0.3275911, %v5649_v18  ;;  %v5659_v16 = vand.u32 2147483647, %v5646_v34  ;;  %v5673_v20 = vmul.f32 0.70710677, %v5668_v42  ;;  %v2579_v54 = vmul.f32 %v2547_v49, %v2131_v25 }
 0x1e0   : > { %v2166_v3 = vmul.f32 0.3275911, %v5653_v59  ;;  %v5684_v17 = vsel %vm2069_vm1, 1.0, %v6808_v56  ;;  %v2616_v32 = vmul.f32 1.442695, %v2581_v7  ;;  %v5691_v15 = vmul.f32 0.5, %v1911_v11 }
 0x1e1   : > { %v2200_v41 = vadd.f32 1.0, %v2168_v22  ;;  %v2169_v44 = vmul.f32 0.3275911, %v5659_v16  ;;  %v5694_v2 = vand.u32 2147483647, %v5673_v20  ;;  %v2195_v23 = vadd.f32 1.0, %v2163_v39 }
 0x1e2   : > { %v2198_v45 = vadd.f32 1.0, %v2166_v3  ;;  %v5701_v8 = vmul.f32 0.5, %v1932_v48  ;;  %v2612_v31 = vmul.f32 1.442695, %v2579_v54  ;;  %v2552_v47 = vsub.f32 0.0, %v5649_v18 }
 0x1e3   : > { %3832 = vrcp.f32 %v2200_v41  ;;  %v2201_v53 = vadd.f32 1.0, %v2169_v44  ;;  %v2167_v13 = vmul.f32 0.3275911, %v5694_v2  ;;  %vm2072_vm2 = vcmp.ge.f32.partialorder %v5640_v26, 0.0 }
 0x1e4   : > { %3834 = vrcp.f32 %v2198_v45  ;;  %vm2070_vm3 = vcmp.ge.f32.partialorder %v5643_v40, 0.0  ;;  %v5721_v37 = vmul.f32 0.5, %v5633_v52  ;;  %vm2073_vm4 = vcmp.ge.f32.partialorder %v5646_v34, 0.0 }
 0x1e5   : > { %v5663_v62 = vpop.eup %3826  ;;  %3836 = vpow2.f32 %v2614_v9  ;;  %v2199_v48 = vadd.f32 1.0, %v2167_v13  ;;  %v2550_v25 = vsub.f32 0.0, %v5653_v59  ;;  %v5735_v9 = vsel %vm2072_vm2, 1.0, %v6808_v56 }
 0x1e6   : > { %v2260_v51 = vmul.f32 1.0614054, %v5663_v62  ;;  %3838 = vrcp.f32 %v2201_v53  ;;  %v2584_v3 = vmul.f32 %v2552_v47, %v5649_v18  ;;  %v2553_v7 = vsub.f32 0.0, %v5659_v16 }
 0x1e7   : > { %v5675_v35 = vpop.eup %3828  ;;  %3840 = vpow2.f32 %v2610_v38  ;;  %v5752_v18 = vsel %vm2073_vm4, 1.0, %v6808_v56  ;;  %v2582_v40 = vmul.f32 %v2550_v25, %v5653_v59  ;;  %vm2071_vm6 = vcmp.ge.f32.partialorder %v5673_v20, 0.0 }
 0x1e8   : > { %v2292_v30 = vadd.f32 -1.4531521, %v2260_v51  ;;  %v3617_v10 = vpop.f32.mrb[8].mxu0  ;;  %v2261_v0 = vmul.f32 1.0614054, %v5675_v35  ;;  %3842 = vpow2.f32 %v2616_v32  ;;  %v5712_v46 = vpop.eup %3830  ;;  %v5745_v51 = vsel %vm2070_vm3, 1.0, %v6808_v56 }
 0x1e9   : > { %v1939_v6 = vpop.f32.mrb[9].mxu0  ;;  %v5697_v5 = vadd.f32 %v3617_v10, %v5616_v1  ;;  %3844 = vrcp.f32 %v2199_v48  ;;  %v2622_v54 = vmul.f32 1.442695, %v2584_v3  ;;  %vm2067_vm12 = vcmp.ge.f32.partialorder %v5635_v4, 0.0 }
 0x1ea   : > { %v2324_v19 = vmul.f32 %v5663_v62, %v2292_v30  ;;  %v3618_v60 = vpop.f32.mrb[10].mxu0  ;;  %v2293_v58 = vadd.f32 -1.4531521, %v2261_v0  ;;  %v5708_v55 = vadd.f32 %v5616_v1, %v1939_v6  ;;  %v5755_v30 = vmul.f32 0.5, %v5638_v24 }
 0x1eb   : > { %v5699_v57 = vpop.f32.mrb[11].mxu0  ;;  %v5705_v11 = vmul.f32 0.70710677, %v5697_v5  ;;  %v2585_v6 = vmul.f32 %v2553_v7, %v5659_v16  ;;  %v5772_v59 = vadd.f32 %v3618_v60, %v5616_v1  ;;  %v2551_v60 = vsub.f32 0.0, %v5694_v2 }
 0x1ec   : > { %v2356_v27 = vadd.f32 1.4214138, %v2324_v19  ;;  %v2325_v12 = vmul.f32 %v5675_v35, %v2293_v58  ;;  %v5729_v26 = vmul.f32 0.70710677, %v5708_v55 }
 0x1ed   : > { %v5717_v14 = vand.u32 2147483647, %v5705_v11  ;;  %v5724_v50 = vpop.eup %3832  ;;  %v2624_v3 = vmul.f32 1.442695, %v2585_v6  ;;  %v5802_v6 = vsel %vm2066_vm5, 1.0, %v6808_v56  ;;  %vm2076_vm7 = vcmp.ge.f32.partialorder %v5705_v11, 0.0 }
 0x1ee   : > { %v2388_v29 = vmul.f32 %v5663_v62, %v2356_v27  ;;  %v2357_v28 = vadd.f32 1.4214138, %v2325_v12  ;;  %v5731_v22 = vpop.eup %3834  ;;  %v2264_v52 = vmul.f32 1.0614054, %v5724_v50  ;;  %v5761_v19 = vand.u32 2147483647, %v5729_v26 }
 0x1ef   : > { %v2172_v63 = vmul.f32 0.3275911, %v5717_v14  ;;  %v5740_v41 = vpop.eup %3836  ;;  %v2262_v49 = vmul.f32 1.0614054, %v5731_v22  ;;  %v2556_v20 = vsub.f32 0.0, %v5717_v14  ;;  %vm2074_vm8 = vcmp.ge.f32.partialorder %v5729_v26, 0.0 }
 0x1f0   : > { %v2420_v44 = vadd.f32 -0.28449672, %v2388_v29  ;;  %v2389_v38 = vmul.f32 %v5675_v35, %v2357_v28  ;;  %v2296_v53 = vadd.f32 -1.4531521, %v2264_v52  ;;  %v5757_v39 = vpop.eup %3838  ;;  %v2170_v58 = vmul.f32 0.3275911, %v5761_v19 }
 0x1f1   : > { %v2204_v45 = vadd.f32 1.0, %v2172_v63  ;;  %v2294_v10 = vadd.f32 -1.4531521, %v2262_v49  ;;  %v5763_v0 = vpop.eup %3840  ;;  %v2265_v34 = vmul.f32 1.0614054, %v5757_v39 }
 0x1f2   : > { %v2328_v32 = vmul.f32 %v5724_v50, %v2296_v53  ;;  %v2452_v24 = vmul.f32 %v5663_v62, %v2420_v44  ;;  %v5774_v13 = vpop.eup %3842  ;;  %v2421_v12 = vadd.f32 -0.28449672, %v2389_v38  ;;  %v2618_v28 = vmul.f32 1.442695, %v2582_v40 }
 0x1f3   : > { %3846 = vrcp.f32 %v2204_v45  ;;  %v2326_v27 = vmul.f32 %v5731_v22, %v2294_v10  ;;  %v2297_v29 = vadd.f32 -1.4531521, %v2265_v34  ;;  %v2202_v25 = vadd.f32 1.0, %v2170_v58  ;;  %v5783_v44 = vpop.eup %3844 }
 0x1f4   : > { %3848 = vrcp.f32 %v2195_v23  ;;  %v2360_v47 = vadd.f32 1.4214138, %v2328_v32  ;;  %v2484_v23 = vadd.f32 0.2548296, %v2452_v24  ;;  %v2453_v38 = vmul.f32 %v5675_v35, %v2421_v12 }
 0x1f5   : > { %3850 = vpow2.f32 %v2612_v31  ;;  %v2358_v48 = vadd.f32 1.4214138, %v2326_v27  ;;  %v2329_v52 = vmul.f32 %v5757_v39, %v2297_v29  ;;  %v5787_v31 = vmul.f32 0.70710677, %v5772_v59 }
 0x1f6   : > { %v2392_v63 = vmul.f32 %v5724_v50, %v2360_v47  ;;  %3852 = vrcp.f32 %v2202_v25  ;;  %v2263_v32 = vmul.f32 1.0614054, %v5783_v44  ;;  %v5797_v34 = vmul.f32 0.5, %v5668_v42 }
 0x1f7   : > { %v2390_v49 = vmul.f32 %v5731_v22, %v2358_v48  ;;  %v2361_v10 = vadd.f32 1.4214138, %v2329_v52  ;;  %3854 = vpow2.f32 %v2622_v54  ;;  %v2583_v58 = vmul.f32 %v2551_v60, %v5694_v2 }
 0x1f8   : > { %v5776_v16 = vpop.f32.mrb[12].mxu0  ;;  %v2424_v53 = vadd.f32 -0.28449672, %v2392_v63  ;;  %3856 = vpow2.f32 %v2618_v28  ;;  %v5810_v54 = vsel %vm2071_vm6, 1.0, %v6808_v56  ;;  %v2295_v42 = vadd.f32 -1.4531521, %v2263_v32 }
 0x1f9   : > { %v5781_v7 = vpop.f32.mrb[13].mxu0  ;;  %v2422_v24 = vadd.f32 -0.28449672, %v2390_v49  ;;  %v2393_v27 = vmul.f32 %v5757_v39, %v2361_v10  ;;  %v5813_v47 = vand.u32 2147483647, %v5787_v31  ;;  %v2516_v43 = vmul.f32 %v5663_v62, %v2484_v23 }
 0x1fa   : > { %v5789_v45 = vpop.f32.mrb[14].mxu0  ;;  %v2485_v29 = vadd.f32 0.2548296, %v2453_v38  ;;  %v2456_v48 = vmul.f32 %v5724_v50, %v2424_v53  ;;  %3858 = vpow2.f32 %v2624_v3  ;;  %v2327_v2 = vmul.f32 %v5783_v44, %v2295_v42 }
 0x1fb   : > { %v5793_v40 = vpop.f32.mrb[15].mxu0  ;;  %v2425_v25 = vadd.f32 -0.28449672, %v2393_v27  ;;  %v2173_v28 = vmul.f32 0.3275911, %v5813_v47  ;;  %v2454_v60 = vmul.f32 %v5731_v22, %v2422_v24  ;;  %v2588_v62 = vmul.f32 %v2556_v20, %v5717_v14 }
 0x1fc   : > { %v2620_v49 = vmul.f32 1.442695, %v2583_v58  ;;  %v2359_v38 = vadd.f32 1.4214138, %v2327_v2  ;;  %v2554_v53 = vsub.f32 0.0, %v5761_v19  ;;  %v2676_v32 = vmul.f32 %v5740_v41, %v2516_v43 }
 0x1fd   : > { %v5807_v12 = vpop.eup %3846  ;;  %v2205_v10 = vadd.f32 1.0, %v2173_v28  ;;  %v2517_v27 = vmul.f32 %v5675_v35, %v2485_v29  ;;  %v2488_v42 = vadd.f32 0.2548296, %v2456_v48  ;;  %v2457_v58 = vmul.f32 %v5757_v39, %v2425_v25 }
 0x1fe   : > { %v2268_v63 = vmul.f32 1.0614054, %v5807_v12  ;;  %v5820_v52 = vpop.eup %3848  ;;  %v2391_v14 = vmul.f32 %v5783_v44, %v2359_v38  ;;  %v2486_v2 = vadd.f32 0.2548296, %v2454_v60  ;;  %v2586_v29 = vmul.f32 %v2554_v53, %v5761_v19 }
 0x1ff   : > { %v5825_v23 = vpop.eup %3850  ;;  %3860 = vrcp.f32 %v2205_v10  ;;  %v5840_v48 = vadd.f32 %v5616_v1, %v5699_v57  ;;  %v2708_v25 = vsub.f32 1.0, %v2676_v32  ;;  %v2677_v38 = vmul.f32 %v5774_v13, %v2517_v27 }
 0x200   : > { %v2300_v3 = vadd.f32 -1.4531521, %v2268_v63  ;;  %v5831_v24 = vpop.eup %3852  ;;  %3862 = vpow2.f32 %v2620_v49  ;;  %v2630_v63 = vmul.f32 1.442695, %v2588_v62  ;;  %v2423_v43 = vadd.f32 -0.28449672, %v2391_v14 }
 0x201   : > { %v2266_v28 = vmul.f32 1.0614054, %v5831_v24  ;;  %v3855_v41 = vpop.eup %3854  ;;  %v2489_v49 = vadd.f32 0.2548296, %v2457_v58  ;;  %v5847_v14 = vmul.f32 0.70710677, %v5840_v48  ;;  %v2518_v53 = vmul.f32 %v5731_v22, %v2486_v2 }
 0x202   : > { %v2332_v20 = vmul.f32 %v5807_v12, %v2300_v3  ;;  %v2520_v3 = vmul.f32 %v5724_v50, %v2488_v42  ;;  %v3857_v60 = vpop.eup %3856  ;;  %v2455_v62 = vmul.f32 %v5783_v44, %v2423_v43  ;;  %v5851_v57 = vmul.f32 0.5, %v5697_v5 }
 0x203   : > { %v2298_v10 = vadd.f32 -1.4531521, %v2266_v28  ;;  %v5855_v50 = vmul.f32 0.5, %v5708_v55  ;;  %v6828_v42 = vmov -1.0   ;;  %v2709_v5 = vsub.f32 1.0, %v2677_v38 }
 0x204   : > { %v2364_v35 = vadd.f32 1.4214138, %v2332_v20  ;;  %v3859_v19 = vpop.eup %3858  ;;  %6826 = vst [vmem:[#allocation7_spill] sm:$0xff] %v5851_v57  ;;  %v2487_v27 = vadd.f32 0.2548296, %v2455_v62  ;;  %v5862_v58 = vsel %vm2076_vm7, 1.0, %v6828_v42  ;;  %v2680_v2 = vmul.f32 %v3855_v41, %v2520_v3 }
 0x205   : > { %v2330_v13 = vmul.f32 %v5831_v24, %v2298_v10  ;;  %6827 = vst [vmem:[#allocation8_spill] sm:$0xff] %v5855_v50  ;;  %v5867_v22 = vsel %vm2074_vm8, 1.0, %v6828_v42  ;;  %3864 = vpow2.f32 %v2630_v63  ;;  %v2740_v43 = vmul.f32 %v2708_v25, %v5680_v36 }
 0x206   : > { %v2396_v56 = vmul.f32 %v5807_v12, %v2364_v35  ;;  %v2521_v35 = vmul.f32 %v5757_v39, %v2489_v49  ;;  %v2626_v10 = vmul.f32 1.442695, %v2586_v29  ;;  %v2139_v11 = vand.u32 2147483647, %v5847_v14 }
 0x207   : > { %v2362_v28 = vadd.f32 1.4214138, %v2330_v13  ;;  %v2557_v50 = vsub.f32 0.0, %v5813_v47  ;;  %v5880_v63 = vadd.f32 %v5776_v16, %v5616_v1  ;;  %v2519_v36 = vmul.f32 %v5783_v44, %v2487_v27 }
 0x208   : > { %v2428_v20 = vadd.f32 -0.28449672, %v2396_v56  ;;  %v2678_v56 = vmul.f32 %v3857_v60, %v2518_v53  ;;  %vm2077_vm9 = vcmp.ge.f32.partialorder %v5787_v31, 0.0  ;;  %v2171_v29 = vmul.f32 0.3275911, %v2139_v11 }
 0x209   : > { %v2394_v26 = vmul.f32 %v5831_v24, %v2362_v28  ;;  %v5884_v38 = vpop.eup %3860  ;;  %v2741_v3 = vmul.f32 %v2709_v5, %v5684_v17  ;;  %v2712_v60 = vsub.f32 1.0, %v2680_v2  ;;  %v5892_v16 = vmul.f32 0.70710677, %v5880_v63 }
 0x20a   : > { %v5857_v32 = vpop.f32.mrb[16].mxu0  ;;  %v2460_v39 = vmul.f32 %v5807_v12, %v2428_v20  ;;  %v3863_v25 = vpop.eup %3862  ;;  %v2269_v49 = vmul.f32 1.0614054, %v5884_v38  ;;  %v2804_v53 = vadd.f32 1.0, %v2740_v43  ;;  %v2681_v13 = vmul.f32 %v3859_v19, %v2521_v35 }
 0x20b   : > { %v5869_v55 = vpop.f32.mrb[17].mxu0  ;;  %3866 = vpow2.f32 %v2626_v10  ;;  %v2203_v28 = vadd.f32 1.0, %v2171_v29  ;;  %v2710_v57 = vsub.f32 1.0, %v2678_v56  ;;  %v2426_v44 = vadd.f32 -0.28449672, %v2394_v26 }
 0x20c   : > { %v5874_v62 = vpop.f32.mrb[18].mxu0  ;;  %v2589_v27 = vmul.f32 %v2557_v50, %v5813_v47  ;;  %v5896_v20 = vand.u32 2147483647, %v5892_v16  ;;  %v5900_v17 = vadd.f32 %v5616_v1, %v5781_v7  ;;  %v2805_v5 = vadd.f32 1.0, %v2741_v3 }
 0x20d   : > { %6829 = vst [vmem:[#allocation9_spill] sm:$0xff] %v5874_v62  ;;  %v5882_v41 = vpop.f32.mrb[19].mxu0  ;;  %v2492_v62 = vadd.f32 0.2548296, %v2460_v39  ;;  %3868 = vrcp.f32 %v2203_v28  ;;  %v2744_v2 = vmul.f32 %v2712_v60, %v5735_v9  ;;  %v2301_v19 = vadd.f32 -1.4531521, %v2269_v49 }
 0x20e   : > { %6830 = vst [vmem:[#allocation10_spill] sm:$0xff] %v5882_v41  ;;  %v2679_v41 = vmul.f32 %v3863_v25, %v2519_v36  ;;  %v2176_v43 = vmul.f32 0.3275911, %v5896_v20  ;;  %v2713_v35 = vsub.f32 1.0, %v2681_v13  ;;  %v5907_v47 = vsel %vm2077_vm9, 1.0, %v6828_v42 }
 0x20f   : > { %v5910_v50 = vmul.f32 0.5, %v5772_v59  ;;  %v2555_v10 = vsub.f32 0.0, %v2139_v11  ;;  %v3865_v56 = vpop.eup %3864  ;;  %v2742_v7 = vmul.f32 %v2710_v57, %v5745_v51  ;;  %v2458_v26 = vmul.f32 %v5831_v24, %v2426_v44 }
 0x210   : > { %v2632_v36 = vmul.f32 1.442695, %v2589_v27  ;;  %v2208_v9 = vadd.f32 1.0, %v2176_v43  ;;  %v5915_v39 = vmul.f32 %v2804_v53, %v5655_v33  ;;  %v2711_v29 = vsub.f32 1.0, %v2679_v41 }
 0x211   : > { %v2524_v25 = vmul.f32 %v5807_v12, %v2492_v62  ;;  %v5919_v31 = vmul.f32 0.70710677, %v5900_v17  ;;  %v5922_v59 = vmul.f32 %v2805_v5, %v5687_v21  ;;  %v2808_v3 = vadd.f32 1.0, %v2744_v2 }
 0x212   : > { %v2333_v60 = vmul.f32 %v5884_v38, %v2301_v19  ;;  %3870 = vrcp.f32 %v2208_v9  ;;  %v2745_v51 = vmul.f32 %v2713_v35, %v5752_v18  ;;  %vm2075_vm10 = vcmp.ge.f32.partialorder %v5847_v14, 0.0 }
 0x213   : > { %v2587_v57 = vmul.f32 %v2555_v10, %v2139_v11  ;;  %v5928_v33 = vand.u32 2147483647, %v5919_v31  ;;  %v2806_v41 = vadd.f32 1.0, %v2742_v7  ;;  %v2490_v12 = vadd.f32 0.2548296, %v2458_v26 }
 0x214   : > { %3872 = vpow2.f32 %v2632_v36  ;;  %v5932_v62 = vadd.f32 %v5789_v45, %v5616_v1  ;;  %v2743_v49 = vmul.f32 %v2711_v29, %v5810_v54  ;;  %v2684_v53 = vmul.f32 %v3865_v56, %v2524_v25 }
 0x215   : > { %v3867_v21 = vpop.eup %3866  ;;  %v5936_v13 = vmul.f32 0.5, %v5840_v48  ;;  %v2174_v18 = vmul.f32 0.3275911, %v5928_v33  ;;  %v5940_v14 = vmul.f32 %v2808_v3, %v5701_v8  ;;  %v2365_v11 = vadd.f32 1.4214138, %v2333_v60 }
 0x216   : > { %v5943_v28 = vsel %vm2075_vm10, 1.0, %v6828_v42  ;;  %v5946_v44 = vmul.f32 0.70710677, %v5932_v62  ;;  %v2809_v27 = vadd.f32 1.0, %v2745_v51  ;;  %v2628_v54 = vmul.f32 1.442695, %v2587_v57 }
 0x217   : > { %v5948_v45 = vpop.eup %3868  ;;  %v2206_v5 = vadd.f32 1.0, %v2174_v18  ;;  %v5952_v48 = vadd.f32 %v5616_v1, %v5793_v40  ;;  %v5957_v8 = vmul.f32 %v2806_v41, %v5721_v37  ;;  %v2522_v19 = vmul.f32 %v5831_v24, %v2490_v12 }
 0x218   : > { %v2267_v43 = vmul.f32 1.0614054, %v5948_v45  ;;  %vm2080_vm11 = vcmp.ge.f32.partialorder %v5892_v16, 0.0  ;;  %v2807_v35 = vadd.f32 1.0, %v2743_v49  ;;  %v2716_v10 = vsub.f32 1.0, %v2684_v53 }
 0x219   : > { %3874 = vrcp.f32 %v2206_v5  ;;  %v5963_v56 = vand.u32 2147483647, %v5946_v44  ;;  %v2397_v40 = vmul.f32 %v5884_v38, %v2365_v11  ;;  %v2560_v37 = vsub.f32 0.0, %v5896_v20 }
 0x21a   : > { %v2299_v26 = vadd.f32 -1.4531521, %v2267_v43  ;;  %v5970_v36 = vmul.f32 0.70710677, %v5952_v48  ;;  %v5976_v16 = vmul.f32 %v2809_v27, %v5755_v30  ;;  %3876 = vpow2.f32 %v2628_v54 }
 0x21b   : > { %v5979_v9 = vsel %vm2080_vm11, 1.0, %v6828_v42  ;;  %v2177_v29 = vmul.f32 0.3275911, %v5963_v56  ;;  %v2682_v60 = vmul.f32 %v3867_v21, %v2522_v19  ;;  %v5988_v57 = vmul.f32 0.5, %v5880_v63 }
 0x21c   : > { %v5954_v2 = vpop.f32.mrb[20].mxu0  ;;  %v5984_v3 = vpop.eup %3870  ;;  %v2331_v51 = vmul.f32 %v5948_v45, %v2299_v26  ;;  %v5991_v41 = vand.u32 2147483647, %v5970_v36  ;;  %v5994_v30 = vmul.f32 %v2807_v35, %v5797_v34  ;;  %v2748_v12 = vmul.f32 %v2716_v10, %v5862_v58 }
 0x21d   : > { %v5965_v7 = vpop.f32.mrb[21].mxu0  ;;  %6834 = vst [vmem:[#allocation14_spill] sm:$0xff] %v5988_v57  ;;  %v2272_v49 = vmul.f32 1.0614054, %v5984_v3  ;;  %v2209_v53 = vadd.f32 1.0, %v2177_v29  ;;  %v2592_v27 = vmul.f32 %v2560_v37, %v5896_v20  ;;  %v6003_v5 = vmul.f32 0.5, %v5900_v17 }
 0x21e   : > { %6831 = vst [vmem:[#allocation11_spill] sm:$0xff] %v5965_v7  ;;  %v5972_v24 = vpop.f32.mrb[22].mxu0  ;;  %v5998_v18 = vpop.eup %3872  ;;  %v2429_v11 = vadd.f32 -0.28449672, %v2397_v40  ;;  %v2363_v21 = vadd.f32 1.4214138, %v2331_v51 }
 0x21f   : > { %6832 = vst [vmem:[#allocation12_spill] sm:$0xff] %v5972_v24  ;;  %v5982_v25 = vpop.f32.mrb[23].mxu0  ;;  %v2175_v63 = vmul.f32 0.3275911, %v5991_v41  ;;  %v2304_v54 = vadd.f32 -1.4531521, %v2272_v49  ;;  %3878 = vrcp.f32 %v2209_v53  ;;  %v6019_v53 = vadd.f32 %v5857_v32, %v5616_v1 }
 0x220   : > { %6833 = vst [vmem:[#allocation13_spill] sm:$0xff] %v5982_v25  ;;  %6835 = vst [vmem:[#allocation15_spill] sm:$0xff] %v6003_v5  ;;  %v2258_v34 = vmul.f32 1.0614054, %v5712_v46  ;;  %v2714_v19 = vsub.f32 1.0, %v2682_v60  ;;  %v2395_v58 = vmul.f32 %v5948_v45, %v2363_v21  ;;  %vm2078_vm13 = vcmp.ge.f32.partialorder %v5919_v31, 0.0 }
 0x221   : > { %v2207_v43 = vadd.f32 1.0, %v2175_v63  ;;  %v2336_v35 = vmul.f32 %v5984_v3, %v2304_v54  ;;  %v2558_v10 = vsub.f32 0.0, %v5928_v33  ;;  %v2259_v20 = vmul.f32 1.0614054, %v5820_v52 }
 0x222   : > { %v2290_v40 = vadd.f32 -1.4531521, %v2258_v34  ;;  %v6011_v26 = vadd.f32 1.0, %v2748_v12  ;;  %v2461_v17 = vmul.f32 %v5884_v38, %v2429_v11  ;;  %v2638_v37 = vmul.f32 1.442695, %v2592_v27 }
 0x223   : > { %3880 = vrcp.f32 %v2207_v43  ;;  %v6014_v29 = vpop.eup %3874  ;;  %v2368_v60 = vadd.f32 1.4214138, %v2336_v35  ;;  %v2291_v51 = vadd.f32 -1.4531521, %v2259_v20  ;;  %v2746_v21 = vmul.f32 %v2714_v19, %v5867_v22 }
 0x224   : > { %v2322_v49 = vmul.f32 %v5712_v46, %v2290_v40  ;;  %v2427_v63 = vadd.f32 -0.28449672, %v2395_v58  ;;  %v6025_v12 = vsel %vm2078_vm13, 1.0, %v6828_v42  ;;  %v2270_v11 = vmul.f32 1.0614054, %v6014_v29  ;;  %v6028_v27 = vpop.eup %3876 }
 0x225   : > { %v2590_v54 = vmul.f32 %v2558_v10, %v5928_v33  ;;  %v2323_v34 = vmul.f32 %v5820_v52, %v2291_v51  ;;  %v6033_v32 = vmul.f32 0.70710677, %v6019_v53  ;;  %v6036_v22 = vmul.f32 0.5, %v5932_v62 }
 0x226   : > { %v2354_v43 = vadd.f32 1.4214138, %v2322_v49  ;;  %v2302_v35 = vadd.f32 -1.4531521, %v2270_v11  ;;  %v6041_v31 = vsel %vm2067_vm12, 1.0, %v6828_v42  ;;  %v2400_v33 = vmul.f32 %v5984_v3, %v2368_v60 }
 0x227   : > { %6836 = vst [vmem:[#allocation16_spill] sm:$0xff] %v6036_v22  ;;  %v2493_v58 = vadd.f32 0.2548296, %v2461_v17  ;;  %v2355_v10 = vadd.f32 1.4214138, %v2323_v34  ;;  %v6047_v40 = vadd.f32 1.0, %v2746_v21  ;;  %v2459_v51 = vmul.f32 %v5948_v45, %v2427_v63 }
 0x228   : > { %v2386_v20 = vmul.f32 %v5712_v46, %v2354_v43  ;;  %v2334_v62 = vmul.f32 %v6014_v29, %v2302_v35  ;;  %v6052_v49 = vand.u32 2147483647, %v6033_v32  ;;  %v2634_v11 = vmul.f32 1.442695, %v2590_v54 }
 0x229   : > { %v6054_v4 = vpop.eup %3878  ;;  %v2561_v19 = vsub.f32 0.0, %v5963_v56  ;;  %v2387_v17 = vmul.f32 %v5820_v52, %v2355_v10  ;;  %3882 = vpow2.f32 %v2638_v37  ;;  %v2525_v63 = vmul.f32 %v5884_v38, %v2493_v58 }
 0x22a   : > { %v2418_v60 = vadd.f32 -0.28449672, %v2386_v20  ;;  %v2366_v34 = vadd.f32 1.4214138, %v2334_v62  ;;  %v2273_v21 = vmul.f32 1.0614054, %v6054_v4 }
 0x22b   : > { %v2180_v43 = vmul.f32 0.3275911, %v6052_v49  ;;  %v2432_v35 = vadd.f32 -0.28449672, %v2400_v33  ;;  %v2419_v22 = vadd.f32 -0.28449672, %v2387_v17  ;;  %v2593_v24 = vmul.f32 %v2561_v19, %v5963_v56 }
 0x22c   : > { %v2450_v25 = vmul.f32 %v5712_v46, %v2418_v60  ;;  %v2491_v57 = vadd.f32 0.2548296, %v2459_v51  ;;  %v2398_v10 = vmul.f32 %v6014_v29, %v2366_v34  ;;  %v2305_v20 = vadd.f32 -1.4531521, %v2273_v21 }
 0x22d   : > { %v6064_v54 = vpop.eup %3880  ;;  %v2212_v37 = vadd.f32 1.0, %v2180_v43  ;;  %v2451_v38 = vmul.f32 %v5820_v52, %v2419_v22  ;;  %v2559_v51 = vsub.f32 0.0, %v5991_v41  ;;  %v2464_v21 = vmul.f32 %v5984_v3, %v2432_v35 }
 0x22e   : > { %v2271_v7 = vmul.f32 1.0614054, %v6064_v54  ;;  %v2482_v58 = vadd.f32 0.2548296, %v2450_v25  ;;  %v2430_v17 = vadd.f32 -0.28449672, %v2398_v10  ;;  %v2337_v60 = vmul.f32 %v6054_v4, %v2305_v20 }
 0x22f   : > { %3884 = vrcp.f32 %v2212_v37  ;;  %v2523_v19 = vmul.f32 %v5948_v45, %v2491_v57  ;;  %v6084_v10 = vadd.f32 %v5616_v1, %v5869_v55  ;;  %vm2081_vm14 = vcmp.ge.f32.partialorder %v5946_v44, 0.0 }
 0x230   : > { %v2303_v43 = vadd.f32 -1.4531521, %v2271_v7  ;;  %v2514_v56 = vmul.f32 %v5712_v46, %v2482_v58  ;;  %v2462_v25 = vmul.f32 %v6014_v29, %v2430_v17  ;;  %v2369_v22 = vadd.f32 1.4214138, %v2337_v60 }
 0x231   : > { %v6062_v5 = vpop.f32.mrb[24].mxu0  ;;  %3886 = vpow2.f32 %v2634_v11  ;;  %v2685_v7 = vmul.f32 %v5998_v18, %v2525_v63  ;;  %v2591_v45 = vmul.f32 %v2559_v51, %v5991_v41  ;;  %v2496_v57 = vadd.f32 0.2548296, %v2464_v21 }
 0x232   : > { %v6067_v62 = vpop.f32.mrb[25].mxu0  ;;  %v2335_v20 = vmul.f32 %v6064_v54, %v2303_v43  ;;  %v2674_v35 = vmul.f32 %v5763_v0, %v2514_v56  ;;  %v2401_v46 = vmul.f32 %v6054_v4, %v2369_v22  ;;  %v2683_v17 = vmul.f32 %v6028_v27, %v2523_v19 }
 0x233   : > { %6837 = vst [vmem:[#allocation17_spill] sm:$0xff] %v6067_v62  ;;  %v6072_v33 = vpop.f32.mrb[26].mxu0  ;;  %v2483_v62 = vadd.f32 0.2548296, %v2451_v38  ;;  %v3883_v11 = vpop.eup %3882  ;;  %v2494_v60 = vadd.f32 0.2548296, %v2462_v25 }
 0x234   : > { %v6076_v34 = vpop.f32.mrb[27].mxu0  ;;  %v2367_v38 = vadd.f32 1.4214138, %v2335_v20  ;;  %v2706_v58 = vsub.f32 1.0, %v2674_v35  ;;  %v6096_v0 = vmul.f32 0.70710677, %v6084_v10 }
 0x235   : > { %v2515_v37 = vmul.f32 %v5820_v52, %v2483_v62  ;;  %v2640_v52 = vmul.f32 1.442695, %v2593_v24  ;;  %v2433_v18 = vadd.f32 -0.28449672, %v2401_v46  ;;  %v2717_v41 = vsub.f32 1.0, %v2685_v7 }
 0x236   : > { %v2399_v63 = vmul.f32 %v6064_v54, %v2367_v38  ;;  %v2738_v43 = vmul.f32 %v2706_v58, %v5802_v6  ;;  %v2636_v51 = vmul.f32 1.442695, %v2591_v45  ;;  %v6106_v27 = vand.u32 2147483647, %v6096_v0 }
 0x237   : > { %v2675_v55 = vmul.f32 %v5825_v23, %v2515_v37  ;;  %v6103_v23 = vsel %vm2081_vm14, 1.0, %v6828_v42  ;;  %v2528_v24 = vmul.f32 %v5984_v3, %v2496_v57  ;;  %v6110_v21 = vmul.f32 0.5, %v5952_v48 }
 0x238   : > { %v2802_v19 = vadd.f32 1.0, %v2738_v43  ;;  %v2715_v6 = vsub.f32 1.0, %v2683_v17  ;;  %v2526_v22 = vmul.f32 %v6014_v29, %v2494_v60  ;;  %v2431_v44 = vadd.f32 -0.28449672, %v2399_v63 }
 0x239   : > { %v2707_v62 = vsub.f32 1.0, %v2675_v55  ;;  %v6113_v25 = vpop.eup %3884  ;;  %v2178_v20 = vmul.f32 0.3275911, %v6106_v27  ;;  %v2465_v37 = vmul.f32 %v6054_v4, %v2433_v18  ;;  %3888 = vpow2.f32 %v2640_v52  ;;  %v6838_v18 = vld [vmem:[#allocation9_spill] sm:$0xff] }
 0x23a   : > { %v2276_v3 = vmul.f32 1.0614054, %v6113_v25  ;;  %v2749_v48 = vmul.f32 %v2717_v41, %v5907_v47  ;;  %3890 = vpow2.f32 %v2636_v51  ;;  %v2688_v45 = vmul.f32 %v3883_v11, %v2528_v24 }
 0x23b   : > { %v2739_v56 = vmul.f32 %v2707_v62, %v6041_v31  ;;  %v2564_v31 = vsub.f32 0.0, %v6052_v49  ;;  %v2210_v7 = vadd.f32 1.0, %v2178_v20  ;;  %v3887_v46 = vpop.eup %3886  ;;  %v2834_v57 = vmul.f32 %v2802_v19, %v5670_v61  ;;  %v6839_v61 = vld [vmem:[#allocation10_spill] sm:$0xff]  ;;  %v6840_v62 = vld [vmem:[#allocation7_spill] sm:$0xff]  ;;  %v6841_v19 = vld [vmem:[#allocation8_spill] sm:$0xff] }
 0x23c   : > { %v2308_v38 = vadd.f32 -1.4531521, %v2276_v3  ;;  %v2747_v55 = vmul.f32 %v2715_v6, %v5943_v28  ;;  %v2686_v58 = vmul.f32 %v3887_v46, %v2526_v22  ;;  %v2463_v17 = vmul.f32 %v6064_v54, %v2431_v44 }
 0x23d   : > { %v2803_v35 = vadd.f32 1.0, %v2739_v56  ;;  %3892 = vrcp.f32 %v2210_v7  ;;  %v2497_v60 = vadd.f32 0.2548296, %v2465_v37  ;;  %v6128_v63 = vadd.f32 %v6838_v18, %v5616_v1 }
 0x23e   : > { %v2340_v47 = vmul.f32 %v6113_v25, %v2308_v38  ;;  %v2813_v11 = vadd.f32 1.0, %v2749_v48  ;;  %vm2079_vm15 = vcmp.ge.f32.partialorder %v5970_v36, 0.0  ;;  %vm2084_vm0 = vcmp.ge.f32.partialorder %v6033_v32, 0.0 }
 0x23f   : > { %v2835_v29 = vmul.f32 %v2803_v35, %v5691_v15  ;;  %v6134_v15 = vadd.f32 %v5616_v1, %v6839_v61  ;;  %v6140_v43 = vmul.f32 %v6011_v26, %v6840_v62  ;;  %v2720_v41 = vsub.f32 1.0, %v2688_v45  ;;  %v6205_v61 = vld [vmem:[%s6795_s6] ss:$0 sm:$0xff]  ;;  %v6844_v62 = vld [vmem:[#allocation12_spill] sm:$0xff] }
 0x240   : > { %v2372_v51 = vadd.f32 1.4214138, %v2340_v47  ;;  %v6143_v24 = vmul.f32 0.70710677, %v6128_v63  ;;  %v6149_v6 = vmul.f32 %v6047_v40, %v6841_v19  ;;  %v2811_v1 = vadd.f32 1.0, %v2747_v55 }
 0x241   : > { %v2866_v52 = vpack.c.bf16 %v2835_v29, %v2834_v57  ;;  %v2495_v22 = vadd.f32 0.2548296, %v2463_v17  ;;  %v6842_v44 = vpack.c.bf16 %v5922_v59, %v5915_v39  ;;  %v6155_v26 = vmul.f32 0.70710677, %v6134_v15 }
 0x242   : > { %v2718_v37 = vsub.f32 1.0, %v2686_v58  ;;  %v2529_v35 = vmul.f32 %v6054_v4, %v2497_v60  ;;  %v2596_v3 = vmul.f32 %v2564_v31, %v6052_v49  ;;  %v6162_v48 = vand.u32 2147483647, %v6143_v24 }
 0x243   : > { %v6136_v28 = vpop.f32.mrb[28].mxu0  ;;  %3655 = vmatprep.mubr.bf16.mxu1 %v2866_v52  ;;  %v6167_v7 = vmul.f32 %v2813_v11, %v5910_v50  ;;  %v2111_v39 = vsel %vm2079_vm15, 1.0, %v6828_v42  ;;  %v2404_v59 = vmul.f32 %v6113_v25, %v2372_v51  ;;  %v6174_v46 = vand.u32 2147483647, %v6155_v26  ;;  %v3889_v4 = vpop.eup %3888 }
 0x244   : > { %v6145_v56 = vpop.f32.mrb[29].mxu0  ;;  %3656 = vmatmul.mubr.bf16.vlgmr.msra.gmra.mrb[0].mxu1 %v6842_v44  ;;  %v2752_v49 = vmul.f32 %v2720_v41, %v5979_v9  ;;  %v6178_v31 = vmul.f32 0.5, %v6019_v53  ;;  %v2562_v45 = vsub.f32 0.0, %v6106_v27  ;;  %v2181_v50 = vmul.f32 0.3275911, %v6162_v48  ;;  %v3891_v57 = vpop.eup %3890 }
 0x245   : > { %v6157_v20 = vpop.f32.mrb[30].mxu0  ;;  %v6183_v29 = vmul.f32 %v2811_v1, %v5936_v13  ;;  %v2527_v36 = vmul.f32 %v6064_v54, %v2495_v22  ;;  %v6189_v38 = vsel %vm2084_vm0, 1.0, %v6828_v42  ;;  %v2179_v9 = vmul.f32 0.3275911, %v6174_v46 }
 0x246   : > { %v6164_v40 = vpop.f32.mrb[31].mxu0  ;;  %v2750_v53 = vmul.f32 %v2718_v37, %v6025_v12  ;;  %v2689_v55 = vmul.f32 %v3889_v4, %v2529_v35  ;;  %v2646_v58 = vmul.f32 1.442695, %v2596_v3  ;;  %v2213_v17 = vadd.f32 1.0, %v2181_v50 }
 0x247   : > { %v6193_v60 = vpop.eup %3892  ;;  %v2436_v52 = vadd.f32 -0.28449672, %v2404_v59  ;;  %v2211_v47 = vadd.f32 1.0, %v2179_v9  ;;  %v2868_v13 = vpack.c.bf16 %v5994_v30, %v5957_v8  ;;  %v2869_v54 = vpack.c.bf16 %v5976_v16, %v5940_v14  ;;  %v6843_v30 = vld [vmem:[#allocation11_spill] sm:$0xff] }
 0x248   : > { %v2816_v32 = vadd.f32 1.0, %v2752_v49  ;;  %v2274_v18 = vmul.f32 1.0614054, %v6193_v60  ;;  %v2594_v11 = vmul.f32 %v2562_v45, %v6106_v27  ;;  %3894 = vrcp.f32 %v2213_v17  ;;  %v6846_v9 = vld [vmem:[#allocation15_spill] sm:$0xff] }
 0x249   : > { %v2687_v12 = vmul.f32 %v3891_v57, %v2527_v36  ;;  %vm2082_vm1 = vcmp.ge.f32.partialorder %v6096_v0, 0.0  ;;  %3896 = vrcp.f32 %v2211_v47  ;;  %3659 = vmatprep.mubr.bf16.mxu1 %v2868_v13  ;;  %v6209_v8 = vadd.f32 %v6205_v61, %v5954_v2  ;;  %v6845_v2 = vld [vmem:[#allocation14_spill] sm:$0xff] }
 0x24a   : > { %v2721_v14 = vsub.f32 1.0, %v2689_v55  ;;  %v2306_v16 = vadd.f32 -1.4531521, %v2274_v18  ;;  %v6213_v27 = vadd.f32 %v6205_v61, %v6843_v30  ;;  %v6217_v41 = vadd.f32 %v6205_v61, %v6844_v62 }
 0x24b   : > { %v2814_v51 = vadd.f32 1.0, %v2750_v53  ;;  %v2468_v19 = vmul.f32 %v6113_v25, %v2436_v52  ;;  %3898 = vpow2.f32 %v2646_v58  ;;  %v6221_v1 = vmul.f32 0.70710677, %v6209_v8 }
 0x24c   : > { %3660 = vmatmul.mubr.bf16.gmra.mrb[4].mxu1 %v2869_v54  ;;  %v6224_v22 = vmul.f32 %v2816_v32, %v6845_v2  ;;  %v2338_v44 = vmul.f32 %v6193_v60, %v2306_v16  ;;  %v2642_v37 = vmul.f32 1.442695, %v2594_v11  ;;  %v6228_v35 = vmul.f32 0.70710677, %v6213_v27 }
 0x24d   : > { %v2719_v3 = vsub.f32 1.0, %v2687_v12  ;;  %v6233_v59 = vsel %vm2082_vm1, 1.0, %v6828_v42  ;;  %v6236_v4 = vand.u32 2147483647, %v6221_v1  ;;  %v6239_v49 = vmul.f32 0.70710677, %v6217_v41 }
 0x24e   : > { %v2753_v45 = vmul.f32 %v2721_v14, %v6103_v23  ;;  %v6243_v50 = vmul.f32 0.5, %v6084_v10  ;;  %v2565_v57 = vsub.f32 0.0, %v6162_v48  ;;  %v6247_v36 = vmul.f32 0.5, %v6128_v63 }
 0x24f   : > { %v6250_v0 = vmul.f32 %v2814_v51, %v6846_v9  ;;  %v2500_v53 = vadd.f32 0.2548296, %v2468_v19  ;;  %v2184_v55 = vmul.f32 0.3275911, %v6236_v4  ;;  %v6254_v58 = vand.u32 2147483647, %v6228_v35 }
 0x250   : > { %v2370_v17 = vadd.f32 1.4214138, %v2338_v44  ;;  %3900 = vpow2.f32 %v2642_v37  ;;  %v2563_v23 = vsub.f32 0.0, %v6174_v46  ;;  %v6258_v10 = vand.u32 2147483647, %v6239_v49  ;;  %v6847_v51 = vld [vmem:[#allocation13_spill] sm:$0xff] }
 0x251   : > { %v2751_v52 = vmul.f32 %v2719_v3, %v2111_v39  ;;  %v6261_v63 = vmul.f32 0.5, %v6134_v15  ;;  %v2216_v47 = vadd.f32 1.0, %v2184_v55  ;;  %v2182_v13 = vmul.f32 0.3275911, %v6254_v58 }
 0x252   : > { %v6264_v54 = vpop.eup %3894  ;;  %v2817_v32 = vadd.f32 1.0, %v2753_v45  ;;  %vm2085_vm2 = vcmp.ge.f32.partialorder %v6143_v24, 0.0  ;;  %v2597_v18 = vmul.f32 %v2565_v57, %v6162_v48  ;;  %v2185_v11 = vmul.f32 0.3275911, %v6258_v10  ;;  %v6848_v45 = vld [vmem:[#allocation16_spill] sm:$0xff] }
 0x253   : > { %v6269_v12 = vpop.eup %3896  ;;  %v2532_v14 = vmul.f32 %v6113_v25, %v2500_v53  ;;  %v2277_v39 = vmul.f32 1.0614054, %v6264_v54  ;;  %3902 = vrcp.f32 %v2216_v47  ;;  %v2214_v15 = vadd.f32 1.0, %v2182_v13 }
 0x254   : > { %v2402_v16 = vmul.f32 %v6193_v60, %v2370_v17  ;;  %v2275_v30 = vmul.f32 1.0614054, %v6269_v12  ;;  %v2595_v62 = vmul.f32 %v2563_v23, %v6174_v46  ;;  %v6278_v24 = vadd.f32 %v6205_v61, %v6847_v51 }
 0x255   : > { %v3899_v48 = vpop.eup %3898  ;;  %v2815_v19 = vadd.f32 1.0, %v2751_v52  ;;  %v6281_v2 = vsel %vm2085_vm2, 1.0, %v6828_v42  ;;  %v2309_v25 = vadd.f32 -1.4531521, %v2277_v39  ;;  %v2217_v44 = vadd.f32 1.0, %v2185_v11 }
 0x256   : > { %v2648_v37 = vmul.f32 1.442695, %v2597_v18  ;;  %vm2083_vm3 = vcmp.ge.f32.partialorder %v6155_v26, 0.0  ;;  %v2307_v3 = vadd.f32 -1.4531521, %v2275_v30  ;;  %3904 = vrcp.f32 %v2214_v15 }
 0x257   : > { %v6285_v57 = vmul.f32 %v2817_v32, %v6848_v45  ;;  %v2692_v46 = vmul.f32 %v3899_v48, %v2532_v14  ;;  %v2341_v9 = vmul.f32 %v6264_v54, %v2309_v25  ;;  %3906 = vrcp.f32 %v2217_v44 }
 0x258   : > { %v2434_v53 = vadd.f32 -0.28449672, %v2402_v16  ;;  %v2339_v55 = vmul.f32 %v6269_v12, %v2307_v3  ;;  %v2644_v17 = vmul.f32 1.442695, %v2595_v62  ;;  %v6290_v23 = vmul.f32 0.70710677, %v6278_v24 }
 0x259   : > { %v6293_v52 = vmul.f32 %v2815_v19, %v6110_v21  ;;  %v2373_v26 = vadd.f32 1.4214138, %v2341_v9  ;;  %v6296_v47 = vsel %vm2083_vm3, 1.0, %v6828_v42  ;;  %v2870_v13 = vpack.c.bf16 %v6183_v29, %v6149_v6 }
 0x25a   : > { %v6300_v32 = vpop.eup %3900  ;;  %3908 = vpow2.f32 %v2648_v37  ;;  %v2371_v18 = vadd.f32 1.4214138, %v2339_v55  ;;  %v6303_v11 = vmul.f32 0.5, %v6209_v8  ;;  %v6306_v14 = vand.u32 2147483647, %v6290_v23 }
 0x25b   : > { %v2724_v39 = vsub.f32 1.0, %v2692_v46  ;;  %v2405_v21 = vmul.f32 %v6264_v54, %v2373_v26  ;;  %v2568_v15 = vsub.f32 0.0, %v6236_v4  ;;  %3663 = vmatprep.mubr.bf16.mxu1 %v2870_v13  ;;  %v2871_v16 = vpack.c.bf16 %v6167_v7, %v6140_v43 }
 0x25c   : > { %v2466_v6 = vmul.f32 %v6193_v60, %v2434_v53  ;;  %v2403_v29 = vmul.f32 %v6269_v12, %v2371_v18  ;;  %3910 = vpow2.f32 %v2644_v17  ;;  %v2183_v8 = vmul.f32 0.3275911, %v6306_v14 }
 0x25d   : > { %v6315_v30 = vpop.eup %3902  ;;  %v2437_v62 = vadd.f32 -0.28449672, %v2405_v21  ;;  %vm2088_vm4 = vcmp.ge.f32.partialorder %v6221_v1, 0.0  ;;  %v6319_v51 = vmul.f32 0.5, %v6213_v27  ;;  %3664 = vmatmul.mubr.bf16.gmra.mrb[8].mxu1 %v2871_v16  ;;  %v6323_v48 = vadd.f32 %v6205_v61, %v6062_v5 }
 0x25e   : > { %v2435_v43 = vadd.f32 -0.28449672, %v2403_v29  ;;  %v2280_v7 = vmul.f32 1.0614054, %v6315_v30  ;;  %vm2086_vm5 = vcmp.ge.f32.partialorder %v6228_v35, 0.0  ;;  %v2215_v19 = vadd.f32 1.0, %v2183_v8 }
 0x25f   : > { %v2756_v25 = vmul.f32 %v2724_v39, %v6189_v38  ;;  %v2469_v44 = vmul.f32 %v6264_v54, %v2437_v62  ;;  %v2600_v37 = vmul.f32 %v2568_v15, %v6236_v4  ;;  %v2566_v27 = vsub.f32 0.0, %v6254_v58 }
 0x260   : > { %v6331_v3 = vpop.eup %3904  ;;  %v2498_v45 = vadd.f32 0.2548296, %v2466_v6  ;;  %v2467_v5 = vmul.f32 %v6269_v12, %v2435_v43  ;;  %v2312_v46 = vadd.f32 -1.4531521, %v2280_v7  ;;  %3912 = vrcp.f32 %v2215_v19  ;;  %v6849_v7 = vld [vmem:[#allocation17_spill] sm:$0xff] }
 0x261   : > { %v6334_v9 = vpop.eup %3906  ;;  %v6339_v35 = vsel %vm2088_vm4, 1.0, %v6828_v42  ;;  %v6342_v38 = vsel %vm2086_vm5, 1.0, %v6828_v42  ;;  %v2278_v4 = vmul.f32 1.0614054, %v6331_v3  ;;  %v6346_v53 = vmul.f32 0.70710677, %v6323_v48 }
 0x262   : > { %v2501_v55 = vadd.f32 0.2548296, %v2469_v44  ;;  %v2499_v17 = vadd.f32 0.2548296, %v2467_v5  ;;  %v2344_v26 = vmul.f32 %v6315_v30, %v2312_v46  ;;  %v2281_v13 = vmul.f32 1.0614054, %v6334_v9 }
 0x263   : > { %v2820_v18 = vadd.f32 1.0, %v2756_v25  ;;  %v2654_v39 = vmul.f32 1.442695, %v2600_v37  ;;  %v2310_v21 = vadd.f32 -1.4531521, %v2278_v4  ;;  %vm2089_vm6 = vcmp.ge.f32.partialorder %v6239_v49, 0.0 }
 0x264   : > { %v3909_v1 = vpop.eup %3908  ;;  %v2530_v15 = vmul.f32 %v6193_v60, %v2498_v45  ;;  %v2598_v16 = vmul.f32 %v2566_v27, %v6254_v58  ;;  %v2313_v6 = vadd.f32 -1.4531521, %v2281_v13  ;;  %v2569_v29 = vsub.f32 0.0, %v6258_v10 }
 0x265   : > { %v2342_v8 = vmul.f32 %v6331_v3, %v2310_v21  ;;  %v2567_v62 = vsub.f32 0.0, %v6306_v14  ;;  %v6357_v43 = vand.u32 2147483647, %v6346_v53  ;;  %v6361_v19 = vadd.f32 %v6205_v61, %v6849_v7 }
 0x266   : > { %v3911_v25 = vpop.eup %3910  ;;  %v2533_v44 = vmul.f32 %v6264_v54, %v2501_v55  ;;  %v2531_v60 = vmul.f32 %v6269_v12, %v2499_v17  ;;  %v2376_v58 = vadd.f32 1.4214138, %v2344_v26  ;;  %v2345_v37 = vmul.f32 %v6334_v9, %v2313_v6 }
 0x267   : > { %v6367_v27 = vmul.f32 %v2820_v18, %v6178_v31  ;;  %v2374_v45 = vadd.f32 1.4214138, %v2342_v8  ;;  %v6372_v5 = vsel %vm2089_vm6, 1.0, %v6828_v42  ;;  %v2188_v46 = vmul.f32 0.3275911, %v6357_v43 }
 0x268   : > { %v2690_v4 = vmul.f32 %v6300_v32, %v2530_v15  ;;  %v2650_v13 = vmul.f32 1.442695, %v2598_v16  ;;  %v2377_v54 = vadd.f32 1.4214138, %v2345_v37  ;;  %v2601_v12 = vmul.f32 %v2569_v29, %v6258_v10 }
 0x269   : > { %3914 = vpow2.f32 %v2654_v39  ;;  %v2599_v55 = vmul.f32 %v2567_v62, %v6306_v14  ;;  %v2220_v17 = vadd.f32 1.0, %v2188_v46  ;;  %v6380_v31 = vadd.f32 %v6205_v61, %v6072_v33 }
 0x26a   : > { %v6382_v26 = vpop.eup %3912  ;;  %v2693_v49 = vmul.f32 %v3909_v1, %v2533_v44  ;;  %v2691_v18 = vmul.f32 %v3911_v25, %v2531_v60  ;;  %v2408_v21 = vmul.f32 %v6315_v30, %v2376_v58  ;;  %v6386_v32 = vmul.f32 0.70710677, %v6361_v19 }
 0x26b   : > { %v2406_v15 = vmul.f32 %v6331_v3, %v2374_v45  ;;  %v2409_v10 = vmul.f32 %v6334_v9, %v2377_v54  ;;  %v2279_v14 = vmul.f32 1.0614054, %v6382_v26  ;;  %3916 = vrcp.f32 %v2220_v17 }
 0x26c   : > { %v2722_v39 = vsub.f32 1.0, %v2690_v4  ;;  %3918 = vpow2.f32 %v2650_v13  ;;  %v2656_v33 = vmul.f32 1.442695, %v2601_v12  ;;  %v6392_v16 = vmul.f32 0.5, %v6217_v41 }
 0x26d   : > { %vm2087_vm7 = vcmp.ge.f32.partialorder %v6290_v23, 0.0  ;;  %v2311_v1 = vadd.f32 -1.4531521, %v2279_v14  ;;  %v2652_v6 = vmul.f32 1.442695, %v2599_v55  ;;  %v6396_v29 = vmul.f32 0.5, %v6278_v24 }
 0x26e   : > { %v2725_v8 = vsub.f32 1.0, %v2693_v49  ;;  %v2723_v62 = vsub.f32 1.0, %v2691_v18  ;;  %v2440_v7 = vadd.f32 -0.28449672, %v2408_v21  ;;  %v2154_v25 = vand.u32 2147483647, %v6386_v32 }
 0x26f   : > { %v2438_v44 = vadd.f32 -0.28449672, %v2406_v15  ;;  %v2441_v60 = vadd.f32 -0.28449672, %v2409_v10  ;;  %v2343_v58 = vmul.f32 %v6382_v26, %v2311_v1  ;;  %v6401_v37 = vmul.f32 0.70710677, %v6380_v31 }
 0x270   : > { %v2754_v41 = vmul.f32 %v2722_v39, %v6233_v59  ;;  %3920 = vpow2.f32 %v2656_v33  ;;  %v6405_v23 = vsel %vm2087_vm7, 1.0, %v6828_v42  ;;  %v2186_v24 = vmul.f32 0.3275911, %v2154_v25 }
 0x271   : > { %v2375_v45 = vadd.f32 1.4214138, %v2343_v58  ;;  %3922 = vpow2.f32 %v2652_v6  ;;  %v2572_v46 = vsub.f32 0.0, %v6357_v43  ;;  %v6409_v4 = vand.u32 2147483647, %v6401_v37 }
 0x272   : > { %v2757_v13 = vmul.f32 %v2725_v8, %v6281_v2  ;;  %v2755_v54 = vmul.f32 %v2723_v62, %v6296_v47  ;;  %v2472_v12 = vmul.f32 %v6315_v30, %v2440_v7  ;;  %v2218_v55 = vadd.f32 1.0, %v2186_v24 }
 0x273   : > { %v3915_v59 = vpop.eup %3914  ;;  %v2470_v17 = vmul.f32 %v6331_v3, %v2438_v44  ;;  %v2473_v49 = vmul.f32 %v6334_v9, %v2441_v60  ;;  %v2407_v18 = vmul.f32 %v6382_v26, %v2375_v45  ;;  %v2189_v21 = vmul.f32 0.3275911, %v6409_v4 }
 0x274   : > { %v2818_v15 = vadd.f32 1.0, %v2754_v41  ;;  %vm2092_vm8 = vcmp.ge.f32.partialorder %v6346_v53, 0.0  ;;  %3924 = vrcp.f32 %v2218_v55  ;;  %v6421_v2 = vadd.f32 %v6205_v61, %v6076_v34 }
 0x275   : > { %v6423_v47 = vpop.eup %3916  ;;  %v2439_v10 = vadd.f32 -0.28449672, %v2407_v18  ;;  %v2604_v14 = vmul.f32 %v2572_v46, %v6357_v43  ;;  %vm2090_vm9 = vcmp.ge.f32.partialorder %v6386_v32, 0.0  ;;  %v2221_v39 = vadd.f32 1.0, %v2189_v21 }
 0x276   : > { %v3919_v33 = vpop.eup %3918  ;;  %v2821_v1 = vadd.f32 1.0, %v2757_v13  ;;  %v2819_v6 = vadd.f32 1.0, %v2755_v54  ;;  %v2504_v8 = vadd.f32 0.2548296, %v2472_v12  ;;  %v2284_v62 = vmul.f32 1.0614054, %v6423_v47 }
 0x277   : > { %v2502_v7 = vadd.f32 0.2548296, %v2470_v17  ;;  %v2505_v44 = vadd.f32 0.2548296, %v2473_v49  ;;  %v2471_v60 = vmul.f32 %v6382_v26, %v2439_v10  ;;  %3926 = vrcp.f32 %v2221_v39 }
 0x278   : > { %v2316_v34 = vadd.f32 -1.4531521, %v2284_v62  ;;  %v6430_v58 = vmul.f32 0.5, %v6323_v48  ;;  %v2570_v41 = vsub.f32 0.0, %v2154_v25  ;;  %v6433_v43 = vmul.f32 0.70710677, %v6421_v2 }
 0x279   : > { %v6436_v24 = vmul.f32 %v2818_v15, %v6243_v50  ;;  %v2503_v45 = vadd.f32 0.2548296, %v2471_v60  ;;  %v6441_v46 = vsel %vm2092_vm8, 1.0, %v6828_v42  ;;  %v6446_v13 = vsel %vm2090_vm9, 1.0, %v6828_v42 }
 0x27a   : > { %v3921_v48 = vpop.eup %3920  ;;  %v6449_v54 = vmul.f32 %v2821_v1, %v6247_v36  ;;  %v2348_v12 = vmul.f32 %v6423_v47, %v2316_v34  ;;  %v2662_v55 = vmul.f32 1.442695, %v2604_v14  ;;  %v2155_v50 = vand.u32 2147483647, %v6433_v43 }
 0x27b   : > { %v3923_v17 = vpop.eup %3922  ;;  %v6454_v49 = vmul.f32 %v2819_v6, %v6261_v63  ;;  %v2536_v53 = vmul.f32 %v6315_v30, %v2504_v8  ;;  %v2534_v18 = vmul.f32 %v6331_v3, %v2502_v7  ;;  %v2537_v32 = vmul.f32 %v6334_v9, %v2505_v44 }
 0x27c   : > { %v2380_v21 = vadd.f32 1.4214138, %v2348_v12  ;;  %v2602_v15 = vmul.f32 %v2570_v41, %v2154_v25  ;;  %v2573_v36 = vsub.f32 0.0, %v6409_v4  ;;  %v2187_v10 = vmul.f32 0.3275911, %v2155_v50 }
 0x27d   : > { %v2535_v39 = vmul.f32 %v6382_v26, %v2503_v45  ;;  %v2872_v14 = vpack.c.bf16 %v6293_v52, %v6250_v0  ;;  %v2873_v63 = vpack.c.bf16 %v6285_v57, %v6224_v22  ;;  %v6467_v30 = vadd.f32 %v6205_v61, %v6136_v28 }
 0x27e   : > { %v6469_v3 = vpop.eup %3924  ;;  %v2412_v9 = vmul.f32 %v6423_v47, %v2380_v21  ;;  %3928 = vpow2.f32 %v2662_v55  ;;  %v2219_v25 = vadd.f32 1.0, %v2187_v10  ;;  %v6474_v1 = vadd.f32 %v6205_v61, %v6145_v56 }
 0x27f   : > { %v2696_v26 = vmul.f32 %v3915_v59, %v2536_v53  ;;  %v2694_v6 = vmul.f32 %v3919_v33, %v2534_v18  ;;  %v2282_v0 = vmul.f32 1.0614054, %v6469_v3  ;;  %3667 = vmatprep.mubr.bf16.mxu1 %v2872_v14  ;;  %v6478_v22 = vmul.f32 0.70710677, %v6467_v30 }
 0x280   : > { %v2697_v28 = vmul.f32 %v3921_v48, %v2537_v32  ;;  %v2444_v57 = vadd.f32 -0.28449672, %v2412_v9  ;;  %v2658_v52 = vmul.f32 1.442695, %v2602_v15  ;;  %3930 = vrcp.f32 %v2219_v25  ;;  %3668 = vmatmul.mubr.bf16.gmra.mrb[12].mxu1 %v2873_v63 }
 0x281   : > { %v6480_v8 = vpop.eup %3926  ;;  %v2695_v62 = vmul.f32 %v3923_v17, %v2535_v39  ;;  %v2314_v7 = vadd.f32 -1.4531521, %v2282_v0  ;;  %v2605_v56 = vmul.f32 %v2573_v36, %v6409_v4  ;;  %v2160_v59 = vand.u32 2147483647, %v6478_v22 }
 0x282   : > { %v2476_v33 = vmul.f32 %v6423_v47, %v2444_v57  ;;  %v2285_v44 = vmul.f32 1.0614054, %v6480_v8  ;;  %v2571_v60 = vsub.f32 0.0, %v2155_v50  ;;  %v6487_v34 = vmul.f32 0.70710677, %v6474_v1 }
 0x283   : > { %v2728_v41 = vsub.f32 1.0, %v2696_v26  ;;  %v2346_v45 = vmul.f32 %v6469_v3, %v2314_v7  ;;  %vm2093_vm10 = vcmp.ge.f32.partialorder %v6401_v37, 0.0  ;;  %v2192_v48 = vmul.f32 0.3275911, %v2160_v59 }
 0x284   : > { %v2726_v12 = vsub.f32 1.0, %v2694_v6  ;;  %v2729_v55 = vsub.f32 1.0, %v2697_v28  ;;  %v2508_v17 = vadd.f32 0.2548296, %v2476_v33  ;;  %v2317_v4 = vadd.f32 -1.4531521, %v2285_v44 }
 0x285   : > { %v2727_v53 = vsub.f32 1.0, %v2695_v62  ;;  %v2378_v18 = vadd.f32 1.4214138, %v2346_v45  ;;  %v2664_v32 = vmul.f32 1.442695, %v2605_v56  ;;  %v2224_v21 = vadd.f32 1.0, %v2192_v48 }
 0x286   : > { %3932 = vpow2.f32 %v2658_v52  ;;  %v2349_v15 = vmul.f32 %v6480_v8, %v2317_v4  ;;  %v2603_v36 = vmul.f32 %v2571_v60, %v2155_v50  ;;  %v6493_v10 = vand.u32 2147483647, %v6487_v34 }
 0x287   : > { %v2760_v39 = vmul.f32 %v2728_v41, %v6339_v35  ;;  %v2410_v14 = vmul.f32 %v6469_v3, %v2378_v18  ;;  %3934 = vrcp.f32 %v2224_v21  ;;  %v6499_v63 = vadd.f32 %v6205_v61, %v6157_v20 }
 0x288   : > { %v3929_v9 = vpop.eup %3928  ;;  %v2758_v25 = vmul.f32 %v2726_v12, %v6342_v38  ;;  %v2540_v26 = vmul.f32 %v6423_v47, %v2508_v17  ;;  %v2381_v6 = vadd.f32 1.4214138, %v2349_v15  ;;  %v2190_v50 = vmul.f32 0.3275911, %v6493_v10 }
 0x289   : > { %v2759_v0 = vmul.f32 %v2727_v53, %v6405_v23  ;;  %v2442_v28 = vadd.f32 -0.28449672, %v2410_v14  ;;  %3936 = vpow2.f32 %v2664_v32  ;;  %v6506_v35 = vmul.f32 0.70710677, %v6499_v63 }
 0x28a   : > { %v6508_v57 = vpop.eup %3930  ;;  %v2761_v20 = vmul.f32 %v2729_v55, %v6372_v5  ;;  %v2413_v52 = vmul.f32 %v6480_v8, %v2381_v6  ;;  %v2660_v62 = vmul.f32 1.442695, %v2603_v36  ;;  %v2222_v38 = vadd.f32 1.0, %v2190_v50 }
 0x28b   : > { %v2474_v47 = vmul.f32 %v6469_v3, %v2442_v28  ;;  %v2283_v7 = vmul.f32 1.0614054, %v6508_v57  ;;  %v2576_v56 = vsub.f32 0.0, %v2160_v59  ;;  %v6515_v23 = vand.u32 2147483647, %v6506_v35 }
 0x28c   : > { %v2700_v33 = vmul.f32 %v3929_v9, %v2540_v26  ;;  %v2125_v44 = vsel %vm2093_vm10, 1.0, %v6828_v42  ;;  %v2445_v60 = vadd.f32 -0.28449672, %v2413_v52  ;;  %3938 = vrcp.f32 %v2222_v38 }
 0x28d   : > { %v2824_v5 = vadd.f32 1.0, %v2760_v39  ;;  %v2823_v41 = vadd.f32 1.0, %v2759_v0  ;;  %v2506_v45 = vadd.f32 0.2548296, %v2474_v47  ;;  %v2315_v48 = vadd.f32 -1.4531521, %v2283_v7 }
 0x28e   : > { %v2822_v12 = vadd.f32 1.0, %v2758_v25  ;;  %v2825_v55 = vadd.f32 1.0, %v2761_v20  ;;  %v2477_v17 = vmul.f32 %v6480_v8, %v2445_v60  ;;  %v2193_v4 = vmul.f32 0.3275911, %v6515_v23 }
 0x28f   : > { %v2347_v53 = vmul.f32 %v6508_v57, %v2315_v48  ;;  %3940 = vpow2.f32 %v2660_v62  ;;  %v2608_v18 = vmul.f32 %v2576_v56, %v2160_v59  ;;  %v6525_v37 = vadd.f32 %v6205_v61, %v6164_v40 }
 0x290   : > { %v3933_v32 = vpop.eup %3932  ;;  %v2732_v21 = vsub.f32 1.0, %v2700_v33  ;;  %v2509_v15 = vadd.f32 0.2548296, %v2477_v17  ;;  %v2225_v36 = vadd.f32 1.0, %v2193_v4  ;;  %v2874_v39 = vpack.c.bf16 %v6454_v49, %v6436_v24 }
 0x291   : > { %v6529_v14 = vpop.eup %3934  ;;  %v2855_v9 = vmul.f32 %v2823_v41, %v6396_v29  ;;  %v2538_v25 = vmul.f32 %v6469_v3, %v2506_v45  ;;  %v2379_v26 = vadd.f32 1.4214138, %v2347_v53  ;;  %v6534_v59 = vmul.f32 0.70710677, %v6525_v37 }
 0x292   : > { %v2856_v40 = vmul.f32 %v2824_v5, %v6303_v11  ;;  %v2541_v61 = vmul.f32 %v6480_v8, %v2509_v15  ;;  %v2288_v6 = vmul.f32 1.0614054, %v6529_v14  ;;  %3942 = vrcp.f32 %v2225_v36  ;;  %3671 = vmatprep.mubr.bf16.mxu1 %v2874_v39 }
 0x293   : > { %v3937_v50 = vpop.eup %3936  ;;  %v2854_v24 = vmul.f32 %v2822_v12, %v6319_v51  ;;  %v2857_v49 = vmul.f32 %v2825_v55, %v6392_v16  ;;  %v2411_v29 = vmul.f32 %v6508_v57, %v2379_v26  ;;  %v2670_v3 = vmul.f32 1.442695, %v2608_v18 }
 0x294   : > { %v2764_v0 = vmul.f32 %v2732_v21, %v6441_v46  ;;  %v2701_v28 = vmul.f32 %v3937_v50, %v2541_v61  ;;  %v2320_v20 = vadd.f32 -1.4531521, %v2288_v6  ;;  %v6544_v11 = vand.u32 2147483647, %v6534_v59 }
 0x295   : > { %v2698_v8 = vmul.f32 %v3933_v32, %v2538_v25  ;;  %v2443_v52 = vadd.f32 -0.28449672, %v2411_v29  ;;  %v2875_v62 = vpack.c.bf16 %v6449_v54, %v6367_v27  ;;  %v2876_v38 = vpack.c.bf16 %v2855_v9, %v2854_v24 }
 0x296   : > { %v6548_v47 = vpop.eup %3938  ;;  %v2733_v51 = vsub.f32 1.0, %v2701_v28  ;;  %v2352_v16 = vmul.f32 %v6529_v14, %v2320_v20  ;;  %v2574_v7 = vsub.f32 0.0, %v6493_v10  ;;  %v2191_v46 = vmul.f32 0.3275911, %v6544_v11 }
 0x297   : > { %v2475_v56 = vmul.f32 %v6508_v57, %v2443_v52  ;;  %v2286_v33 = vmul.f32 1.0614054, %v6548_v47  ;;  %v2577_v60 = vsub.f32 0.0, %v6515_v23  ;;  %3672 = vmatmul.mubr.bf16.gmra.mrb[16].mxu1 %v2875_v62  ;;  %v2877_v5 = vpack.c.bf16 %v2857_v49, %v2856_v40 }
 0x298   : > { %v2828_v41 = vadd.f32 1.0, %v2764_v0  ;;  %v2765_v27 = vmul.f32 %v2733_v51, %v2125_v44  ;;  %v2384_v54 = vadd.f32 1.4214138, %v2352_v16  ;;  %v2223_v45 = vadd.f32 1.0, %v2191_v46  ;;  %3675 = vmatprep.mubr.bf16.mxu1 %v2876_v38 }
 0x299   : > { %v3941_v48 = vpop.eup %3940  ;;  %v2730_v12 = vsub.f32 1.0, %v2698_v8  ;;  %v2797_v55 = vmul.f32 0.5, %v6380_v31  ;;  %v2507_v17 = vadd.f32 0.2548296, %v2475_v56  ;;  %v2318_v4 = vadd.f32 -1.4531521, %v2286_v33 }
 0x29a   : > { %v2829_v53 = vadd.f32 1.0, %v2765_v27  ;;  %vm2091_vm11 = vcmp.ge.f32.partialorder %v6433_v43, 0.0  ;;  %v2416_v18 = vmul.f32 %v6529_v14, %v2384_v54  ;;  %3944 = vrcp.f32 %v2223_v45 }
 0x29b   : > { %v2539_v32 = vmul.f32 %v6508_v57, %v2507_v17  ;;  %3946 = vpow2.f32 %v2670_v3  ;;  %v2350_v44 = vmul.f32 %v6548_v47, %v2318_v4  ;;  %v2606_v21 = vmul.f32 %v2574_v7, %v6493_v10 }
 0x29c   : > { %v3943_v15 = vpop.eup %3942  ;;  %v2860_v36 = vmul.f32 %v2828_v41, %v6430_v58  ;;  %v2861_v39 = vmul.f32 %v2829_v53, %v2797_v55  ;;  %v2448_v31 = vadd.f32 -0.28449672, %v2416_v18  ;;  %v2609_v9 = vmul.f32 %v2577_v60, %v6515_v23 }
 0x29d   : > { %v2762_v25 = vmul.f32 %v2730_v12, %v6446_v13  ;;  %v2699_v26 = vmul.f32 %v3941_v48, %v2539_v32  ;;  %v2382_v40 = vadd.f32 1.4214138, %v2350_v44  ;;  %v2289_v61 = vmul.f32 1.0614054, %v3943_v15 }
 0x29e   : > { %v2480_v6 = vmul.f32 %v6529_v14, %v2448_v31  ;;  %v2879_v57 = vpack.c.bf16 %v2861_v39, %v2860_v36  ;;  %v2666_v49 = vmul.f32 1.442695, %v2606_v21  ;;  %v2123_v58 = vsel %vm2091_vm11, 1.0, %v6828_v42 }
 0x29f   : > { %v2731_v50 = vsub.f32 1.0, %v2699_v26  ;;  %v2414_v24 = vmul.f32 %v6548_v47, %v2382_v40  ;;  %v2321_v10 = vadd.f32 -1.4531521, %v2289_v61  ;;  %3676 = vmatmul.mubr.bf16.gmra.mrb[20].mxu1 %v2877_v5  ;;  %v2672_v23 = vmul.f32 1.442695, %v2609_v9 }
 0x2a0   : > { %v2512_v29 = vadd.f32 0.2548296, %v2480_v6  ;;  %v2575_v13 = vsub.f32 0.0, %v6544_v11  ;;  %v2826_v3 = vadd.f32 1.0, %v2762_v25  ;;  %v2794_v8 = vmul.f32 0.5, %v6361_v19 }
 0x2a1   : > { %v2763_v0 = vmul.f32 %v2731_v50, %v2123_v58  ;;  %v2446_v28 = vadd.f32 -0.28449672, %v2414_v24  ;;  %v2353_v20 = vmul.f32 %v3943_v15, %v2321_v10  ;;  %v2795_v52 = vmul.f32 0.5, %v6421_v2 }
 0x2a2   : > { %v2544_v62 = vmul.f32 %v6529_v14, %v2512_v29  ;;  %3948 = vpow2.f32 %v2666_v49  ;;  %v2607_v7 = vmul.f32 %v2575_v13, %v6544_v11  ;;  %v2858_v56 = vmul.f32 %v2826_v3, %v2794_v8 }
 0x2a3   : > { %v2827_v38 = vadd.f32 1.0, %v2763_v0  ;;  %v2478_v51 = vmul.f32 %v6548_v47, %v2446_v28  ;;  %v2385_v43 = vadd.f32 1.4214138, %v2353_v20  ;;  %3950 = vpow2.f32 %v2672_v23 }
 0x2a4   : > { %v3945_v16 = vpop.eup %3944  ;;  %v2668_v14 = vmul.f32 1.442695, %v2607_v7  ;;  %vm2096_vm12 = vcmp.ge.f32.partialorder %v6478_v22, 0.0  ;;  %vm2097_vm13 = vcmp.ge.f32.partialorder %v6506_v35, 0.0  ;;  %vm2094_vm14 = vcmp.ge.f32.partialorder %v6487_v34, 0.0 }
 0x2a5   : > { %v3947_v46 = vpop.eup %3946  ;;  %v2859_v33 = vmul.f32 %v2827_v38, %v2795_v52  ;;  %v2417_v60 = vmul.f32 %v3943_v15, %v2385_v43  ;;  %v2287_v5 = vmul.f32 1.0614054, %v3945_v16  ;;  %v2510_v19 = vadd.f32 0.2548296, %v2478_v51  ;;  %v6593_v52 = vld [vmem:[%s6797_s8] ss:$0 sm:$0xff] }
 0x2a6   : > { %v2704_v41 = vmul.f32 %v3947_v46, %v2544_v62  ;;  %3952 = vpow2.f32 %v2668_v14  ;;  %v2128_v44 = vsel %vm2096_vm12, 1.0, %v6828_v42  ;;  %v2800_v61 = vmul.f32 0.5, %v6467_v30  ;;  %v3968_v14 = vld [vmem:[%s4221_s11 + $0x21] sm:$0xff] }
 0x2a7   : > { %v2449_v27 = vadd.f32 -0.28449672, %v2417_v60  ;;  %v2319_v2 = vadd.f32 -1.4531521, %v2287_v5  ;;  %v2878_v54 = vpack.c.bf16 %v2859_v33, %v2858_v56  ;;  %v2542_v11 = vmul.f32 %v6548_v47, %v2510_v19  ;;  %v3965_v33 = vld [vmem:[%s4221_s11 + $0x31] sm:$0xff] }
 0x2a8   : > { %v2736_v12 = vsub.f32 1.0, %v2704_v41  ;;  %v2129_v47 = vsel %vm2097_vm13, 1.0, %v6828_v42  ;;  %v2801_v6 = vmul.f32 0.5, %v6499_v63  ;;  %v2126_v24 = vsel %vm2094_vm14, 1.0, %v6828_v42  ;;  %v3966_v41 = vld [vmem:[%s4221_s11 + $0x19] sm:$0xff] }
 0x2a9   : > { %v2481_v45 = vmul.f32 %v3943_v15, %v2449_v27  ;;  %v2351_v48 = vmul.f32 %v3945_v16, %v2319_v2  ;;  %3679 = vmatprep.mubr.bf16.mxu1 %v2878_v54  ;;  %vm2095_vm15 = vcmp.ge.f32.partialorder %v6534_v59, 0.0  ;;  %v2798_v63 = vmul.f32 0.5, %v6474_v1  ;;  %v6598_v1 = vld [vmem:[%s6798_s9] ss:$0 sm:$0xff] }
 0x2aa   : > { %3680 = vmatmul.mubr.bf16.gmra.mrb[24].mxu1 %v2879_v57  ;;  %v2768_v21 = vmul.f32 %v2736_v12, %v2128_v44  ;;  %v2127_v13 = vsel %vm2095_vm15, 1.0, %v6828_v42  ;;  %v2799_v0 = vmul.f32 0.5, %v6525_v37  ;;  %v3967_v2 = vld [vmem:[%s4221_s11 + $0x39] sm:$0xff] }
 0x2ab   : > { %v2513_v55 = vadd.f32 0.2548296, %v2481_v45  ;;  %v2383_v17 = vadd.f32 1.4214138, %v2351_v48 }
 0x2ac   : > { %v3949_v4 = vpop.eup %3948  ;;  %v2832_v25 = vadd.f32 1.0, %v2768_v21  ;;  %v3969_v21 = vld [vmem:[%s4221_s11 + $0x61] sm:$0xff] }
 0x2ad   : > { %v2545_v53 = vmul.f32 %v3943_v15, %v2513_v55  ;;  %v2415_v18 = vmul.f32 %v3945_v16, %v2383_v17  ;;  %v3951_v32 = vpop.eup %3950  ;;  %v2702_v36 = vmul.f32 %v3949_v4, %v2542_v11 }
 0x2ae   : > { %v2864_v49 = vmul.f32 %v2832_v25, %v2800_v61 }
 0x2af   : > { %v2705_v39 = vmul.f32 %v3951_v32, %v2545_v53  ;;  %v2447_v31 = vadd.f32 -0.28449672, %v2415_v18  ;;  %v2734_v26 = vsub.f32 1.0, %v2702_v36 }
 0x2b0   : > { %v3953_v50 = vpop.eup %3952 }
 0x2b1   : > { %v2737_v22 = vsub.f32 1.0, %v2705_v39  ;;  %v2479_v9 = vmul.f32 %v3945_v16, %v2447_v31  ;;  %v2766_v10 = vmul.f32 %v2734_v26, %v2126_v24  ;;  %v3970_v31 = vld [vmem:[%s4221_s11 + $0x49] sm:$0xff]  ;;  %v3972_v26 = vld [vmem:[%s4221_s11 + $0x51] sm:$0xff] }
 0x2b3   : > { %v2769_v40 = vmul.f32 %v2737_v22, %v2129_v47  ;;  %v2511_v15 = vadd.f32 0.2548296, %v2479_v9  ;;  %v2830_v30 = vadd.f32 1.0, %v2766_v10  ;;  %v3971_v47 = vld [vmem:[%s4221_s11 + $0x69] sm:$0xff] }
 0x2b5   : > { %v2833_v57 = vadd.f32 1.0, %v2769_v40  ;;  %v2543_v35 = vmul.f32 %v3945_v16, %v2511_v15  ;;  %v2862_v20 = vmul.f32 %v2830_v30, %v2798_v63  ;;  %v3975_v63 = vld [vmem:[%s4221_s11 + $0x99] sm:$0xff] }
 0x2b7   : > { %v2865_v34 = vmul.f32 %v2833_v57, %v2801_v6  ;;  %v2703_v58 = vmul.f32 %v3953_v50, %v2543_v35 }
 0x2b9   : > { %v2735_v29 = vsub.f32 1.0, %v2703_v58  ;;  %v2881_v23 = vpack.c.bf16 %v2865_v34, %v2864_v49  ;;  %v3973_v58 = vld [vmem:[%s4221_s11 + $0x91] sm:$0xff] }
 0x2bb   : > { %v2767_v3 = vmul.f32 %v2735_v29, %v2127_v13  ;;  %v3974_v13 = vld [vmem:[%s4221_s11 + $0x79] sm:$0xff] }
 0x2bd   : > { %v2831_v28 = vadd.f32 1.0, %v2767_v3 }
 0x2bf   : > { %v2863_v8 = vmul.f32 %v2831_v28, %v2799_v0  ;;  %v3976_v28 = vld [vmem:[%s4221_s11 + $0x81] sm:$0xff] }
 0x2c1   : > { %v2880_v59 = vpack.c.bf16 %v2863_v8, %v2862_v20 }
 0x2c3   : > { %3683 = vmatprep.mubr.bf16.mxu1 %v2880_v59 }
 0x2c4   : > { %3684 = vmatmul.mubr.bf16.gmra.mrb[28].mxu1 %v2881_v23 }
 0x317   : > { %v3657_v42 = vpop.f32.mrb[0].mxu1 }
 0x318   : > { %v2996_v37 = vadd.f32 %v3657_v42, %v6593_v52  ;;  %v2987_v62 = vpop.f32.mrb[1].mxu1 }
 0x319   : > { %v2988_v38 = vadd.f32 %v6593_v52, %v2987_v62  ;;  %v3658_v51 = vpop.f32.mrb[2].mxu1 }
 0x31a   : > { %v3123_v43 = vmul.f32 %v6598_v1, %v2996_v37  ;;  %v2999_v16 = vadd.f32 %v3658_v51, %v6593_v52  ;;  %v2990_v7 = vpop.f32.mrb[3].mxu1 }
 0x31b   : > { %v3121_v46 = vmul.f32 %v6598_v1, %v2988_v38  ;;  %v2991_v56 = vadd.f32 %v6593_v52, %v2990_v7 }
 0x31c   : > { %v3155_v60 = vadd.f32 %v3965_v33, %v3123_v43  ;;  %v3124_v5 = vmul.f32 %v6598_v1, %v2999_v16 }
 0x31d   : > { %v3153_v19 = vadd.f32 %v3966_v41, %v3121_v46  ;;  %v3122_v27 = vmul.f32 %v6598_v1, %v2991_v56  ;;  %v3977_v46 = vld [vmem:[%s4221_s11 + $0xc1] sm:$0xff] }
 0x31e   : > { %3187 = vst [vmem:[%s6612_s29 + $0x10] sm:$0xff] %v3155_v60  ;;  %v3156_v54 = vadd.f32 %v3967_v2, %v3124_v5  ;;  %v3978_v60 = vld [vmem:[%s4221_s11 + $0xa9] sm:$0xff]  ;;  %v3980_v2 = vld [vmem:[%s4221_s11 + $0xb1] sm:$0xff] }
 0x31f   : > { %3185 = vst [vmem:[%s6612_s29] sm:$0xff] %v3153_v19  ;;  %v3154_v45 = vadd.f32 %v3968_v14, %v3122_v27  ;;  %v3661_v48 = vpop.f32.mrb[4].mxu1  ;;  %v3979_v19 = vld [vmem:[%s4221_s11 + $0xc9] sm:$0xff] }
 0x320   : > { %3188 = vst [vmem:[%s6612_s29 + $0x18] sm:$0xff] %v3156_v54  ;;  %v3012_v12 = vadd.f32 %v3661_v48, %v6593_v52  ;;  %v3003_v11 = vpop.f32.mrb[5].mxu1 }
 0x321   : > { %3186 = vst [vmem:[%s6612_s29 + $0x8] sm:$0xff] %v3154_v45  ;;  %v3004_v55 = vadd.f32 %v6593_v52, %v3003_v11  ;;  %v3662_v17 = vpop.f32.mrb[6].mxu1 }
 0x322   : > { %v3127_v4 = vmul.f32 %v6598_v1, %v3012_v12  ;;  %v3015_v53 = vadd.f32 %v3662_v17, %v6593_v52  ;;  %v3006_v18 = vpop.f32.mrb[7].mxu1 }
 0x323   : > { %v3125_v32 = vmul.f32 %v6598_v1, %v3004_v55  ;;  %v3007_v44 = vadd.f32 %v6593_v52, %v3006_v18 }
 0x324   : > { %v3159_v36 = vadd.f32 %v3969_v21, %v3127_v4  ;;  %v3128_v39 = vmul.f32 %v6598_v1, %v3015_v53 }
 0x325   : > { %v3157_v22 = vadd.f32 %v3970_v31, %v3125_v32  ;;  %v3126_v9 = vmul.f32 %v6598_v1, %v3007_v44  ;;  %v3981_v32 = vld [vmem:[%s4221_s11 + $0xf1] sm:$0xff] }
 0x326   : > { %3191 = vst [vmem:[%s6612_s29 + $0x30] sm:$0xff] %v3159_v36  ;;  %v3160_v25 = vadd.f32 %v3971_v47, %v3128_v39  ;;  %v3982_v36 = vld [vmem:[%s4221_s11 + $0xd9] sm:$0xff]  ;;  %v3984_v47 = vld [vmem:[%s4221_s11 + $0xe1] sm:$0xff] }
 0x327   : > { %3189 = vst [vmem:[%s6612_s29 + $0x20] sm:$0xff] %v3157_v22  ;;  %v3158_v40 = vadd.f32 %v3972_v26, %v3126_v9  ;;  %v3983_v22 = vld [vmem:[%s4221_s11 + $0xf9] sm:$0xff] }
 0x328   : > { %3192 = vst [vmem:[%s6612_s29 + $0x38] sm:$0xff] %v3160_v25 }
 0x329   : > { %3190 = vst [vmem:[%s6612_s29 + $0x28] sm:$0xff] %v3158_v40 }
 0x330   : > { %v3665_v15 = vpop.f32.mrb[8].mxu1 }
 0x331   : > { %v3028_v61 = vadd.f32 %v3665_v15, %v6593_v52  ;;  %v3019_v6 = vpop.f32.mrb[9].mxu1 }
 0x332   : > { %v3020_v57 = vadd.f32 %v6593_v52, %v3019_v6  ;;  %v3666_v35 = vpop.f32.mrb[10].mxu1 }
 0x333   : > { %v3131_v50 = vmul.f32 %v6598_v1, %v3028_v61  ;;  %v3031_v24 = vadd.f32 %v3666_v35, %v6593_v52  ;;  %v3022_v49 = vpop.f32.mrb[11].mxu1 }
 0x334   : > { %v3129_v10 = vmul.f32 %v6598_v1, %v3020_v57  ;;  %v3023_v34 = vadd.f32 %v6593_v52, %v3022_v49 }
 0x335   : > { %v3163_v29 = vadd.f32 %v3973_v58, %v3131_v50  ;;  %v3132_v23 = vmul.f32 %v6598_v1, %v3031_v24 }
 0x336   : > { %v3161_v30 = vadd.f32 %v3974_v13, %v3129_v10  ;;  %v3130_v3 = vmul.f32 %v6598_v1, %v3023_v34  ;;  %v3985_v10 = vld [vmem:[%s4221_s11 + $0x121] sm:$0xff] }
 0x337   : > { %3195 = vst [vmem:[%s6612_s29 + $0x50] sm:$0xff] %v3163_v29  ;;  %v3164_v0 = vadd.f32 %v3975_v63, %v3132_v23  ;;  %v3986_v29 = vld [vmem:[%s4221_s11 + $0x109] sm:$0xff]  ;;  %v3988_v63 = vld [vmem:[%s4221_s11 + $0x111] sm:$0xff] }
 0x338   : > { %3193 = vst [vmem:[%s6612_s29 + $0x40] sm:$0xff] %v3161_v30  ;;  %v3162_v20 = vadd.f32 %v3976_v28, %v3130_v3  ;;  %v3987_v30 = vld [vmem:[%s4221_s11 + $0x129] sm:$0xff] }
 0x339   : > { %3196 = vst [vmem:[%s6612_s29 + $0x58] sm:$0xff] %v3164_v0 }
 0x33a   : > { %3194 = vst [vmem:[%s6612_s29 + $0x48] sm:$0xff] %v3162_v20 }
 0x353   : > { %v3669_v8 = vpop.f32.mrb[12].mxu1 }
 0x354   : > { %v3044_v59 = vadd.f32 %v3669_v8, %v6593_v52  ;;  %v3035_v42 = vpop.f32.mrb[13].mxu1 }
 0x355   : > { %v3036_v37 = vadd.f32 %v6593_v52, %v3035_v42  ;;  %v3670_v62 = vpop.f32.mrb[14].mxu1 }
 0x356   : > { %v3135_v38 = vmul.f32 %v6598_v1, %v3044_v59  ;;  %v3047_v51 = vadd.f32 %v3670_v62, %v6593_v52  ;;  %v3038_v43 = vpop.f32.mrb[15].mxu1 }
 0x357   : > { %v3133_v16 = vmul.f32 %v6598_v1, %v3036_v37  ;;  %v3039_v7 = vadd.f32 %v6593_v52, %v3038_v43 }
 0x358   : > { %v3167_v56 = vadd.f32 %v3977_v46, %v3135_v38  ;;  %v3136_v33 = vmul.f32 %v6598_v1, %v3047_v51 }
 0x359   : > { %v3165_v5 = vadd.f32 %v3978_v60, %v3133_v16  ;;  %v3134_v41 = vmul.f32 %v6598_v1, %v3039_v7  ;;  %v3989_v16 = vld [vmem:[%s4221_s11 + $0x151] sm:$0xff] }
 0x35a   : > { %3199 = vst [vmem:[%s6612_s29 + $0x70] sm:$0xff] %v3167_v56  ;;  %v3168_v27 = vadd.f32 %v3979_v19, %v3136_v33  ;;  %v3990_v56 = vld [vmem:[%s4221_s11 + $0x139] sm:$0xff]  ;;  %v3992_v19 = vld [vmem:[%s4221_s11 + $0x141] sm:$0xff] }
 0x35b   : > { %3197 = vst [vmem:[%s6612_s29 + $0x60] sm:$0xff] %v3165_v5  ;;  %v3166_v54 = vadd.f32 %v3980_v2, %v3134_v41  ;;  %v3991_v5 = vld [vmem:[%s4221_s11 + $0x159] sm:$0xff] }
 0x35c   : > { %3200 = vst [vmem:[%s6612_s29 + $0x78] sm:$0xff] %v3168_v27 }
 0x35d   : > { %3198 = vst [vmem:[%s6612_s29 + $0x68] sm:$0xff] %v3166_v54 }
 0x36a   : > { %v3673_v14 = vpop.f32.mrb[16].mxu1 }
 0x36b   : > { %v3060_v45 = vadd.f32 %v3673_v14, %v6593_v52  ;;  %v3051_v48 = vpop.f32.mrb[17].mxu1 }
 0x36c   : > { %v3052_v12 = vadd.f32 %v6593_v52, %v3051_v48  ;;  %v3674_v11 = vpop.f32.mrb[18].mxu1 }
 0x36d   : > { %v3139_v55 = vmul.f32 %v6598_v1, %v3060_v45  ;;  %v3063_v17 = vadd.f32 %v3674_v11, %v6593_v52  ;;  %v3054_v4 = vpop.f32.mrb[19].mxu1 }
 0x36e   : > { %v3137_v53 = vmul.f32 %v6598_v1, %v3052_v12  ;;  %v3055_v18 = vadd.f32 %v6593_v52, %v3054_v4 }
 0x36f   : > { %v3171_v44 = vadd.f32 %v3981_v32, %v3139_v55  ;;  %v3140_v21 = vmul.f32 %v6598_v1, %v3063_v17 }
 0x370   : > { %v3169_v39 = vadd.f32 %v3982_v36, %v3137_v53  ;;  %v3138_v31 = vmul.f32 %v6598_v1, %v3055_v18  ;;  %v3993_v53 = vld [vmem:[%s4221_s11 + $0x181] sm:$0xff] }
 0x371   : > { %3203 = vst [vmem:[%s6612_s29 + $0x90] sm:$0xff] %v3171_v44  ;;  %v3172_v9 = vadd.f32 %v3983_v22, %v3140_v21  ;;  %v3994_v44 = vld [vmem:[%s4221_s11 + $0x169] sm:$0xff] }
 0x372   : > { %3201 = vst [vmem:[%s6612_s29 + $0x80] sm:$0xff] %v3169_v39  ;;  %v3170_v25 = vadd.f32 %v3984_v47, %v3138_v31  ;;  %v3677_v26 = vpop.f32.mrb[20].mxu1  ;;  %v3995_v39 = vld [vmem:[%s4221_s11 + $0x189] sm:$0xff] }
 0x373   : > { %3204 = vst [vmem:[%s6612_s29 + $0x98] sm:$0xff] %v3172_v9  ;;  %v3076_v40 = vadd.f32 %v3677_v26, %v6593_v52  ;;  %v3067_v15 = vpop.f32.mrb[21].mxu1 }
 0x374   : > { %3202 = vst [vmem:[%s6612_s29 + $0x88] sm:$0xff] %v3170_v25  ;;  %v3068_v61 = vadd.f32 %v6593_v52, %v3067_v15  ;;  %v3678_v6 = vpop.f32.mrb[22].mxu1 }
 0x375   : > { %v3143_v57 = vmul.f32 %v6598_v1, %v3076_v40  ;;  %v3079_v35 = vadd.f32 %v3678_v6, %v6593_v52  ;;  %v3070_v50 = vpop.f32.mrb[23].mxu1 }
 0x376   : > { %v3141_v24 = vmul.f32 %v6598_v1, %v3068_v61  ;;  %v3071_v49 = vadd.f32 %v6593_v52, %v3070_v50 }
 0x377   : > { %v3175_v34 = vadd.f32 %v3985_v10, %v3143_v57  ;;  %v3144_v58 = vmul.f32 %v6598_v1, %v3079_v35 }
 0x378   : > { %v3173_v23 = vadd.f32 %v3986_v29, %v3141_v24  ;;  %v3142_v13 = vmul.f32 %v6598_v1, %v3071_v49 }
 0x379   : > { %3207 = vst [vmem:[%s6612_s29 + $0xb0] sm:$0xff] %v3175_v34  ;;  %v3176_v3 = vadd.f32 %v3987_v30, %v3144_v58 }
 0x37a   : > { %3205 = vst [vmem:[%s6612_s29 + $0xa0] sm:$0xff] %v3173_v23  ;;  %v3174_v0 = vadd.f32 %v3988_v63, %v3142_v13 }
 0x37b   : > { %3208 = vst [vmem:[%s6612_s29 + $0xb8] sm:$0xff] %v3176_v3 }
 0x37c   : > { %3206 = vst [vmem:[%s6612_s29 + $0xa8] sm:$0xff] %v3174_v0 }
 0x37d   : > { %v3681_v28 = vpop.f32.mrb[24].mxu1 }
 0x37e   : > { %v3092_v20 = vadd.f32 %v3681_v28, %v6593_v52  ;;  %v3083_v8 = vpop.f32.mrb[25].mxu1 }
 0x37f   : > { %v3084_v59 = vadd.f32 %v6593_v52, %v3083_v8  ;;  %v3682_v42 = vpop.f32.mrb[26].mxu1 }
 0x380   : > { %v3147_v37 = vmul.f32 %v6598_v1, %v3092_v20  ;;  %v3095_v62 = vadd.f32 %v3682_v42, %v6593_v52  ;;  %v3086_v38 = vpop.f32.mrb[27].mxu1 }
 0x381   : > { %v3145_v51 = vmul.f32 %v6598_v1, %v3084_v59  ;;  %v3087_v43 = vadd.f32 %v6593_v52, %v3086_v38 }
 0x382   : > { %v3179_v7 = vadd.f32 %v3989_v16, %v3147_v37  ;;  %v3148_v46 = vmul.f32 %v6598_v1, %v3095_v62 }
 0x383   : > { %v3177_v33 = vadd.f32 %v3990_v56, %v3145_v51  ;;  %v3146_v60 = vmul.f32 %v6598_v1, %v3087_v43 }
 0x384   : > { %3211 = vst [vmem:[%s6612_s29 + $0xd0] sm:$0xff] %v3179_v7  ;;  %v3180_v41 = vadd.f32 %v3991_v5, %v3148_v46 }
 0x385   : > { %3209 = vst [vmem:[%s6612_s29 + $0xc0] sm:$0xff] %v3177_v33  ;;  %v3178_v27 = vadd.f32 %v3992_v19, %v3146_v60 }
 0x386   : > { %3212 = vst [vmem:[%s6612_s29 + $0xd8] sm:$0xff] %v3180_v41 }
 0x387   : > { %3210 = vst [vmem:[%s6612_s29 + $0xc8] sm:$0xff] %v3178_v27 }
 0x397   : > { %v3685_v2 = vpop.f32.mrb[28].mxu1 }
 0x398   : > { %v3108_v54 = vadd.f32 %v3685_v2, %v6593_v52  ;;  %v3099_v14 = vpop.f32.mrb[29].mxu1 }
 0x399   : > { %v3100_v45 = vadd.f32 %v6593_v52, %v3099_v14  ;;  %v3686_v48 = vpop.f32.mrb[30].mxu1 }
 0x39a   : > { %v3151_v12 = vmul.f32 %v6598_v1, %v3108_v54  ;;  %v3111_v11 = vadd.f32 %v3686_v48, %v6593_v52  ;;  %v3102_v55 = vpop.f32.mrb[31].mxu1 }
 0x39b   : > { %v3149_v17 = vmul.f32 %v6598_v1, %v3100_v45  ;;  %v3103_v4 = vadd.f32 %v6593_v52, %v3102_v55  ;;  %v3996_v52 = vld [vmem:[%s4221_s11 + $0x171] sm:$0xff] }
 0x39c   : > { %v3183_v18 = vadd.f32 %v3993_v53, %v3151_v12  ;;  %v3152_v32 = vmul.f32 %v6598_v1, %v3111_v11 }
 0x39d   : > { %v3181_v21 = vadd.f32 %v3994_v44, %v3149_v17  ;;  %v3150_v36 = vmul.f32 %v6598_v1, %v3103_v4 }
 0x39e   : > { %3215 = vst [vmem:[%s6612_s29 + $0xf0] sm:$0xff] %v3183_v18  ;;  %v3184_v31 = vadd.f32 %v3995_v39, %v3152_v32 }
 0x39f   : > { %3213 = vst [vmem:[%s6612_s29 + $0xe0] sm:$0xff] %v3181_v21  ;;  %v3182_v22 = vadd.f32 %v3996_v52, %v3150_v36 }
 0x3a0   : > { %3216 = vst [vmem:[%s6612_s29 + $0xf8] sm:$0xff] %v3184_v31 }
 0x3a1   : > { %3214 = vst [vmem:[%s6612_s29 + $0xe8] sm:$0xff] %v3182_v22 }
 0x3a2   : > { %4010 = shalt.err (!%p4007_p5)
}
 0x3a3   : > { %s4011_s11 = scalar_lea.hbm %s6733_s16, 4096  ;;  %s4015_s30 = scalar_lea.hbm %s6799_s10, 8192 }
 0x3a4   : > { %p4012_p6 = scmp.ne.s32.totalorder %s6733_s16, %s4011_s11  ;;  %p4016_p10 = scmp.lt.u32.totalorder %s6733_s16, %s6799_s10 }
 0x3a5   : > { %p4017_p11 = scmp.lt.u32.totalorder %s4015_s30, %s4011_s11  ;;  %p4019_p13 = scmp.lt.u32.totalorder %s4011_s11, %s6733_s16 }
 0x3a6   : > { %p4013_p7 = pnand %p4012_p6, %p4176_p4 }
 0x3a7   : > { %p4018_p12 = por %p4017_p11, %p4016_p10 }
 0x3a8   : > { %p4014_p9 = pneg %p4013_p7 }
 0x3a9   : > { %p4020_p0 = por %p4019_p13, %p4018_p12 }
 0x3ab   : > { %p4021_p1 = pnand %p4020_p0, %p4014_p9 }
 0x3ad   : > { %4024 = shalt.err (!%p4021_p1)
}
 0x3ae   : > { %s4079_s20 = smov 128   ;;  %s4080_s22 = smov 8  }
 0x3af   : > { %3688 = dma.vmem_to_hbm [thread:$0]  (%p4176_p4), %s6735_s27, 4096, %s6733_s16, %s6743_s19, %s4079_s20, %s4079_s20, %s4080_s22  }
 0x3b0 PF: > { %p3694_p2 = scmp.ge.s32.totalorder %s4075_s18, 2  ;;  %s3249_s24 = sand.u32 1, %s4055_s13  }
 0x3b1   : > { %s3250_s28 = scalar_lea.sflag [#allocation3], %s3249_s24 }
 0x3b2   : > { %p3691_p3 = pnand %p3694_p2, %p4183_p8 }
 0x3b4   : > { %4050 = dma.done.wait (!%p3691_p3), %s3250_s28, 4096  }
 0x3b5   : > { %4052 = vsyncadd (!%p3691_p3), %s3250_s28, 4294963200  ;;  %s23_s18 = sadd.s32 1, %s4075_s18   ;;  %s6850_s16 = sld [smem:[#allocation5_spill]] }
 0x3b6   : > { %p20_p5 = scmp.ge.s32.totalorder %s23_s18, 4   ;;  %s6851_s17 = sld [smem:[#allocation6_spill]] }
 0x3b7   : > { %s6852_s13 = smov %s4059_s14  ;;  %s6853_s14 = smov %s4063_s15 }
 0x3b8   : > { %s6854_s15 = smov %s4189_s26  ;;  %22 = sbr.rel (!%p20_p5) target bundleno = 4 (0x4), region = 97 }
 0x3bf   :  { %3255 = vsyncpa [#allocation3], 1 }
 0x3c0   :  { %3257 = vsyncpa [#allocation3 + $0x1], 1 }

</bundles_post_ra>
